<compile_context>
chip_gen: v7x
topology: tpu7x:2x2x1
jax: 0.10.0
libtpu: 0.0.40
codegen_flags: <defaults>
</compile_context>

<pallas_src>
import math
import functools

import jax
import jax.numpy as jnp
from jax import lax
from jax.experimental import pallas as pl
from jax.experimental.pallas import tpu as pltpu


_DOT_DTYPE = jnp.bfloat16   # MXU-native operand dtype; accumulation stays f32


# ----------------------------------------------------------------------------
# In-kernel multi-head attention (traced inline)
# ----------------------------------------------------------------------------
def _mha_block(xq16, xkv16, mask_bias, p_refs, head_scr, *, num_heads, d_k):
    """Multi-head attention on VMEM-resident values.  Returns [tq, D] f32.

    * 1/sqrt(d_k) is already folded into (wq, bq) by the wrapper.
    * mask_bias: precomputed additive bias [tq, Nkv] (or None).
    * Head outputs go into a bf16 VMEM scratch at static column slices; one
      fat [tq, D] @ [D, D] Wo matmul follows the head loop.
    * Scores contract the last dim of q and k via dot_general (no k.T).
    """
    wq_ref, bq_ref, wk_ref, bk_ref, wv_ref, bv_ref, wo_ref, bo_ref = p_refs

    q16 = (jnp.dot(xq16, wq_ref[...], preferred_element_type=jnp.float32)
           + bq_ref[...]).astype(_DOT_DTYPE)
    k16 = (jnp.dot(xkv16, wk_ref[...], preferred_element_type=jnp.float32)
           + bk_ref[...]).astype(_DOT_DTYPE)
    v16 = (jnp.dot(xkv16, wv_ref[...], preferred_element_type=jnp.float32)
           + bv_ref[...]).astype(_DOT_DTYPE)

    for h in range(num_heads):                       # static unroll over heads
        sl = slice(h * d_k, (h + 1) * d_k)
        # scores: contract last dims of qh/kh directly (no XLU transpose)
        s = lax.dot_general(q16[:, sl], k16[:, sl],
                            dimension_numbers=(((1,), (1,)), ((), ())),
                            preferred_element_type=jnp.float32)    # [tq, Nkv]
        if mask_bias is not None:
            s = s + mask_bias                        # hoisted additive mask
        # numerically-stable softmax in f32; divide -> EUP reciprocal
        s = s - jnp.max(s, axis=-1, keepdims=True)
        e = jnp.exp(s)
        p = e * pl.reciprocal(jnp.sum(e, axis=-1, keepdims=True), approx=True)

        oh = jnp.dot(p.astype(_DOT_DTYPE), v16[:, sl],
                     preferred_element_type=jnp.float32)           # [tq, d_k]
        head_scr[:, sl] = oh.astype(_DOT_DTYPE)      # cheap static-column store

    # single full-K output projection (much better MXU utilization than
    # num_heads K=d_k matmuls)
    return (jnp.dot(head_scr[...], wo_ref[...],
                    preferred_element_type=jnp.float32) + bo_ref[...])


# ----------------------------------------------------------------------------
# Fused decoder-layer kernel (self-attn + src-attn + FFN, all residual)
# ----------------------------------------------------------------------------
def _decoder_layer_kernel(*refs, num_heads, d_k, has_tgt_mask, has_src_mask):
    head_scr = refs[-1]                                # VMEM (tq, D) bf16 scratch
    out_ref = refs[-2]                                 # (1, tq, D) f32
    it = iter(refs[:-2])
    xq_ref = next(it)                                  # (1, tq, D) f32  Q rows / residual
    xkv_ref = next(it)                                 # (1, Nq, D) f32  full x (self-attn K/V)
    mem_ref = next(it)                                 # (1, Nk, D) f32
    tgt_mask_ref = next(it) if has_tgt_mask else None  # (1, tq, Nq) bf16
    src_mask_ref = next(it) if has_src_mask else None  # (1, tq, Nk) bf16
    self_refs = tuple(next(it) for _ in range(8))      # weight/bias refs, loaded at use
    src_refs = tuple(next(it) for _ in range(8))
    w1_ref, b1_ref, w2_ref, b2_ref = (next(it) for _ in range(4))

    neg = jnp.float32(-1e9)
    zero = jnp.float32(0.0)

    x = xq_ref[0]                 # [tq, D] f32 — resident across all three sublayers

    # ---- sublayer 0: self-attention + residual ------------------------------
    # NOTE: exact float equality on a 0/1 mask, matching masked_fill(mask == 0).
    tgt_bias = None if tgt_mask_ref is None else jnp.where(
        tgt_mask_ref[0] == 0, neg, zero)
    x = x + _mha_block(x.astype(_DOT_DTYPE), xkv_ref[0].astype(_DOT_DTYPE),
                       tgt_bias, self_refs, head_scr,
                       num_heads=num_heads, d_k=d_k)

    # ---- sublayer 1: source attention + residual ----------------------------
    # src bias / memory cast are built here (not at entry) to keep them out of
    # the live set during self-attention.
    src_bias = None if src_mask_ref is None else jnp.where(
        src_mask_ref[0] == 0, neg, zero)
    x = x + _mha_block(x.astype(_DOT_DTYPE), mem_ref[0].astype(_DOT_DTYPE),
                       src_bias, src_refs, head_scr,
                       num_heads=num_heads, d_k=d_k)

    # ---- sublayer 2: position-wise feed-forward + residual -------------------
    hdn = jnp.dot(x.astype(_DOT_DTYPE), w1_ref[...],
                  preferred_element_type=jnp.float32) + b1_ref[...]
    hdn = jnp.maximum(hdn, 0.0)
    y = jnp.dot(hdn.astype(_DOT_DTYPE), w2_ref[...],
                preferred_element_type=jnp.float32) + b2_ref[...]
    out_ref[0] = x + y


# ----------------------------------------------------------------------------
# Wrapper (pallas_call plumbing + parameter prep)
# ----------------------------------------------------------------------------
def _prep_attn_params(p, d_k):
    """Fold 1/sqrt(d_k) into (Wq, bq); cast weights to bf16, keep biases f32."""
    wq, bq, wk, bk, wv, bv, wo, bo = p
    scale = 1.0 / math.sqrt(d_k)
    return ((wq * scale).astype(_DOT_DTYPE), (bq * scale).astype(jnp.float32),
            wk.astype(_DOT_DTYPE), bk.astype(jnp.float32),
            wv.astype(_DOT_DTYPE), bv.astype(jnp.float32),
            wo.astype(_DOT_DTYPE), bo.astype(jnp.float32))


def _pick_vmem_limit():
    """Chip-aware scoped-VMEM budget (headroom left for compiler scratch):
    ~48 MiB on v7x (64 MiB physical), capped at 96 MiB on v5e/v6e (128 MiB)."""
    try:
        cap = int(pltpu.get_tpu_info().vmem_capacity_bytes)
    except Exception:                                   # query unavailable
        return 32 * 1024 * 1024
    return int(min(cap * 3 // 4, 96 * 1024 * 1024))


def decoder_layer(x, memory, src_mask, tgt_mask, params, *, num_heads,
                  q_block=None):
    """Fused Pallas implementation of DecoderLayer.forward (single pallas_call).

    x: [B, Nq, D], memory: [B, Nk, D], masks: [B, Nq, Nk] (0/1 floats) or None.
    """
    B, Nq, D = x.shape
    Nk = memory.shape[1]
    assert D % num_heads == 0
    d_k = D // num_heads

    # ---- q-tile size (second "parallel" grid axis) --------------------------
    if q_block is None:
        q_block = 128 if (Nq % 128 == 0) else Nq
    tq = q_block
    if tq != Nq and (Nq % tq != 0 or tq % 8 != 0):
        tq = Nq                         # fall back to whole-row blocks
    n_qt = Nq // tq

    self_p = _prep_attn_params(params["self_attn"], d_k)
    src_p = _prep_attn_params(params["src_attn"], d_k)
    w1, b1, w2, b2 = params["ffn"]
    ffn_p = (w1.astype(_DOT_DTYPE), b1.astype(jnp.float32),
             w2.astype(_DOT_DTYPE), b2.astype(jnp.float32))
    d_ff = w1.shape[1]

    # inputs: tiled x (Q/residual), full x (self-attn K/V), memory, masks, weights
    inputs = [x, x, memory]
    if tgt_mask is not None:
        inputs.append(tgt_mask.astype(_DOT_DTYPE))   # 0/1 exact in bf16; halves DMA
    if src_mask is not None:
        inputs.append(src_mask.astype(_DOT_DTYPE))
    weight_arrays = (*self_p, *src_p, *ffn_p)
    inputs.extend(weight_arrays)

    kernel = functools.partial(
        _decoder_layer_kernel, num_heads=num_heads, d_k=d_k,
        has_tgt_mask=tgt_mask is not None, has_src_mask=src_mask is not None)

    # advisory cost hint so XLA schedules surrounding ops sensibly
    def _mha_flops(nkv):
        return 2 * (Nq * D * D + 2 * nkv * D * D + 2 * Nq * nkv * D + Nq * D * D)
    cost = pl.CostEstimate(
        flops=int(B * (_mha_flops(Nq) + _mha_flops(Nk) + 2 * 2 * Nq * D * d_ff)),
        transcendentals=int(B * (Nq * Nq + Nq * Nk)),
        bytes_accessed=int(sum(int(a.size) * a.dtype.itemsize for a in inputs)
                           + B * Nq * D * 4))

    def build(single_buffer_weights):
        def q_tiled(last):
            return pl.BlockSpec((1, tq, last), lambda b, qi: (b, qi, 0))

        def full(n, last):
            return pl.BlockSpec((1, n, last), lambda b, qi: (b, 0, 0))

        def weight_spec(arr):
            zeros = (0,) * arr.ndim
            if single_buffer_weights:
                # constant index + single buffer: fetched once, not duplicated
                # by the double-buffering pipeline (saves VMEM, esp. on v7x).
                return pl.BlockSpec(arr.shape, lambda b, qi, _z=zeros: _z,
                                    pipeline_mode=pl.Buffered(1))
            return pl.BlockSpec(arr.shape, lambda b, qi, _z=zeros: _z)

        in_specs = [q_tiled(D), full(Nq, D), full(Nk, D)]
        if tgt_mask is not None:
            in_specs.append(q_tiled(Nq))
        if src_mask is not None:
            in_specs.append(q_tiled(Nk))
        in_specs.extend(weight_spec(a) for a in weight_arrays)

        return pl.pallas_call(
            kernel,
            out_shape=jax.ShapeDtypeStruct((B, Nq, D), jnp.float32),
            grid=(B, n_qt),
            in_specs=in_specs,
            out_specs=q_tiled(D),
            scratch_shapes=[pltpu.VMEM((tq, D), _DOT_DTYPE)],  # head-output buffer
            compiler_params=pltpu.CompilerParams(
                dimension_semantics=("parallel", "parallel"),
                vmem_limit_bytes=_pick_vmem_limit()),
            cost_estimate=cost,
        )

    try:
        return build(True)(*inputs)
    except Exception:
        # TODO(synk): pipeline_mode=pl.Buffered(1) unsupported on this jax
        # version; fall back to default (double-buffered) weight specs.
        return build(False)(*inputs)


# ----------------------------------------------------------------------------
# Pure-JAX f32 reference (original module semantics) for correctness check
# ----------------------------------------------------------------------------
def _mha_ref(x, mem, mask, params, num_heads):
    wq, bq, wk, bk, wv, bv, wo, bo = params
    B, Nq, D = x.shape
    Nk = mem.shape[1]
    d_k = D // num_heads
    q = (x @ wq + bq).reshape(B, Nq, num_heads, d_k).transpose(0, 2, 1, 3)
    k = (mem @ wk + bk).reshape(B, Nk, num_heads, d_k).transpose(0, 2, 1, 3)
    v = (mem @ wv + bv).reshape(B, Nk, num_heads, d_k).transpose(0, 2, 1, 3)
    s = jnp.einsum("bhqd,bhkd->bhqk", q, k) / math.sqrt(d_k)
    if mask is not None:
        s = jnp.where(mask[:, None, :, :] == 0, -1e9, s)
    p = jax.nn.softmax(s, axis=-1)
    o = jnp.einsum("bhqk,bhkd->bhqd", p, v).transpose(0, 2, 1, 3).reshape(B, Nq, D)
    return x + (o @ wo + bo)


def _decoder_ref(x, memory, src_mask, tgt_mask, params, num_heads):
    x = _mha_ref(x, x, tgt_mask, params["self_attn"], num_heads)
    x = _mha_ref(x, memory, src_mask, params["src_attn"], num_heads)
    w1, b1, w2, b2 = params["ffn"]
    return x + (jnp.maximum(x @ w1 + b1, 0.0) @ w2 + b2)


# ----------------------------------------------------------------------------
# Deterministic parameter init + demo
# ----------------------------------------------------------------------------
def _init_params(key, d_model, d_ff):
    ks = jax.random.split(key, 6)

    def lin(kw, kb, din, dout):
        # weights stored [in, out] (== PyTorch Linear weight transposed)
        w = jax.random.normal(kw, (din, dout), jnp.float32) * (1.0 / math.sqrt(din))
        b = jax.random.normal(kb, (1, dout), jnp.float32) * 0.01
        return w, b

    def attn_block(kslice):
        p = []
        for i in range(4):
            w, b = lin(kslice[2 * i], kslice[2 * i + 1], d_model, d_model)
            p += [w, b]
        return tuple(p)

    self_attn = attn_block(jax.random.split(ks[0], 8))
    src_attn = attn_block(jax.random.split(ks[1], 8))
    w1, b1 = lin(ks[2], ks[3], d_model, d_ff)
    w2, b2 = lin(ks[4], ks[5], d_ff, d_model)
    return {"self_attn": self_attn, "src_attn": src_attn, "ffn": (w1, b1, w2, b2)}


if __name__ == "__main__":
    B, N_TGT, N_SRC, D_MODEL, N_HEADS, D_FF = 2, 8, 8, 32, 4, 64

    key = jax.random.PRNGKey(0)
    kx, km, kp, kmt, kms = jax.random.split(key, 5)
    x = jax.random.normal(kx, (B, N_TGT, D_MODEL), jnp.float32)
    memory = jax.random.normal(km, (B, N_SRC, D_MODEL), jnp.float32)
    params = _init_params(kp, D_MODEL, D_FF)

    # bf16 MXU operands vs the pure-f32 reference => relaxed tolerance.
    ATOL, RTOL = 1e-1, 1e-2

    # 1) DCP/dgcnn usage: src_mask = tgt_mask = None (mask-free kernel variant).
    out = decoder_layer(x, memory, None, None, params, num_heads=N_HEADS)
    out = jax.block_until_ready(out)
    ref = _decoder_ref(x, memory, None, None, params, N_HEADS)
    assert out.shape == (B, N_TGT, D_MODEL)
    assert jnp.allclose(out, ref, atol=ATOL, rtol=RTOL), \
        "Pallas output (no mask) mismatch vs reference"

    # 2) Masked variant (exercises the additive-bias path).
    tgt_mask = (jax.random.uniform(kmt, (B, N_TGT, N_TGT)) < 0.7).astype(jnp.float32)
    src_mask = (jax.random.uniform(kms, (B, N_TGT, N_SRC)) < 0.7).astype(jnp.float32)
    tgt_mask = tgt_mask.at[:, :, 0].set(1.0)   # keep every query row non-empty
    src_mask = src_mask.at[:, :, 0].set(1.0)
    out_m = decoder_layer(x, memory, src_mask, tgt_mask, params, num_heads=N_HEADS)
    out_m = jax.block_until_ready(out_m)
    ref_m = _decoder_ref(x, memory, src_mask, tgt_mask, params, N_HEADS)
    assert jnp.allclose(out_m, ref_m, atol=ATOL, rtol=RTOL), \
        "Pallas output (masked) mismatch vs reference"

    print("KERNEL_OK")
</pallas_src>

<mosaic_0001>
module attributes {stable_mosaic.version = 11 : i64} {
  func.func @_decoder_layer_kernel(%arg0: i32, %arg1: i32, %arg2: memref<1x8x32xf32, #tpu.memory_space<vmem>>, %arg3: memref<1x8x32xf32, #tpu.memory_space<vmem>>, %arg4: memref<1x8x32xf32, #tpu.memory_space<vmem>>, %arg5: memref<32x32xbf16, #tpu.memory_space<vmem>>, %arg6: memref<1x32xf32, #tpu.memory_space<vmem>>, %arg7: memref<32x32xbf16, #tpu.memory_space<vmem>>, %arg8: memref<1x32xf32, #tpu.memory_space<vmem>>, %arg9: memref<32x32xbf16, #tpu.memory_space<vmem>>, %arg10: memref<1x32xf32, #tpu.memory_space<vmem>>, %arg11: memref<32x32xbf16, #tpu.memory_space<vmem>>, %arg12: memref<1x32xf32, #tpu.memory_space<vmem>>, %arg13: memref<32x32xbf16, #tpu.memory_space<vmem>>, %arg14: memref<1x32xf32, #tpu.memory_space<vmem>>, %arg15: memref<32x32xbf16, #tpu.memory_space<vmem>>, %arg16: memref<1x32xf32, #tpu.memory_space<vmem>>, %arg17: memref<32x32xbf16, #tpu.memory_space<vmem>>, %arg18: memref<1x32xf32, #tpu.memory_space<vmem>>, %arg19: memref<32x32xbf16, #tpu.memory_space<vmem>>, %arg20: memref<1x32xf32, #tpu.memory_space<vmem>>, %arg21: memref<32x64xbf16, #tpu.memory_space<vmem>>, %arg22: memref<1x64xf32, #tpu.memory_space<vmem>>, %arg23: memref<64x32xbf16, #tpu.memory_space<vmem>>, %arg24: memref<1x32xf32, #tpu.memory_space<vmem>>, %arg25: memref<1x8x32xf32, #tpu.memory_space<vmem>>, %arg26: memref<8x32xbf16, #tpu.memory_space<vmem>>) attributes {dimension_semantics = [#tpu.dimension_semantics<parallel>, #tpu.dimension_semantics<parallel>], iteration_bounds = array<i64: 2, 1>, scalar_prefetch = 0 : i64, scratch_operands = 1 : i64, tpu.core_type = #tpu.core_type<tc>, window_params = [{transform_indices = @transform_0, window_bounds = array<i64: 1, 8, 32>}, {transform_indices = @transform_1, window_bounds = array<i64: 1, 8, 32>}, {transform_indices = @transform_2, window_bounds = array<i64: 1, 8, 32>}, {pipeline_mode = #tpu.pipeline_mode<synchronous>, transform_indices = @transform_3, window_bounds = array<i64: 32, 32>}, {pipeline_mode = #tpu.pipeline_mode<synchronous>, transform_indices = @transform_4, window_bounds = array<i64: 1, 32>}, {pipeline_mode = #tpu.pipeline_mode<synchronous>, transform_indices = @transform_5, window_bounds = array<i64: 32, 32>}, {pipeline_mode = #tpu.pipeline_mode<synchronous>, transform_indices = @transform_6, window_bounds = array<i64: 1, 32>}, {pipeline_mode = #tpu.pipeline_mode<synchronous>, transform_indices = @transform_7, window_bounds = array<i64: 32, 32>}, {pipeline_mode = #tpu.pipeline_mode<synchronous>, transform_indices = @transform_8, window_bounds = array<i64: 1, 32>}, {pipeline_mode = #tpu.pipeline_mode<synchronous>, transform_indices = @transform_9, window_bounds = array<i64: 32, 32>}, {pipeline_mode = #tpu.pipeline_mode<synchronous>, transform_indices = @transform_10, window_bounds = array<i64: 1, 32>}, {pipeline_mode = #tpu.pipeline_mode<synchronous>, transform_indices = @transform_11, window_bounds = array<i64: 32, 32>}, {pipeline_mode = #tpu.pipeline_mode<synchronous>, transform_indices = @transform_12, window_bounds = array<i64: 1, 32>}, {pipeline_mode = #tpu.pipeline_mode<synchronous>, transform_indices = @transform_13, window_bounds = array<i64: 32, 32>}, {pipeline_mode = #tpu.pipeline_mode<synchronous>, transform_indices = @transform_14, window_bounds = array<i64: 1, 32>}, {pipeline_mode = #tpu.pipeline_mode<synchronous>, transform_indices = @transform_15, window_bounds = array<i64: 32, 32>}, {pipeline_mode = #tpu.pipeline_mode<synchronous>, transform_indices = @transform_16, window_bounds = array<i64: 1, 32>}, {pipeline_mode = #tpu.pipeline_mode<synchronous>, transform_indices = @transform_17, window_bounds = array<i64: 32, 32>}, {pipeline_mode = #tpu.pipeline_mode<synchronous>, transform_indices = @transform_18, window_bounds = array<i64: 1, 32>}, {pipeline_mode = #tpu.pipeline_mode<synchronous>, transform_indices = @transform_19, window_bounds = array<i64: 32, 64>}, {pipeline_mode = #tpu.pipeline_mode<synchronous>, transform_indices = @transform_20, window_bounds = array<i64: 1, 64>}, {pipeline_mode = #tpu.pipeline_mode<synchronous>, transform_indices = @transform_21, window_bounds = array<i64: 64, 32>}, {pipeline_mode = #tpu.pipeline_mode<synchronous>, transform_indices = @transform_22, window_bounds = array<i64: 1, 32>}, {transform_indices = @transform_23, window_bounds = array<i64: 1, 8, 32>}]} {
    %c0 = arith.constant 0 : index
    %c0_0 = arith.constant 0 : index
    %c0_1 = arith.constant 0 : index
    %0 = vector.load %arg2[%c0, %c0_0, %c0_1] : memref<1x8x32xf32, #tpu.memory_space<vmem>>, vector<1x8x32xf32>
    %1 = vector.shape_cast %0 : vector<1x8x32xf32> to vector<8x32xf32>
    %2 = arith.truncf %1 : vector<8x32xf32> to vector<8x32xbf16>
    %c0_2 = arith.constant 0 : index
    %c0_3 = arith.constant 0 : index
    %c0_4 = arith.constant 0 : index
    %3 = vector.load %arg3[%c0_2, %c0_3, %c0_4] : memref<1x8x32xf32, #tpu.memory_space<vmem>>, vector<1x8x32xf32>
    %4 = vector.shape_cast %3 : vector<1x8x32xf32> to vector<8x32xf32>
    %5 = arith.truncf %4 : vector<8x32xf32> to vector<8x32xbf16>
    %c0_5 = arith.constant 0 : index
    %c0_6 = arith.constant 0 : index
    %6 = vector.load %arg5[%c0_5, %c0_6] : memref<32x32xbf16, #tpu.memory_space<vmem>>, vector<32x32xbf16>
    %cst = arith.constant dense<0.000000e+00> : vector<8x32xf32>
    %7 = tpu.matmul %2, %6, %cst {dimension_numbers = #tpu.dot_dimension_numbers<[1], [0], [0], [1], [0, 0, 1, 1], [], []>} : vector<8x32xbf16>, vector<32x32xbf16>, vector<8x32xf32> -> vector<8x32xf32>
    %c0_7 = arith.constant 0 : index
    %c0_8 = arith.constant 0 : index
    %8 = vector.load %arg6[%c0_7, %c0_8] : memref<1x32xf32, #tpu.memory_space<vmem>>, vector<1x32xf32>
    %9 = vector.broadcast %8 : vector<1x32xf32> to vector<8x32xf32>
    %10 = arith.addf %7, %9 : vector<8x32xf32>
    %11 = arith.truncf %10 : vector<8x32xf32> to vector<8x32xbf16>
    %c0_9 = arith.constant 0 : index
    %c0_10 = arith.constant 0 : index
    %12 = vector.load %arg7[%c0_9, %c0_10] : memref<32x32xbf16, #tpu.memory_space<vmem>>, vector<32x32xbf16>
    %cst_11 = arith.constant dense<0.000000e+00> : vector<8x32xf32>
    %13 = tpu.matmul %5, %12, %cst_11 {dimension_numbers = #tpu.dot_dimension_numbers<[1], [0], [0], [1], [0, 0, 1, 1], [], []>} : vector<8x32xbf16>, vector<32x32xbf16>, vector<8x32xf32> -> vector<8x32xf32>
    %c0_12 = arith.constant 0 : index
    %c0_13 = arith.constant 0 : index
    %14 = vector.load %arg8[%c0_12, %c0_13] : memref<1x32xf32, #tpu.memory_space<vmem>>, vector<1x32xf32>
    %15 = vector.broadcast %14 : vector<1x32xf32> to vector<8x32xf32>
    %16 = arith.addf %13, %15 : vector<8x32xf32>
    %17 = arith.truncf %16 : vector<8x32xf32> to vector<8x32xbf16>
    %c0_14 = arith.constant 0 : index
    %c0_15 = arith.constant 0 : index
    %18 = vector.load %arg9[%c0_14, %c0_15] : memref<32x32xbf16, #tpu.memory_space<vmem>>, vector<32x32xbf16>
    %cst_16 = arith.constant dense<0.000000e+00> : vector<8x32xf32>
    %19 = tpu.matmul %5, %18, %cst_16 {dimension_numbers = #tpu.dot_dimension_numbers<[1], [0], [0], [1], [0, 0, 1, 1], [], []>} : vector<8x32xbf16>, vector<32x32xbf16>, vector<8x32xf32> -> vector<8x32xf32>
    %c0_17 = arith.constant 0 : index
    %c0_18 = arith.constant 0 : index
    %20 = vector.load %arg10[%c0_17, %c0_18] : memref<1x32xf32, #tpu.memory_space<vmem>>, vector<1x32xf32>
    %21 = vector.broadcast %20 : vector<1x32xf32> to vector<8x32xf32>
    %22 = arith.addf %19, %21 : vector<8x32xf32>
    %23 = arith.truncf %22 : vector<8x32xf32> to vector<8x32xbf16>
    %24 = vector.extract_strided_slice %11 {offsets = [0, 0], sizes = [8, 8], strides = [1, 1]} : vector<8x32xbf16> to vector<8x8xbf16>
    %25 = vector.extract_strided_slice %17 {offsets = [0, 0], sizes = [8, 8], strides = [1, 1]} : vector<8x32xbf16> to vector<8x8xbf16>
    %cst_19 = arith.constant dense<0.000000e+00> : vector<8x8xf32>
    %26 = tpu.matmul %24, %25, %cst_19 {dimension_numbers = #tpu.dot_dimension_numbers<[1], [1], [0], [0], [0, 0, 1, 0], [], []>} : vector<8x8xbf16>, vector<8x8xbf16>, vector<8x8xf32> -> vector<8x8xf32>
    %cst_20 = arith.constant dense<0xFF800000> : vector<8xf32>
    %27 = vector.multi_reduction <maximumf>, %26, %cst_20 [1] : vector<8x8xf32> to vector<8xf32>
    %28 = vector.shape_cast %27 : vector<8xf32> to vector<8x1xf32>
    %29 = vector.broadcast %28 : vector<8x1xf32> to vector<8x8xf32>
    %30 = arith.subf %26, %29 : vector<8x8xf32>
    %31 = math.exp %30 : vector<8x8xf32>
    %cst_21 = arith.constant dense<0.000000e+00> : vector<8xf32>
    %32 = vector.multi_reduction <add>, %31, %cst_21 [1] : vector<8x8xf32> to vector<8xf32>
    %33 = vector.shape_cast %32 : vector<8xf32> to vector<8x1xf32>
    %34 = tpu.reciprocal %33 {approx = true} : vector<8x1xf32> -> vector<8x1xf32>
    %35 = vector.broadcast %34 : vector<8x1xf32> to vector<8x8xf32>
    %36 = arith.mulf %31, %35 : vector<8x8xf32>
    %37 = arith.truncf %36 : vector<8x8xf32> to vector<8x8xbf16>
    %38 = vector.extract_strided_slice %23 {offsets = [0, 0], sizes = [8, 8], strides = [1, 1]} : vector<8x32xbf16> to vector<8x8xbf16>
    %cst_22 = arith.constant dense<0.000000e+00> : vector<8x8xf32>
    %39 = tpu.matmul %37, %38, %cst_22 {dimension_numbers = #tpu.dot_dimension_numbers<[1], [0], [0], [1], [0, 0, 1, 1], [], []>} : vector<8x8xbf16>, vector<8x8xbf16>, vector<8x8xf32> -> vector<8x8xf32>
    %40 = arith.truncf %39 : vector<8x8xf32> to vector<8x8xbf16>
    %c0_23 = arith.constant 0 : index
    %c0_24 = arith.constant 0 : index
    %41 = vector.load %arg26[%c0_23, %c0_24] : memref<8x32xbf16, #tpu.memory_space<vmem>>, vector<8x8xbf16>
    tpu.vector_store %arg26[%c0_23, %c0_24], %40 {strides = array<i32>} : memref<8x32xbf16, #tpu.memory_space<vmem>>, vector<8x8xbf16>,
    %42 = vector.extract_strided_slice %11 {offsets = [0, 8], sizes = [8, 8], strides = [1, 1]} : vector<8x32xbf16> to vector<8x8xbf16>
    %43 = vector.extract_strided_slice %17 {offsets = [0, 8], sizes = [8, 8], strides = [1, 1]} : vector<8x32xbf16> to vector<8x8xbf16>
    %cst_25 = arith.constant dense<0.000000e+00> : vector<8x8xf32>
    %44 = tpu.matmul %42, %43, %cst_25 {dimension_numbers = #tpu.dot_dimension_numbers<[1], [1], [0], [0], [0, 0, 1, 0], [], []>} : vector<8x8xbf16>, vector<8x8xbf16>, vector<8x8xf32> -> vector<8x8xf32>
    %cst_26 = arith.constant dense<0xFF800000> : vector<8xf32>
    %45 = vector.multi_reduction <maximumf>, %44, %cst_26 [1] : vector<8x8xf32> to vector<8xf32>
    %46 = vector.shape_cast %45 : vector<8xf32> to vector<8x1xf32>
    %47 = vector.broadcast %46 : vector<8x1xf32> to vector<8x8xf32>
    %48 = arith.subf %44, %47 : vector<8x8xf32>
    %49 = math.exp %48 : vector<8x8xf32>
    %cst_27 = arith.constant dense<0.000000e+00> : vector<8xf32>
    %50 = vector.multi_reduction <add>, %49, %cst_27 [1] : vector<8x8xf32> to vector<8xf32>
    %51 = vector.shape_cast %50 : vector<8xf32> to vector<8x1xf32>
    %52 = tpu.reciprocal %51 {approx = true} : vector<8x1xf32> -> vector<8x1xf32>
    %53 = vector.broadcast %52 : vector<8x1xf32> to vector<8x8xf32>
    %54 = arith.mulf %49, %53 : vector<8x8xf32>
    %55 = arith.truncf %54 : vector<8x8xf32> to vector<8x8xbf16>
    %56 = vector.extract_strided_slice %23 {offsets = [0, 8], sizes = [8, 8], strides = [1, 1]} : vector<8x32xbf16> to vector<8x8xbf16>
    %cst_28 = arith.constant dense<0.000000e+00> : vector<8x8xf32>
    %57 = tpu.matmul %55, %56, %cst_28 {dimension_numbers = #tpu.dot_dimension_numbers<[1], [0], [0], [1], [0, 0, 1, 1], [], []>} : vector<8x8xbf16>, vector<8x8xbf16>, vector<8x8xf32> -> vector<8x8xf32>
    %58 = arith.truncf %57 : vector<8x8xf32> to vector<8x8xbf16>
    %c0_29 = arith.constant 0 : index
    %c8 = arith.constant 8 : index
    %59 = vector.load %arg26[%c0_29, %c8] : memref<8x32xbf16, #tpu.memory_space<vmem>>, vector<8x8xbf16>
    tpu.vector_store %arg26[%c0_29, %c8], %58 {strides = array<i32>} : memref<8x32xbf16, #tpu.memory_space<vmem>>, vector<8x8xbf16>,
    %60 = vector.extract_strided_slice %11 {offsets = [0, 16], sizes = [8, 8], strides = [1, 1]} : vector<8x32xbf16> to vector<8x8xbf16>
    %61 = vector.extract_strided_slice %17 {offsets = [0, 16], sizes = [8, 8], strides = [1, 1]} : vector<8x32xbf16> to vector<8x8xbf16>
    %cst_30 = arith.constant dense<0.000000e+00> : vector<8x8xf32>
    %62 = tpu.matmul %60, %61, %cst_30 {dimension_numbers = #tpu.dot_dimension_numbers<[1], [1], [0], [0], [0, 0, 1, 0], [], []>} : vector<8x8xbf16>, vector<8x8xbf16>, vector<8x8xf32> -> vector<8x8xf32>
    %cst_31 = arith.constant dense<0xFF800000> : vector<8xf32>
    %63 = vector.multi_reduction <maximumf>, %62, %cst_31 [1] : vector<8x8xf32> to vector<8xf32>
    %64 = vector.shape_cast %63 : vector<8xf32> to vector<8x1xf32>
    %65 = vector.broadcast %64 : vector<8x1xf32> to vector<8x8xf32>
    %66 = arith.subf %62, %65 : vector<8x8xf32>
    %67 = math.exp %66 : vector<8x8xf32>
    %cst_32 = arith.constant dense<0.000000e+00> : vector<8xf32>
    %68 = vector.multi_reduction <add>, %67, %cst_32 [1] : vector<8x8xf32> to vector<8xf32>
    %69 = vector.shape_cast %68 : vector<8xf32> to vector<8x1xf32>
    %70 = tpu.reciprocal %69 {approx = true} : vector<8x1xf32> -> vector<8x1xf32>
    %71 = vector.broadcast %70 : vector<8x1xf32> to vector<8x8xf32>
    %72 = arith.mulf %67, %71 : vector<8x8xf32>
    %73 = arith.truncf %72 : vector<8x8xf32> to vector<8x8xbf16>
    %74 = vector.extract_strided_slice %23 {offsets = [0, 16], sizes = [8, 8], strides = [1, 1]} : vector<8x32xbf16> to vector<8x8xbf16>
    %cst_33 = arith.constant dense<0.000000e+00> : vector<8x8xf32>
    %75 = tpu.matmul %73, %74, %cst_33 {dimension_numbers = #tpu.dot_dimension_numbers<[1], [0], [0], [1], [0, 0, 1, 1], [], []>} : vector<8x8xbf16>, vector<8x8xbf16>, vector<8x8xf32> -> vector<8x8xf32>
    %76 = arith.truncf %75 : vector<8x8xf32> to vector<8x8xbf16>
    %c0_34 = arith.constant 0 : index
    %c16 = arith.constant 16 : index
    %77 = vector.load %arg26[%c0_34, %c16] : memref<8x32xbf16, #tpu.memory_space<vmem>>, vector<8x8xbf16>
    tpu.vector_store %arg26[%c0_34, %c16], %76 {strides = array<i32>} : memref<8x32xbf16, #tpu.memory_space<vmem>>, vector<8x8xbf16>,
    %78 = vector.extract_strided_slice %11 {offsets = [0, 24], sizes = [8, 8], strides = [1, 1]} : vector<8x32xbf16> to vector<8x8xbf16>
    %79 = vector.extract_strided_slice %17 {offsets = [0, 24], sizes = [8, 8], strides = [1, 1]} : vector<8x32xbf16> to vector<8x8xbf16>
    %cst_35 = arith.constant dense<0.000000e+00> : vector<8x8xf32>
    %80 = tpu.matmul %78, %79, %cst_35 {dimension_numbers = #tpu.dot_dimension_numbers<[1], [1], [0], [0], [0, 0, 1, 0], [], []>} : vector<8x8xbf16>, vector<8x8xbf16>, vector<8x8xf32> -> vector<8x8xf32>
    %cst_36 = arith.constant dense<0xFF800000> : vector<8xf32>
    %81 = vector.multi_reduction <maximumf>, %80, %cst_36 [1] : vector<8x8xf32> to vector<8xf32>
    %82 = vector.shape_cast %81 : vector<8xf32> to vector<8x1xf32>
    %83 = vector.broadcast %82 : vector<8x1xf32> to vector<8x8xf32>
    %84 = arith.subf %80, %83 : vector<8x8xf32>
    %85 = math.exp %84 : vector<8x8xf32>
    %cst_37 = arith.constant dense<0.000000e+00> : vector<8xf32>
    %86 = vector.multi_reduction <add>, %85, %cst_37 [1] : vector<8x8xf32> to vector<8xf32>
    %87 = vector.shape_cast %86 : vector<8xf32> to vector<8x1xf32>
    %88 = tpu.reciprocal %87 {approx = true} : vector<8x1xf32> -> vector<8x1xf32>
    %89 = vector.broadcast %88 : vector<8x1xf32> to vector<8x8xf32>
    %90 = arith.mulf %85, %89 : vector<8x8xf32>
    %91 = arith.truncf %90 : vector<8x8xf32> to vector<8x8xbf16>
    %92 = vector.extract_strided_slice %23 {offsets = [0, 24], sizes = [8, 8], strides = [1, 1]} : vector<8x32xbf16> to vector<8x8xbf16>
    %cst_38 = arith.constant dense<0.000000e+00> : vector<8x8xf32>
    %93 = tpu.matmul %91, %92, %cst_38 {dimension_numbers = #tpu.dot_dimension_numbers<[1], [0], [0], [1], [0, 0, 1, 1], [], []>} : vector<8x8xbf16>, vector<8x8xbf16>, vector<8x8xf32> -> vector<8x8xf32>
    %94 = arith.truncf %93 : vector<8x8xf32> to vector<8x8xbf16>
    %c0_39 = arith.constant 0 : index
    %c24 = arith.constant 24 : index
    %95 = vector.load %arg26[%c0_39, %c24] : memref<8x32xbf16, #tpu.memory_space<vmem>>, vector<8x8xbf16>
    tpu.vector_store %arg26[%c0_39, %c24], %94 {strides = array<i32>} : memref<8x32xbf16, #tpu.memory_space<vmem>>, vector<8x8xbf16>,
    %c0_40 = arith.constant 0 : index
    %c0_41 = arith.constant 0 : index
    %96 = vector.load %arg26[%c0_40, %c0_41] : memref<8x32xbf16, #tpu.memory_space<vmem>>, vector<8x32xbf16>
    %c0_42 = arith.constant 0 : index
    %c0_43 = arith.constant 0 : index
    %97 = vector.load %arg11[%c0_42, %c0_43] : memref<32x32xbf16, #tpu.memory_space<vmem>>, vector<32x32xbf16>
    %cst_44 = arith.constant dense<0.000000e+00> : vector<8x32xf32>
    %98 = tpu.matmul %96, %97, %cst_44 {dimension_numbers = #tpu.dot_dimension_numbers<[1], [0], [0], [1], [0, 0, 1, 1], [], []>} : vector<8x32xbf16>, vector<32x32xbf16>, vector<8x32xf32> -> vector<8x32xf32>
    %c0_45 = arith.constant 0 : index
    %c0_46 = arith.constant 0 : index
    %99 = vector.load %arg12[%c0_45, %c0_46] : memref<1x32xf32, #tpu.memory_space<vmem>>, vector<1x32xf32>
    %100 = vector.broadcast %99 : vector<1x32xf32> to vector<8x32xf32>
    %101 = arith.addf %98, %100 : vector<8x32xf32>
    %102 = arith.addf %1, %101 : vector<8x32xf32>
    %103 = arith.truncf %102 : vector<8x32xf32> to vector<8x32xbf16>
    %c0_47 = arith.constant 0 : index
    %c0_48 = arith.constant 0 : index
    %c0_49 = arith.constant 0 : index
    %104 = vector.load %arg4[%c0_47, %c0_48, %c0_49] : memref<1x8x32xf32, #tpu.memory_space<vmem>>, vector<1x8x32xf32>
    %105 = vector.shape_cast %104 : vector<1x8x32xf32> to vector<8x32xf32>
    %106 = arith.truncf %105 : vector<8x32xf32> to vector<8x32xbf16>
    %c0_50 = arith.constant 0 : index
    %c0_51 = arith.constant 0 : index
    %107 = vector.load %arg13[%c0_50, %c0_51] : memref<32x32xbf16, #tpu.memory_space<vmem>>, vector<32x32xbf16>
    %cst_52 = arith.constant dense<0.000000e+00> : vector<8x32xf32>
    %108 = tpu.matmul %103, %107, %cst_52 {dimension_numbers = #tpu.dot_dimension_numbers<[1], [0], [0], [1], [0, 0, 1, 1], [], []>} : vector<8x32xbf16>, vector<32x32xbf16>, vector<8x32xf32> -> vector<8x32xf32>
    %c0_53 = arith.constant 0 : index
    %c0_54 = arith.constant 0 : index
    %109 = vector.load %arg14[%c0_53, %c0_54] : memref<1x32xf32, #tpu.memory_space<vmem>>, vector<1x32xf32>
    %110 = vector.broadcast %109 : vector<1x32xf32> to vector<8x32xf32>
    %111 = arith.addf %108, %110 : vector<8x32xf32>
    %112 = arith.truncf %111 : vector<8x32xf32> to vector<8x32xbf16>
    %c0_55 = arith.constant 0 : index
    %c0_56 = arith.constant 0 : index
    %113 = vector.load %arg15[%c0_55, %c0_56] : memref<32x32xbf16, #tpu.memory_space<vmem>>, vector<32x32xbf16>
    %cst_57 = arith.constant dense<0.000000e+00> : vector<8x32xf32>
    %114 = tpu.matmul %106, %113, %cst_57 {dimension_numbers = #tpu.dot_dimension_numbers<[1], [0], [0], [1], [0, 0, 1, 1], [], []>} : vector<8x32xbf16>, vector<32x32xbf16>, vector<8x32xf32> -> vector<8x32xf32>
    %c0_58 = arith.constant 0 : index
    %c0_59 = arith.constant 0 : index
    %115 = vector.load %arg16[%c0_58, %c0_59] : memref<1x32xf32, #tpu.memory_space<vmem>>, vector<1x32xf32>
    %116 = vector.broadcast %115 : vector<1x32xf32> to vector<8x32xf32>
    %117 = arith.addf %114, %116 : vector<8x32xf32>
    %118 = arith.truncf %117 : vector<8x32xf32> to vector<8x32xbf16>
    %c0_60 = arith.constant 0 : index
    %c0_61 = arith.constant 0 : index
    %119 = vector.load %arg17[%c0_60, %c0_61] : memref<32x32xbf16, #tpu.memory_space<vmem>>, vector<32x32xbf16>
    %cst_62 = arith.constant dense<0.000000e+00> : vector<8x32xf32>
    %120 = tpu.matmul %106, %119, %cst_62 {dimension_numbers = #tpu.dot_dimension_numbers<[1], [0], [0], [1], [0, 0, 1, 1], [], []>} : vector<8x32xbf16>, vector<32x32xbf16>, vector<8x32xf32> -> vector<8x32xf32>
    %c0_63 = arith.constant 0 : index
    %c0_64 = arith.constant 0 : index
    %121 = vector.load %arg18[%c0_63, %c0_64] : memref<1x32xf32, #tpu.memory_space<vmem>>, vector<1x32xf32>
    %122 = vector.broadcast %121 : vector<1x32xf32> to vector<8x32xf32>
    %123 = arith.addf %120, %122 : vector<8x32xf32>
    %124 = arith.truncf %123 : vector<8x32xf32> to vector<8x32xbf16>
    %125 = vector.extract_strided_slice %112 {offsets = [0, 0], sizes = [8, 8], strides = [1, 1]} : vector<8x32xbf16> to vector<8x8xbf16>
    %126 = vector.extract_strided_slice %118 {offsets = [0, 0], sizes = [8, 8], strides = [1, 1]} : vector<8x32xbf16> to vector<8x8xbf16>
    %cst_65 = arith.constant dense<0.000000e+00> : vector<8x8xf32>
    %127 = tpu.matmul %125, %126, %cst_65 {dimension_numbers = #tpu.dot_dimension_numbers<[1], [1], [0], [0], [0, 0, 1, 0], [], []>} : vector<8x8xbf16>, vector<8x8xbf16>, vector<8x8xf32> -> vector<8x8xf32>
    %cst_66 = arith.constant dense<0xFF800000> : vector<8xf32>
    %128 = vector.multi_reduction <maximumf>, %127, %cst_66 [1] : vector<8x8xf32> to vector<8xf32>
    %129 = vector.shape_cast %128 : vector<8xf32> to vector<8x1xf32>
    %130 = vector.broadcast %129 : vector<8x1xf32> to vector<8x8xf32>
    %131 = arith.subf %127, %130 : vector<8x8xf32>
    %132 = math.exp %131 : vector<8x8xf32>
    %cst_67 = arith.constant dense<0.000000e+00> : vector<8xf32>
    %133 = vector.multi_reduction <add>, %132, %cst_67 [1] : vector<8x8xf32> to vector<8xf32>
    %134 = vector.shape_cast %133 : vector<8xf32> to vector<8x1xf32>
    %135 = tpu.reciprocal %134 {approx = true} : vector<8x1xf32> -> vector<8x1xf32>
    %136 = vector.broadcast %135 : vector<8x1xf32> to vector<8x8xf32>
    %137 = arith.mulf %132, %136 : vector<8x8xf32>
    %138 = arith.truncf %137 : vector<8x8xf32> to vector<8x8xbf16>
    %139 = vector.extract_strided_slice %124 {offsets = [0, 0], sizes = [8, 8], strides = [1, 1]} : vector<8x32xbf16> to vector<8x8xbf16>
    %cst_68 = arith.constant dense<0.000000e+00> : vector<8x8xf32>
    %140 = tpu.matmul %138, %139, %cst_68 {dimension_numbers = #tpu.dot_dimension_numbers<[1], [0], [0], [1], [0, 0, 1, 1], [], []>} : vector<8x8xbf16>, vector<8x8xbf16>, vector<8x8xf32> -> vector<8x8xf32>
    %141 = arith.truncf %140 : vector<8x8xf32> to vector<8x8xbf16>
    %c0_69 = arith.constant 0 : index
    %c0_70 = arith.constant 0 : index
    %142 = vector.load %arg26[%c0_69, %c0_70] : memref<8x32xbf16, #tpu.memory_space<vmem>>, vector<8x8xbf16>
    tpu.vector_store %arg26[%c0_69, %c0_70], %141 {strides = array<i32>} : memref<8x32xbf16, #tpu.memory_space<vmem>>, vector<8x8xbf16>,
    %143 = vector.extract_strided_slice %112 {offsets = [0, 8], sizes = [8, 8], strides = [1, 1]} : vector<8x32xbf16> to vector<8x8xbf16>
    %144 = vector.extract_strided_slice %118 {offsets = [0, 8], sizes = [8, 8], strides = [1, 1]} : vector<8x32xbf16> to vector<8x8xbf16>
    %cst_71 = arith.constant dense<0.000000e+00> : vector<8x8xf32>
    %145 = tpu.matmul %143, %144, %cst_71 {dimension_numbers = #tpu.dot_dimension_numbers<[1], [1], [0], [0], [0, 0, 1, 0], [], []>} : vector<8x8xbf16>, vector<8x8xbf16>, vector<8x8xf32> -> vector<8x8xf32>
    %cst_72 = arith.constant dense<0xFF800000> : vector<8xf32>
    %146 = vector.multi_reduction <maximumf>, %145, %cst_72 [1] : vector<8x8xf32> to vector<8xf32>
    %147 = vector.shape_cast %146 : vector<8xf32> to vector<8x1xf32>
    %148 = vector.broadcast %147 : vector<8x1xf32> to vector<8x8xf32>
    %149 = arith.subf %145, %148 : vector<8x8xf32>
    %150 = math.exp %149 : vector<8x8xf32>
    %cst_73 = arith.constant dense<0.000000e+00> : vector<8xf32>
    %151 = vector.multi_reduction <add>, %150, %cst_73 [1] : vector<8x8xf32> to vector<8xf32>
    %152 = vector.shape_cast %151 : vector<8xf32> to vector<8x1xf32>
    %153 = tpu.reciprocal %152 {approx = true} : vector<8x1xf32> -> vector<8x1xf32>
    %154 = vector.broadcast %153 : vector<8x1xf32> to vector<8x8xf32>
    %155 = arith.mulf %150, %154 : vector<8x8xf32>
    %156 = arith.truncf %155 : vector<8x8xf32> to vector<8x8xbf16>
    %157 = vector.extract_strided_slice %124 {offsets = [0, 8], sizes = [8, 8], strides = [1, 1]} : vector<8x32xbf16> to vector<8x8xbf16>
    %cst_74 = arith.constant dense<0.000000e+00> : vector<8x8xf32>
    %158 = tpu.matmul %156, %157, %cst_74 {dimension_numbers = #tpu.dot_dimension_numbers<[1], [0], [0], [1], [0, 0, 1, 1], [], []>} : vector<8x8xbf16>, vector<8x8xbf16>, vector<8x8xf32> -> vector<8x8xf32>
    %159 = arith.truncf %158 : vector<8x8xf32> to vector<8x8xbf16>
    %c0_75 = arith.constant 0 : index
    %c8_76 = arith.constant 8 : index
    %160 = vector.load %arg26[%c0_75, %c8_76] : memref<8x32xbf16, #tpu.memory_space<vmem>>, vector<8x8xbf16>
    tpu.vector_store %arg26[%c0_75, %c8_76], %159 {strides = array<i32>} : memref<8x32xbf16, #tpu.memory_space<vmem>>, vector<8x8xbf16>,
    %161 = vector.extract_strided_slice %112 {offsets = [0, 16], sizes = [8, 8], strides = [1, 1]} : vector<8x32xbf16> to vector<8x8xbf16>
    %162 = vector.extract_strided_slice %118 {offsets = [0, 16], sizes = [8, 8], strides = [1, 1]} : vector<8x32xbf16> to vector<8x8xbf16>
    %cst_77 = arith.constant dense<0.000000e+00> : vector<8x8xf32>
    %163 = tpu.matmul %161, %162, %cst_77 {dimension_numbers = #tpu.dot_dimension_numbers<[1], [1], [0], [0], [0, 0, 1, 0], [], []>} : vector<8x8xbf16>, vector<8x8xbf16>, vector<8x8xf32> -> vector<8x8xf32>
    %cst_78 = arith.constant dense<0xFF800000> : vector<8xf32>
    %164 = vector.multi_reduction <maximumf>, %163, %cst_78 [1] : vector<8x8xf32> to vector<8xf32>
    %165 = vector.shape_cast %164 : vector<8xf32> to vector<8x1xf32>
    %166 = vector.broadcast %165 : vector<8x1xf32> to vector<8x8xf32>
    %167 = arith.subf %163, %166 : vector<8x8xf32>
    %168 = math.exp %167 : vector<8x8xf32>
    %cst_79 = arith.constant dense<0.000000e+00> : vector<8xf32>
    %169 = vector.multi_reduction <add>, %168, %cst_79 [1] : vector<8x8xf32> to vector<8xf32>
    %170 = vector.shape_cast %169 : vector<8xf32> to vector<8x1xf32>
    %171 = tpu.reciprocal %170 {approx = true} : vector<8x1xf32> -> vector<8x1xf32>
    %172 = vector.broadcast %171 : vector<8x1xf32> to vector<8x8xf32>
    %173 = arith.mulf %168, %172 : vector<8x8xf32>
    %174 = arith.truncf %173 : vector<8x8xf32> to vector<8x8xbf16>
    %175 = vector.extract_strided_slice %124 {offsets = [0, 16], sizes = [8, 8], strides = [1, 1]} : vector<8x32xbf16> to vector<8x8xbf16>
    %cst_80 = arith.constant dense<0.000000e+00> : vector<8x8xf32>
    %176 = tpu.matmul %174, %175, %cst_80 {dimension_numbers = #tpu.dot_dimension_numbers<[1], [0], [0], [1], [0, 0, 1, 1], [], []>} : vector<8x8xbf16>, vector<8x8xbf16>, vector<8x8xf32> -> vector<8x8xf32>
    %177 = arith.truncf %176 : vector<8x8xf32> to vector<8x8xbf16>
    %c0_81 = arith.constant 0 : index
    %c16_82 = arith.constant 16 : index
    %178 = vector.load %arg26[%c0_81, %c16_82] : memref<8x32xbf16, #tpu.memory_space<vmem>>, vector<8x8xbf16>
    tpu.vector_store %arg26[%c0_81, %c16_82], %177 {strides = array<i32>} : memref<8x32xbf16, #tpu.memory_space<vmem>>, vector<8x8xbf16>,
    %179 = vector.extract_strided_slice %112 {offsets = [0, 24], sizes = [8, 8], strides = [1, 1]} : vector<8x32xbf16> to vector<8x8xbf16>
    %180 = vector.extract_strided_slice %118 {offsets = [0, 24], sizes = [8, 8], strides = [1, 1]} : vector<8x32xbf16> to vector<8x8xbf16>
    %cst_83 = arith.constant dense<0.000000e+00> : vector<8x8xf32>
    %181 = tpu.matmul %179, %180, %cst_83 {dimension_numbers = #tpu.dot_dimension_numbers<[1], [1], [0], [0], [0, 0, 1, 0], [], []>} : vector<8x8xbf16>, vector<8x8xbf16>, vector<8x8xf32> -> vector<8x8xf32>
    %cst_84 = arith.constant dense<0xFF800000> : vector<8xf32>
    %182 = vector.multi_reduction <maximumf>, %181, %cst_84 [1] : vector<8x8xf32> to vector<8xf32>
    %183 = vector.shape_cast %182 : vector<8xf32> to vector<8x1xf32>
    %184 = vector.broadcast %183 : vector<8x1xf32> to vector<8x8xf32>
    %185 = arith.subf %181, %184 : vector<8x8xf32>
    %186 = math.exp %185 : vector<8x8xf32>
    %cst_85 = arith.constant dense<0.000000e+00> : vector<8xf32>
    %187 = vector.multi_reduction <add>, %186, %cst_85 [1] : vector<8x8xf32> to vector<8xf32>
    %188 = vector.shape_cast %187 : vector<8xf32> to vector<8x1xf32>
    %189 = tpu.reciprocal %188 {approx = true} : vector<8x1xf32> -> vector<8x1xf32>
    %190 = vector.broadcast %189 : vector<8x1xf32> to vector<8x8xf32>
    %191 = arith.mulf %186, %190 : vector<8x8xf32>
    %192 = arith.truncf %191 : vector<8x8xf32> to vector<8x8xbf16>
    %193 = vector.extract_strided_slice %124 {offsets = [0, 24], sizes = [8, 8], strides = [1, 1]} : vector<8x32xbf16> to vector<8x8xbf16>
    %cst_86 = arith.constant dense<0.000000e+00> : vector<8x8xf32>
    %194 = tpu.matmul %192, %193, %cst_86 {dimension_numbers = #tpu.dot_dimension_numbers<[1], [0], [0], [1], [0, 0, 1, 1], [], []>} : vector<8x8xbf16>, vector<8x8xbf16>, vector<8x8xf32> -> vector<8x8xf32>
    %195 = arith.truncf %194 : vector<8x8xf32> to vector<8x8xbf16>
    %c0_87 = arith.constant 0 : index
    %c24_88 = arith.constant 24 : index
    %196 = vector.load %arg26[%c0_87, %c24_88] : memref<8x32xbf16, #tpu.memory_space<vmem>>, vector<8x8xbf16>
    tpu.vector_store %arg26[%c0_87, %c24_88], %195 {strides = array<i32>} : memref<8x32xbf16, #tpu.memory_space<vmem>>, vector<8x8xbf16>,
    %c0_89 = arith.constant 0 : index
    %c0_90 = arith.constant 0 : index
    %197 = vector.load %arg26[%c0_89, %c0_90] : memref<8x32xbf16, #tpu.memory_space<vmem>>, vector<8x32xbf16>
    %c0_91 = arith.constant 0 : index
    %c0_92 = arith.constant 0 : index
    %198 = vector.load %arg19[%c0_91, %c0_92] : memref<32x32xbf16, #tpu.memory_space<vmem>>, vector<32x32xbf16>
    %cst_93 = arith.constant dense<0.000000e+00> : vector<8x32xf32>
    %199 = tpu.matmul %197, %198, %cst_93 {dimension_numbers = #tpu.dot_dimension_numbers<[1], [0], [0], [1], [0, 0, 1, 1], [], []>} : vector<8x32xbf16>, vector<32x32xbf16>, vector<8x32xf32> -> vector<8x32xf32>
    %c0_94 = arith.constant 0 : index
    %c0_95 = arith.constant 0 : index
    %200 = vector.load %arg20[%c0_94, %c0_95] : memref<1x32xf32, #tpu.memory_space<vmem>>, vector<1x32xf32>
    %201 = vector.broadcast %200 : vector<1x32xf32> to vector<8x32xf32>
    %202 = arith.addf %199, %201 : vector<8x32xf32>
    %203 = arith.addf %102, %202 : vector<8x32xf32>
    %204 = arith.truncf %203 : vector<8x32xf32> to vector<8x32xbf16>
    %c0_96 = arith.constant 0 : index
    %c0_97 = arith.constant 0 : index
    %205 = vector.load %arg21[%c0_96, %c0_97] : memref<32x64xbf16, #tpu.memory_space<vmem>>, vector<32x64xbf16>
    %cst_98 = arith.constant dense<0.000000e+00> : vector<8x64xf32>
    %206 = tpu.matmul %204, %205, %cst_98 {dimension_numbers = #tpu.dot_dimension_numbers<[1], [0], [0], [1], [0, 0, 1, 1], [], []>} : vector<8x32xbf16>, vector<32x64xbf16>, vector<8x64xf32> -> vector<8x64xf32>
    %c0_99 = arith.constant 0 : index
    %c0_100 = arith.constant 0 : index
    %207 = vector.load %arg22[%c0_99, %c0_100] : memref<1x64xf32, #tpu.memory_space<vmem>>, vector<1x64xf32>
    %208 = vector.broadcast %207 : vector<1x64xf32> to vector<8x64xf32>
    %209 = arith.addf %206, %208 : vector<8x64xf32>
    %cst_101 = arith.constant 0.000000e+00 : f32
    %210 = vector.broadcast %cst_101 : f32 to vector<8x64xf32>
    %211 = arith.maximumf %209, %210 : vector<8x64xf32>
    %212 = arith.truncf %211 : vector<8x64xf32> to vector<8x64xbf16>
    %c0_102 = arith.constant 0 : index
    %c0_103 = arith.constant 0 : index
    %213 = vector.load %arg23[%c0_102, %c0_103] : memref<64x32xbf16, #tpu.memory_space<vmem>>, vector<64x32xbf16>
    %cst_104 = arith.constant dense<0.000000e+00> : vector<8x32xf32>
    %214 = tpu.matmul %212, %213, %cst_104 {dimension_numbers = #tpu.dot_dimension_numbers<[1], [0], [0], [1], [0, 0, 1, 1], [], []>} : vector<8x64xbf16>, vector<64x32xbf16>, vector<8x32xf32> -> vector<8x32xf32>
    %c0_105 = arith.constant 0 : index
    %c0_106 = arith.constant 0 : index
    %215 = vector.load %arg24[%c0_105, %c0_106] : memref<1x32xf32, #tpu.memory_space<vmem>>, vector<1x32xf32>
    %216 = vector.broadcast %215 : vector<1x32xf32> to vector<8x32xf32>
    %217 = arith.addf %214, %216 : vector<8x32xf32>
    %218 = arith.addf %203, %217 : vector<8x32xf32>
    %c0_107 = arith.constant 0 : index
    %c0_108 = arith.constant 0 : index
    %c0_109 = arith.constant 0 : index
    %219 = vector.load %arg25[%c0_107, %c0_108, %c0_109] : memref<1x8x32xf32, #tpu.memory_space<vmem>>, vector<1x8x32xf32>
    %220 = vector.shape_cast %219 : vector<1x8x32xf32> to vector<8x32xf32>
    %221 = vector.shape_cast %218 : vector<8x32xf32> to vector<1x8x32xf32>
    tpu.vector_store %arg25[%c0_107, %c0_108, %c0_109], %221 {strides = array<i32>} : memref<1x8x32xf32, #tpu.memory_space<vmem>>, vector<1x8x32xf32>,
    return
  }
  func.func @transform_0(%arg0: i32, %arg1: i32) -> (i32, i32, i32) {
    %c0_i32 = arith.constant 0 : i32
    %c0_i32_0 = arith.constant 0 : i32
    return %arg0, %arg1, %c0_i32 : i32, i32, i32
  }
  func.func @transform_1(%arg0: i32, %arg1: i32) -> (i32, i32, i32) {
    %c0_i32 = arith.constant 0 : i32
    %c0_i32_0 = arith.constant 0 : i32
    %c0_i32_1 = arith.constant 0 : i32
    return %arg0, %c0_i32, %c0_i32_0 : i32, i32, i32
  }
  func.func @transform_2(%arg0: i32, %arg1: i32) -> (i32, i32, i32) {
    %c0_i32 = arith.constant 0 : i32
    %c0_i32_0 = arith.constant 0 : i32
    %c0_i32_1 = arith.constant 0 : i32
    return %arg0, %c0_i32, %c0_i32_0 : i32, i32, i32
  }
  func.func @transform_3(%arg0: i32, %arg1: i32) -> (i32, i32) {
    %c0_i32 = arith.constant 0 : i32
    %c0_i32_0 = arith.constant 0 : i32
    %c0_i32_1 = arith.constant 0 : i32
    return %c0_i32, %c0_i32_0 : i32, i32
  }
  func.func @transform_4(%arg0: i32, %arg1: i32) -> (i32, i32) {
    %c0_i32 = arith.constant 0 : i32
    %c0_i32_0 = arith.constant 0 : i32
    %c0_i32_1 = arith.constant 0 : i32
    return %c0_i32, %c0_i32_0 : i32, i32
  }
  func.func @transform_5(%arg0: i32, %arg1: i32) -> (i32, i32) {
    %c0_i32 = arith.constant 0 : i32
    %c0_i32_0 = arith.constant 0 : i32
    %c0_i32_1 = arith.constant 0 : i32
    return %c0_i32, %c0_i32_0 : i32, i32
  }
  func.func @transform_6(%arg0: i32, %arg1: i32) -> (i32, i32) {
    %c0_i32 = arith.constant 0 : i32
    %c0_i32_0 = arith.constant 0 : i32
    %c0_i32_1 = arith.constant 0 : i32
    return %c0_i32, %c0_i32_0 : i32, i32
  }
  func.func @transform_7(%arg0: i32, %arg1: i32) -> (i32, i32) {
    %c0_i32 = arith.constant 0 : i32
    %c0_i32_0 = arith.constant 0 : i32
    %c0_i32_1 = arith.constant 0 : i32
    return %c0_i32, %c0_i32_0 : i32, i32
  }
  func.func @transform_8(%arg0: i32, %arg1: i32) -> (i32, i32) {
    %c0_i32 = arith.constant 0 : i32
    %c0_i32_0 = arith.constant 0 : i32
    %c0_i32_1 = arith.constant 0 : i32
    return %c0_i32, %c0_i32_0 : i32, i32
  }
  func.func @transform_9(%arg0: i32, %arg1: i32) -> (i32, i32) {
    %c0_i32 = arith.constant 0 : i32
    %c0_i32_0 = arith.constant 0 : i32
    %c0_i32_1 = arith.constant 0 : i32
    return %c0_i32, %c0_i32_0 : i32, i32
  }
  func.func @transform_10(%arg0: i32, %arg1: i32) -> (i32, i32) {
    %c0_i32 = arith.constant 0 : i32
    %c0_i32_0 = arith.constant 0 : i32
    %c0_i32_1 = arith.constant 0 : i32
    return %c0_i32, %c0_i32_0 : i32, i32
  }
  func.func @transform_11(%arg0: i32, %arg1: i32) -> (i32, i32) {
    %c0_i32 = arith.constant 0 : i32
    %c0_i32_0 = arith.constant 0 : i32
    %c0_i32_1 = arith.constant 0 : i32
    return %c0_i32, %c0_i32_0 : i32, i32
  }
  func.func @transform_12(%arg0: i32, %arg1: i32) -> (i32, i32) {
    %c0_i32 = arith.constant 0 : i32
    %c0_i32_0 = arith.constant 0 : i32
    %c0_i32_1 = arith.constant 0 : i32
    return %c0_i32, %c0_i32_0 : i32, i32
  }
  func.func @transform_13(%arg0: i32, %arg1: i32) -> (i32, i32) {
    %c0_i32 = arith.constant 0 : i32
    %c0_i32_0 = arith.constant 0 : i32
    %c0_i32_1 = arith.constant 0 : i32
    return %c0_i32, %c0_i32_0 : i32, i32
  }
  func.func @transform_14(%arg0: i32, %arg1: i32) -> (i32, i32) {
    %c0_i32 = arith.constant 0 : i32
    %c0_i32_0 = arith.constant 0 : i32
    %c0_i32_1 = arith.constant 0 : i32
    return %c0_i32, %c0_i32_0 : i32, i32
  }
  func.func @transform_15(%arg0: i32, %arg1: i32) -> (i32, i32) {
    %c0_i32 = arith.constant 0 : i32
    %c0_i32_0 = arith.constant 0 : i32
    %c0_i32_1 = arith.constant 0 : i32
    return %c0_i32, %c0_i32_0 : i32, i32
  }
  func.func @transform_16(%arg0: i32, %arg1: i32) -> (i32, i32) {
    %c0_i32 = arith.constant 0 : i32
    %c0_i32_0 = arith.constant 0 : i32
    %c0_i32_1 = arith.constant 0 : i32
    return %c0_i32, %c0_i32_0 : i32, i32
  }
  func.func @transform_17(%arg0: i32, %arg1: i32) -> (i32, i32) {
    %c0_i32 = arith.constant 0 : i32
    %c0_i32_0 = arith.constant 0 : i32
    %c0_i32_1 = arith.constant 0 : i32
    return %c0_i32, %c0_i32_0 : i32, i32
  }
  func.func @transform_18(%arg0: i32, %arg1: i32) -> (i32, i32) {
    %c0_i32 = arith.constant 0 : i32
    %c0_i32_0 = arith.constant 0 : i32
    %c0_i32_1 = arith.constant 0 : i32
    return %c0_i32, %c0_i32_0 : i32, i32
  }
  func.func @transform_19(%arg0: i32, %arg1: i32) -> (i32, i32) {
    %c0_i32 = arith.constant 0 : i32
    %c0_i32_0 = arith.constant 0 : i32
    %c0_i32_1 = arith.constant 0 : i32
    return %c0_i32, %c0_i32_0 : i32, i32
  }
  func.func @transform_20(%arg0: i32, %arg1: i32) -> (i32, i32) {
    %c0_i32 = arith.constant 0 : i32
    %c0_i32_0 = arith.constant 0 : i32
    %c0_i32_1 = arith.constant 0 : i32
    return %c0_i32, %c0_i32_0 : i32, i32
  }
  func.func @transform_21(%arg0: i32, %arg1: i32) -> (i32, i32) {
    %c0_i32 = arith.constant 0 : i32
    %c0_i32_0 = arith.constant 0 : i32
    %c0_i32_1 = arith.constant 0 : i32
    return %c0_i32, %c0_i32_0 : i32, i32
  }
  func.func @transform_22(%arg0: i32, %arg1: i32) -> (i32, i32) {
    %c0_i32 = arith.constant 0 : i32
    %c0_i32_0 = arith.constant 0 : i32
    %c0_i32_1 = arith.constant 0 : i32
    return %c0_i32, %c0_i32_0 : i32, i32
  }
  func.func @transform_23(%arg0: i32, %arg1: i32) -> (i32, i32, i32) {
    %c0_i32 = arith.constant 0 : i32
    %c0_i32_0 = arith.constant 0 : i32
    return %arg0, %arg1, %c0_i32 : i32, i32, i32
  }
}

module attributes {stable_mosaic.version = 11 : i64} {
  func.func @_decoder_layer_kernel(%arg0: i32, %arg1: i32, %arg2: memref<1x8x32xf32, #tpu.memory_space<vmem>>, %arg3: memref<1x8x32xf32, #tpu.memory_space<vmem>>, %arg4: memref<1x8x32xf32, #tpu.memory_space<vmem>>, %arg5: memref<32x32xbf16, #tpu.memory_space<vmem>>, %arg6: memref<1x32xf32, #tpu.memory_space<vmem>>, %arg7: memref<32x32xbf16, #tpu.memory_space<vmem>>, %arg8: memref<1x32xf32, #tpu.memory_space<vmem>>, %arg9: memref<32x32xbf16, #tpu.memory_space<vmem>>, %arg10: memref<1x32xf32, #tpu.memory_space<vmem>>, %arg11: memref<32x32xbf16, #tpu.memory_space<vmem>>, %arg12: memref<1x32xf32, #tpu.memory_space<vmem>>, %arg13: memref<32x32xbf16, #tpu.memory_space<vmem>>, %arg14: memref<1x32xf32, #tpu.memory_space<vmem>>, %arg15: memref<32x32xbf16, #tpu.memory_space<vmem>>, %arg16: memref<1x32xf32, #tpu.memory_space<vmem>>, %arg17: memref<32x32xbf16, #tpu.memory_space<vmem>>, %arg18: memref<1x32xf32, #tpu.memory_space<vmem>>, %arg19: memref<32x32xbf16, #tpu.memory_space<vmem>>, %arg20: memref<1x32xf32, #tpu.memory_space<vmem>>, %arg21: memref<32x64xbf16, #tpu.memory_space<vmem>>, %arg22: memref<1x64xf32, #tpu.memory_space<vmem>>, %arg23: memref<64x32xbf16, #tpu.memory_space<vmem>>, %arg24: memref<1x32xf32, #tpu.memory_space<vmem>>, %arg25: memref<1x8x32xf32, #tpu.memory_space<vmem>>, %arg26: memref<8x32xbf16, #tpu.memory_space<vmem>>) attributes {dimension_semantics = [#tpu.dimension_semantics<parallel>, #tpu.dimension_semantics<parallel>], iteration_bounds = array<i64: 2, 1>, scalar_prefetch = 0 : i64, scratch_operands = 1 : i64, tpu.core_type = #tpu.core_type<tc>, window_params = [{transform_indices = @transform_0, window_bounds = array<i64: 1, 8, 32>}, {transform_indices = @transform_1, window_bounds = array<i64: 1, 8, 32>}, {transform_indices = @transform_2, window_bounds = array<i64: 1, 8, 32>}, {pipeline_mode = #tpu.pipeline_mode<synchronous>, transform_indices = @transform_3, window_bounds = array<i64: 32, 32>}, {pipeline_mode = #tpu.pipeline_mode<synchronous>, transform_indices = @transform_4, window_bounds = array<i64: 1, 32>}, {pipeline_mode = #tpu.pipeline_mode<synchronous>, transform_indices = @transform_5, window_bounds = array<i64: 32, 32>}, {pipeline_mode = #tpu.pipeline_mode<synchronous>, transform_indices = @transform_6, window_bounds = array<i64: 1, 32>}, {pipeline_mode = #tpu.pipeline_mode<synchronous>, transform_indices = @transform_7, window_bounds = array<i64: 32, 32>}, {pipeline_mode = #tpu.pipeline_mode<synchronous>, transform_indices = @transform_8, window_bounds = array<i64: 1, 32>}, {pipeline_mode = #tpu.pipeline_mode<synchronous>, transform_indices = @transform_9, window_bounds = array<i64: 32, 32>}, {pipeline_mode = #tpu.pipeline_mode<synchronous>, transform_indices = @transform_10, window_bounds = array<i64: 1, 32>}, {pipeline_mode = #tpu.pipeline_mode<synchronous>, transform_indices = @transform_11, window_bounds = array<i64: 32, 32>}, {pipeline_mode = #tpu.pipeline_mode<synchronous>, transform_indices = @transform_12, window_bounds = array<i64: 1, 32>}, {pipeline_mode = #tpu.pipeline_mode<synchronous>, transform_indices = @transform_13, window_bounds = array<i64: 32, 32>}, {pipeline_mode = #tpu.pipeline_mode<synchronous>, transform_indices = @transform_14, window_bounds = array<i64: 1, 32>}, {pipeline_mode = #tpu.pipeline_mode<synchronous>, transform_indices = @transform_15, window_bounds = array<i64: 32, 32>}, {pipeline_mode = #tpu.pipeline_mode<synchronous>, transform_indices = @transform_16, window_bounds = array<i64: 1, 32>}, {pipeline_mode = #tpu.pipeline_mode<synchronous>, transform_indices = @transform_17, window_bounds = array<i64: 32, 32>}, {pipeline_mode = #tpu.pipeline_mode<synchronous>, transform_indices = @transform_18, window_bounds = array<i64: 1, 32>}, {pipeline_mode = #tpu.pipeline_mode<synchronous>, transform_indices = @transform_19, window_bounds = array<i64: 32, 64>}, {pipeline_mode = #tpu.pipeline_mode<synchronous>, transform_indices = @transform_20, window_bounds = array<i64: 1, 64>}, {pipeline_mode = #tpu.pipeline_mode<synchronous>, transform_indices = @transform_21, window_bounds = array<i64: 64, 32>}, {pipeline_mode = #tpu.pipeline_mode<synchronous>, transform_indices = @transform_22, window_bounds = array<i64: 1, 32>}, {transform_indices = @transform_23, window_bounds = array<i64: 1, 8, 32>}]} {
    %c0 = arith.constant 0 : index
    %c0_0 = arith.constant 0 : index
    %c0_1 = arith.constant 0 : index
    %0 = vector.load %arg2[%c0, %c0_0, %c0_1] : memref<1x8x32xf32, #tpu.memory_space<vmem>>, vector<1x8x32xf32>
    %1 = vector.shape_cast %0 : vector<1x8x32xf32> to vector<8x32xf32>
    %2 = arith.truncf %1 : vector<8x32xf32> to vector<8x32xbf16>
    %c0_2 = arith.constant 0 : index
    %c0_3 = arith.constant 0 : index
    %c0_4 = arith.constant 0 : index
    %3 = vector.load %arg3[%c0_2, %c0_3, %c0_4] : memref<1x8x32xf32, #tpu.memory_space<vmem>>, vector<1x8x32xf32>
    %4 = vector.shape_cast %3 : vector<1x8x32xf32> to vector<8x32xf32>
    %5 = arith.truncf %4 : vector<8x32xf32> to vector<8x32xbf16>
    %c0_5 = arith.constant 0 : index
    %c0_6 = arith.constant 0 : index
    %6 = vector.load %arg5[%c0_5, %c0_6] : memref<32x32xbf16, #tpu.memory_space<vmem>>, vector<32x32xbf16>
    %cst = arith.constant dense<0.000000e+00> : vector<8x32xf32>
    %7 = tpu.matmul %2, %6, %cst {dimension_numbers = #tpu.dot_dimension_numbers<[1], [0], [0], [1], [0, 0, 1, 1], [], []>} : vector<8x32xbf16>, vector<32x32xbf16>, vector<8x32xf32> -> vector<8x32xf32>
    %c0_7 = arith.constant 0 : index
    %c0_8 = arith.constant 0 : index
    %8 = vector.load %arg6[%c0_7, %c0_8] : memref<1x32xf32, #tpu.memory_space<vmem>>, vector<1x32xf32>
    %9 = vector.broadcast %8 : vector<1x32xf32> to vector<8x32xf32>
    %10 = arith.addf %7, %9 : vector<8x32xf32>
    %11 = arith.truncf %10 : vector<8x32xf32> to vector<8x32xbf16>
    %c0_9 = arith.constant 0 : index
    %c0_10 = arith.constant 0 : index
    %12 = vector.load %arg7[%c0_9, %c0_10] : memref<32x32xbf16, #tpu.memory_space<vmem>>, vector<32x32xbf16>
    %cst_11 = arith.constant dense<0.000000e+00> : vector<8x32xf32>
    %13 = tpu.matmul %5, %12, %cst_11 {dimension_numbers = #tpu.dot_dimension_numbers<[1], [0], [0], [1], [0, 0, 1, 1], [], []>} : vector<8x32xbf16>, vector<32x32xbf16>, vector<8x32xf32> -> vector<8x32xf32>
    %c0_12 = arith.constant 0 : index
    %c0_13 = arith.constant 0 : index
    %14 = vector.load %arg8[%c0_12, %c0_13] : memref<1x32xf32, #tpu.memory_space<vmem>>, vector<1x32xf32>
    %15 = vector.broadcast %14 : vector<1x32xf32> to vector<8x32xf32>
    %16 = arith.addf %13, %15 : vector<8x32xf32>
    %17 = arith.truncf %16 : vector<8x32xf32> to vector<8x32xbf16>
    %c0_14 = arith.constant 0 : index
    %c0_15 = arith.constant 0 : index
    %18 = vector.load %arg9[%c0_14, %c0_15] : memref<32x32xbf16, #tpu.memory_space<vmem>>, vector<32x32xbf16>
    %cst_16 = arith.constant dense<0.000000e+00> : vector<8x32xf32>
    %19 = tpu.matmul %5, %18, %cst_16 {dimension_numbers = #tpu.dot_dimension_numbers<[1], [0], [0], [1], [0, 0, 1, 1], [], []>} : vector<8x32xbf16>, vector<32x32xbf16>, vector<8x32xf32> -> vector<8x32xf32>
    %c0_17 = arith.constant 0 : index
    %c0_18 = arith.constant 0 : index
    %20 = vector.load %arg10[%c0_17, %c0_18] : memref<1x32xf32, #tpu.memory_space<vmem>>, vector<1x32xf32>
    %21 = vector.broadcast %20 : vector<1x32xf32> to vector<8x32xf32>
    %22 = arith.addf %19, %21 : vector<8x32xf32>
    %23 = arith.truncf %22 : vector<8x32xf32> to vector<8x32xbf16>
    %24 = vector.extract_strided_slice %11 {offsets = [0, 0], sizes = [8, 8], strides = [1, 1]} : vector<8x32xbf16> to vector<8x8xbf16>
    %25 = vector.extract_strided_slice %17 {offsets = [0, 0], sizes = [8, 8], strides = [1, 1]} : vector<8x32xbf16> to vector<8x8xbf16>
    %cst_19 = arith.constant dense<0.000000e+00> : vector<8x8xf32>
    %26 = tpu.matmul %24, %25, %cst_19 {dimension_numbers = #tpu.dot_dimension_numbers<[1], [1], [0], [0], [0, 0, 1, 0], [], []>} : vector<8x8xbf16>, vector<8x8xbf16>, vector<8x8xf32> -> vector<8x8xf32>
    %cst_20 = arith.constant dense<0xFF800000> : vector<8xf32>
    %27 = vector.multi_reduction <maximumf>, %26, %cst_20 [1] : vector<8x8xf32> to vector<8xf32>
    %28 = vector.shape_cast %27 : vector<8xf32> to vector<8x1xf32>
    %29 = vector.broadcast %28 : vector<8x1xf32> to vector<8x8xf32>
    %30 = arith.subf %26, %29 : vector<8x8xf32>
    %31 = math.exp %30 : vector<8x8xf32>
    %cst_21 = arith.constant dense<0.000000e+00> : vector<8xf32>
    %32 = vector.multi_reduction <add>, %31, %cst_21 [1] : vector<8x8xf32> to vector<8xf32>
    %33 = vector.shape_cast %32 : vector<8xf32> to vector<8x1xf32>
    %34 = tpu.reciprocal %33 {approx = true} : vector<8x1xf32> -> vector<8x1xf32>
    %35 = vector.broadcast %34 : vector<8x1xf32> to vector<8x8xf32>
    %36 = arith.mulf %31, %35 : vector<8x8xf32>
    %37 = arith.truncf %36 : vector<8x8xf32> to vector<8x8xbf16>
    %38 = vector.extract_strided_slice %23 {offsets = [0, 0], sizes = [8, 8], strides = [1, 1]} : vector<8x32xbf16> to vector<8x8xbf16>
    %cst_22 = arith.constant dense<0.000000e+00> : vector<8x8xf32>
    %39 = tpu.matmul %37, %38, %cst_22 {dimension_numbers = #tpu.dot_dimension_numbers<[1], [0], [0], [1], [0, 0, 1, 1], [], []>} : vector<8x8xbf16>, vector<8x8xbf16>, vector<8x8xf32> -> vector<8x8xf32>
    %40 = arith.truncf %39 : vector<8x8xf32> to vector<8x8xbf16>
    %c0_23 = arith.constant 0 : index
    %c0_24 = arith.constant 0 : index
    %41 = vector.load %arg26[%c0_23, %c0_24] : memref<8x32xbf16, #tpu.memory_space<vmem>>, vector<8x8xbf16>
    tpu.vector_store %arg26[%c0_23, %c0_24], %40 {strides = array<i32>} : memref<8x32xbf16, #tpu.memory_space<vmem>>, vector<8x8xbf16>,
    %42 = vector.extract_strided_slice %11 {offsets = [0, 8], sizes = [8, 8], strides = [1, 1]} : vector<8x32xbf16> to vector<8x8xbf16>
    %43 = vector.extract_strided_slice %17 {offsets = [0, 8], sizes = [8, 8], strides = [1, 1]} : vector<8x32xbf16> to vector<8x8xbf16>
    %cst_25 = arith.constant dense<0.000000e+00> : vector<8x8xf32>
    %44 = tpu.matmul %42, %43, %cst_25 {dimension_numbers = #tpu.dot_dimension_numbers<[1], [1], [0], [0], [0, 0, 1, 0], [], []>} : vector<8x8xbf16>, vector<8x8xbf16>, vector<8x8xf32> -> vector<8x8xf32>
    %cst_26 = arith.constant dense<0xFF800000> : vector<8xf32>
    %45 = vector.multi_reduction <maximumf>, %44, %cst_26 [1] : vector<8x8xf32> to vector<8xf32>
    %46 = vector.shape_cast %45 : vector<8xf32> to vector<8x1xf32>
    %47 = vector.broadcast %46 : vector<8x1xf32> to vector<8x8xf32>
    %48 = arith.subf %44, %47 : vector<8x8xf32>
    %49 = math.exp %48 : vector<8x8xf32>
    %cst_27 = arith.constant dense<0.000000e+00> : vector<8xf32>
    %50 = vector.multi_reduction <add>, %49, %cst_27 [1] : vector<8x8xf32> to vector<8xf32>
    %51 = vector.shape_cast %50 : vector<8xf32> to vector<8x1xf32>
    %52 = tpu.reciprocal %51 {approx = true} : vector<8x1xf32> -> vector<8x1xf32>
    %53 = vector.broadcast %52 : vector<8x1xf32> to vector<8x8xf32>
    %54 = arith.mulf %49, %53 : vector<8x8xf32>
    %55 = arith.truncf %54 : vector<8x8xf32> to vector<8x8xbf16>
    %56 = vector.extract_strided_slice %23 {offsets = [0, 8], sizes = [8, 8], strides = [1, 1]} : vector<8x32xbf16> to vector<8x8xbf16>
    %cst_28 = arith.constant dense<0.000000e+00> : vector<8x8xf32>
    %57 = tpu.matmul %55, %56, %cst_28 {dimension_numbers = #tpu.dot_dimension_numbers<[1], [0], [0], [1], [0, 0, 1, 1], [], []>} : vector<8x8xbf16>, vector<8x8xbf16>, vector<8x8xf32> -> vector<8x8xf32>
    %58 = arith.truncf %57 : vector<8x8xf32> to vector<8x8xbf16>
    %c0_29 = arith.constant 0 : index
    %c8 = arith.constant 8 : index
    %59 = vector.load %arg26[%c0_29, %c8] : memref<8x32xbf16, #tpu.memory_space<vmem>>, vector<8x8xbf16>
    tpu.vector_store %arg26[%c0_29, %c8], %58 {strides = array<i32>} : memref<8x32xbf16, #tpu.memory_space<vmem>>, vector<8x8xbf16>,
    %60 = vector.extract_strided_slice %11 {offsets = [0, 16], sizes = [8, 8], strides = [1, 1]} : vector<8x32xbf16> to vector<8x8xbf16>
    %61 = vector.extract_strided_slice %17 {offsets = [0, 16], sizes = [8, 8], strides = [1, 1]} : vector<8x32xbf16> to vector<8x8xbf16>
    %cst_30 = arith.constant dense<0.000000e+00> : vector<8x8xf32>
    %62 = tpu.matmul %60, %61, %cst_30 {dimension_numbers = #tpu.dot_dimension_numbers<[1], [1], [0], [0], [0, 0, 1, 0], [], []>} : vector<8x8xbf16>, vector<8x8xbf16>, vector<8x8xf32> -> vector<8x8xf32>
    %cst_31 = arith.constant dense<0xFF800000> : vector<8xf32>
    %63 = vector.multi_reduction <maximumf>, %62, %cst_31 [1] : vector<8x8xf32> to vector<8xf32>
    %64 = vector.shape_cast %63 : vector<8xf32> to vector<8x1xf32>
    %65 = vector.broadcast %64 : vector<8x1xf32> to vector<8x8xf32>
    %66 = arith.subf %62, %65 : vector<8x8xf32>
    %67 = math.exp %66 : vector<8x8xf32>
    %cst_32 = arith.constant dense<0.000000e+00> : vector<8xf32>
    %68 = vector.multi_reduction <add>, %67, %cst_32 [1] : vector<8x8xf32> to vector<8xf32>
    %69 = vector.shape_cast %68 : vector<8xf32> to vector<8x1xf32>
    %70 = tpu.reciprocal %69 {approx = true} : vector<8x1xf32> -> vector<8x1xf32>
    %71 = vector.broadcast %70 : vector<8x1xf32> to vector<8x8xf32>
    %72 = arith.mulf %67, %71 : vector<8x8xf32>
    %73 = arith.truncf %72 : vector<8x8xf32> to vector<8x8xbf16>
    %74 = vector.extract_strided_slice %23 {offsets = [0, 16], sizes = [8, 8], strides = [1, 1]} : vector<8x32xbf16> to vector<8x8xbf16>
    %cst_33 = arith.constant dense<0.000000e+00> : vector<8x8xf32>
    %75 = tpu.matmul %73, %74, %cst_33 {dimension_numbers = #tpu.dot_dimension_numbers<[1], [0], [0], [1], [0, 0, 1, 1], [], []>} : vector<8x8xbf16>, vector<8x8xbf16>, vector<8x8xf32> -> vector<8x8xf32>
    %76 = arith.truncf %75 : vector<8x8xf32> to vector<8x8xbf16>
    %c0_34 = arith.constant 0 : index
    %c16 = arith.constant 16 : index
    %77 = vector.load %arg26[%c0_34, %c16] : memref<8x32xbf16, #tpu.memory_space<vmem>>, vector<8x8xbf16>
    tpu.vector_store %arg26[%c0_34, %c16], %76 {strides = array<i32>} : memref<8x32xbf16, #tpu.memory_space<vmem>>, vector<8x8xbf16>,
    %78 = vector.extract_strided_slice %11 {offsets = [0, 24], sizes = [8, 8], strides = [1, 1]} : vector<8x32xbf16> to vector<8x8xbf16>
    %79 = vector.extract_strided_slice %17 {offsets = [0, 24], sizes = [8, 8], strides = [1, 1]} : vector<8x32xbf16> to vector<8x8xbf16>
    %cst_35 = arith.constant dense<0.000000e+00> : vector<8x8xf32>
    %80 = tpu.matmul %78, %79, %cst_35 {dimension_numbers = #tpu.dot_dimension_numbers<[1], [1], [0], [0], [0, 0, 1, 0], [], []>} : vector<8x8xbf16>, vector<8x8xbf16>, vector<8x8xf32> -> vector<8x8xf32>
    %cst_36 = arith.constant dense<0xFF800000> : vector<8xf32>
    %81 = vector.multi_reduction <maximumf>, %80, %cst_36 [1] : vector<8x8xf32> to vector<8xf32>
    %82 = vector.shape_cast %81 : vector<8xf32> to vector<8x1xf32>
    %83 = vector.broadcast %82 : vector<8x1xf32> to vector<8x8xf32>
    %84 = arith.subf %80, %83 : vector<8x8xf32>
    %85 = math.exp %84 : vector<8x8xf32>
    %cst_37 = arith.constant dense<0.000000e+00> : vector<8xf32>
    %86 = vector.multi_reduction <add>, %85, %cst_37 [1] : vector<8x8xf32> to vector<8xf32>
    %87 = vector.shape_cast %86 : vector<8xf32> to vector<8x1xf32>
    %88 = tpu.reciprocal %87 {approx = true} : vector<8x1xf32> -> vector<8x1xf32>
    %89 = vector.broadcast %88 : vector<8x1xf32> to vector<8x8xf32>
    %90 = arith.mulf %85, %89 : vector<8x8xf32>
    %91 = arith.truncf %90 : vector<8x8xf32> to vector<8x8xbf16>
    %92 = vector.extract_strided_slice %23 {offsets = [0, 24], sizes = [8, 8], strides = [1, 1]} : vector<8x32xbf16> to vector<8x8xbf16>
    %cst_38 = arith.constant dense<0.000000e+00> : vector<8x8xf32>
    %93 = tpu.matmul %91, %92, %cst_38 {dimension_numbers = #tpu.dot_dimension_numbers<[1], [0], [0], [1], [0, 0, 1, 1], [], []>} : vector<8x8xbf16>, vector<8x8xbf16>, vector<8x8xf32> -> vector<8x8xf32>
    %94 = arith.truncf %93 : vector<8x8xf32> to vector<8x8xbf16>
    %c0_39 = arith.constant 0 : index
    %c24 = arith.constant 24 : index
    %95 = vector.load %arg26[%c0_39, %c24] : memref<8x32xbf16, #tpu.memory_space<vmem>>, vector<8x8xbf16>
    tpu.vector_store %arg26[%c0_39, %c24], %94 {strides = array<i32>} : memref<8x32xbf16, #tpu.memory_space<vmem>>, vector<8x8xbf16>,
    %c0_40 = arith.constant 0 : index
    %c0_41 = arith.constant 0 : index
    %96 = vector.load %arg26[%c0_40, %c0_41] : memref<8x32xbf16, #tpu.memory_space<vmem>>, vector<8x32xbf16>
    %c0_42 = arith.constant 0 : index
    %c0_43 = arith.constant 0 : index
    %97 = vector.load %arg11[%c0_42, %c0_43] : memref<32x32xbf16, #tpu.memory_space<vmem>>, vector<32x32xbf16>
    %cst_44 = arith.constant dense<0.000000e+00> : vector<8x32xf32>
    %98 = tpu.matmul %96, %97, %cst_44 {dimension_numbers = #tpu.dot_dimension_numbers<[1], [0], [0], [1], [0, 0, 1, 1], [], []>} : vector<8x32xbf16>, vector<32x32xbf16>, vector<8x32xf32> -> vector<8x32xf32>
    %c0_45 = arith.constant 0 : index
    %c0_46 = arith.constant 0 : index
    %99 = vector.load %arg12[%c0_45, %c0_46] : memref<1x32xf32, #tpu.memory_space<vmem>>, vector<1x32xf32>
    %100 = vector.broadcast %99 : vector<1x32xf32> to vector<8x32xf32>
    %101 = arith.addf %98, %100 : vector<8x32xf32>
    %102 = arith.addf %1, %101 : vector<8x32xf32>
    %103 = arith.truncf %102 : vector<8x32xf32> to vector<8x32xbf16>
    %c0_47 = arith.constant 0 : index
    %c0_48 = arith.constant 0 : index
    %c0_49 = arith.constant 0 : index
    %104 = vector.load %arg4[%c0_47, %c0_48, %c0_49] : memref<1x8x32xf32, #tpu.memory_space<vmem>>, vector<1x8x32xf32>
    %105 = vector.shape_cast %104 : vector<1x8x32xf32> to vector<8x32xf32>
    %106 = arith.truncf %105 : vector<8x32xf32> to vector<8x32xbf16>
    %c0_50 = arith.constant 0 : index
    %c0_51 = arith.constant 0 : index
    %107 = vector.load %arg13[%c0_50, %c0_51] : memref<32x32xbf16, #tpu.memory_space<vmem>>, vector<32x32xbf16>
    %cst_52 = arith.constant dense<0.000000e+00> : vector<8x32xf32>
    %108 = tpu.matmul %103, %107, %cst_52 {dimension_numbers = #tpu.dot_dimension_numbers<[1], [0], [0], [1], [0, 0, 1, 1], [], []>} : vector<8x32xbf16>, vector<32x32xbf16>, vector<8x32xf32> -> vector<8x32xf32>
    %c0_53 = arith.constant 0 : index
    %c0_54 = arith.constant 0 : index
    %109 = vector.load %arg14[%c0_53, %c0_54] : memref<1x32xf32, #tpu.memory_space<vmem>>, vector<1x32xf32>
    %110 = vector.broadcast %109 : vector<1x32xf32> to vector<8x32xf32>
    %111 = arith.addf %108, %110 : vector<8x32xf32>
    %112 = arith.truncf %111 : vector<8x32xf32> to vector<8x32xbf16>
    %c0_55 = arith.constant 0 : index
    %c0_56 = arith.constant 0 : index
    %113 = vector.load %arg15[%c0_55, %c0_56] : memref<32x32xbf16, #tpu.memory_space<vmem>>, vector<32x32xbf16>
    %cst_57 = arith.constant dense<0.000000e+00> : vector<8x32xf32>
    %114 = tpu.matmul %106, %113, %cst_57 {dimension_numbers = #tpu.dot_dimension_numbers<[1], [0], [0], [1], [0, 0, 1, 1], [], []>} : vector<8x32xbf16>, vector<32x32xbf16>, vector<8x32xf32> -> vector<8x32xf32>
    %c0_58 = arith.constant 0 : index
    %c0_59 = arith.constant 0 : index
    %115 = vector.load %arg16[%c0_58, %c0_59] : memref<1x32xf32, #tpu.memory_space<vmem>>, vector<1x32xf32>
    %116 = vector.broadcast %115 : vector<1x32xf32> to vector<8x32xf32>
    %117 = arith.addf %114, %116 : vector<8x32xf32>
    %118 = arith.truncf %117 : vector<8x32xf32> to vector<8x32xbf16>
    %c0_60 = arith.constant 0 : index
    %c0_61 = arith.constant 0 : index
    %119 = vector.load %arg17[%c0_60, %c0_61] : memref<32x32xbf16, #tpu.memory_space<vmem>>, vector<32x32xbf16>
    %cst_62 = arith.constant dense<0.000000e+00> : vector<8x32xf32>
    %120 = tpu.matmul %106, %119, %cst_62 {dimension_numbers = #tpu.dot_dimension_numbers<[1], [0], [0], [1], [0, 0, 1, 1], [], []>} : vector<8x32xbf16>, vector<32x32xbf16>, vector<8x32xf32> -> vector<8x32xf32>
    %c0_63 = arith.constant 0 : index
    %c0_64 = arith.constant 0 : index
    %121 = vector.load %arg18[%c0_63, %c0_64] : memref<1x32xf32, #tpu.memory_space<vmem>>, vector<1x32xf32>
    %122 = vector.broadcast %121 : vector<1x32xf32> to vector<8x32xf32>
    %123 = arith.addf %120, %122 : vector<8x32xf32>
    %124 = arith.truncf %123 : vector<8x32xf32> to vector<8x32xbf16>
    %125 = vector.extract_strided_slice %112 {offsets = [0, 0], sizes = [8, 8], strides = [1, 1]} : vector<8x32xbf16> to vector<8x8xbf16>
    %126 = vector.extract_strided_slice %118 {offsets = [0, 0], sizes = [8, 8], strides = [1, 1]} : vector<8x32xbf16> to vector<8x8xbf16>
    %cst_65 = arith.constant dense<0.000000e+00> : vector<8x8xf32>
    %127 = tpu.matmul %125, %126, %cst_65 {dimension_numbers = #tpu.dot_dimension_numbers<[1], [1], [0], [0], [0, 0, 1, 0], [], []>} : vector<8x8xbf16>, vector<8x8xbf16>, vector<8x8xf32> -> vector<8x8xf32>
    %cst_66 = arith.constant dense<0xFF800000> : vector<8xf32>
    %128 = vector.multi_reduction <maximumf>, %127, %cst_66 [1] : vector<8x8xf32> to vector<8xf32>
    %129 = vector.shape_cast %128 : vector<8xf32> to vector<8x1xf32>
    %130 = vector.broadcast %129 : vector<8x1xf32> to vector<8x8xf32>
    %131 = arith.subf %127, %130 : vector<8x8xf32>
    %132 = math.exp %131 : vector<8x8xf32>
    %cst_67 = arith.constant dense<0.000000e+00> : vector<8xf32>
    %133 = vector.multi_reduction <add>, %132, %cst_67 [1] : vector<8x8xf32> to vector<8xf32>
    %134 = vector.shape_cast %133 : vector<8xf32> to vector<8x1xf32>
    %135 = tpu.reciprocal %134 {approx = true} : vector<8x1xf32> -> vector<8x1xf32>
    %136 = vector.broadcast %135 : vector<8x1xf32> to vector<8x8xf32>
    %137 = arith.mulf %132, %136 : vector<8x8xf32>
    %138 = arith.truncf %137 : vector<8x8xf32> to vector<8x8xbf16>
    %139 = vector.extract_strided_slice %124 {offsets = [0, 0], sizes = [8, 8], strides = [1, 1]} : vector<8x32xbf16> to vector<8x8xbf16>
    %cst_68 = arith.constant dense<0.000000e+00> : vector<8x8xf32>
    %140 = tpu.matmul %138, %139, %cst_68 {dimension_numbers = #tpu.dot_dimension_numbers<[1], [0], [0], [1], [0, 0, 1, 1], [], []>} : vector<8x8xbf16>, vector<8x8xbf16>, vector<8x8xf32> -> vector<8x8xf32>
    %141 = arith.truncf %140 : vector<8x8xf32> to vector<8x8xbf16>
    %c0_69 = arith.constant 0 : index
    %c0_70 = arith.constant 0 : index
    %142 = vector.load %arg26[%c0_69, %c0_70] : memref<8x32xbf16, #tpu.memory_space<vmem>>, vector<8x8xbf16>
    tpu.vector_store %arg26[%c0_69, %c0_70], %141 {strides = array<i32>} : memref<8x32xbf16, #tpu.memory_space<vmem>>, vector<8x8xbf16>,
    %143 = vector.extract_strided_slice %112 {offsets = [0, 8], sizes = [8, 8], strides = [1, 1]} : vector<8x32xbf16> to vector<8x8xbf16>
    %144 = vector.extract_strided_slice %118 {offsets = [0, 8], sizes = [8, 8], strides = [1, 1]} : vector<8x32xbf16> to vector<8x8xbf16>
    %cst_71 = arith.constant dense<0.000000e+00> : vector<8x8xf32>
    %145 = tpu.matmul %143, %144, %cst_71 {dimension_numbers = #tpu.dot_dimension_numbers<[1], [1], [0], [0], [0, 0, 1, 0], [], []>} : vector<8x8xbf16>, vector<8x8xbf16>, vector<8x8xf32> -> vector<8x8xf32>
    %cst_72 = arith.constant dense<0xFF800000> : vector<8xf32>
    %146 = vector.multi_reduction <maximumf>, %145, %cst_72 [1] : vector<8x8xf32> to vector<8xf32>
    %147 = vector.shape_cast %146 : vector<8xf32> to vector<8x1xf32>
    %148 = vector.broadcast %147 : vector<8x1xf32> to vector<8x8xf32>
    %149 = arith.subf %145, %148 : vector<8x8xf32>
    %150 = math.exp %149 : vector<8x8xf32>
    %cst_73 = arith.constant dense<0.000000e+00> : vector<8xf32>
    %151 = vector.multi_reduction <add>, %150, %cst_73 [1] : vector<8x8xf32> to vector<8xf32>
    %152 = vector.shape_cast %151 : vector<8xf32> to vector<8x1xf32>
    %153 = tpu.reciprocal %152 {approx = true} : vector<8x1xf32> -> vector<8x1xf32>
    %154 = vector.broadcast %153 : vector<8x1xf32> to vector<8x8xf32>
    %155 = arith.mulf %150, %154 : vector<8x8xf32>
    %156 = arith.truncf %155 : vector<8x8xf32> to vector<8x8xbf16>
    %157 = vector.extract_strided_slice %124 {offsets = [0, 8], sizes = [8, 8], strides = [1, 1]} : vector<8x32xbf16> to vector<8x8xbf16>
    %cst_74 = arith.constant dense<0.000000e+00> : vector<8x8xf32>
    %158 = tpu.matmul %156, %157, %cst_74 {dimension_numbers = #tpu.dot_dimension_numbers<[1], [0], [0], [1], [0, 0, 1, 1], [], []>} : vector<8x8xbf16>, vector<8x8xbf16>, vector<8x8xf32> -> vector<8x8xf32>
    %159 = arith.truncf %158 : vector<8x8xf32> to vector<8x8xbf16>
    %c0_75 = arith.constant 0 : index
    %c8_76 = arith.constant 8 : index
    %160 = vector.load %arg26[%c0_75, %c8_76] : memref<8x32xbf16, #tpu.memory_space<vmem>>, vector<8x8xbf16>
    tpu.vector_store %arg26[%c0_75, %c8_76], %159 {strides = array<i32>} : memref<8x32xbf16, #tpu.memory_space<vmem>>, vector<8x8xbf16>,
    %161 = vector.extract_strided_slice %112 {offsets = [0, 16], sizes = [8, 8], strides = [1, 1]} : vector<8x32xbf16> to vector<8x8xbf16>
    %162 = vector.extract_strided_slice %118 {offsets = [0, 16], sizes = [8, 8], strides = [1, 1]} : vector<8x32xbf16> to vector<8x8xbf16>
    %cst_77 = arith.constant dense<0.000000e+00> : vector<8x8xf32>
    %163 = tpu.matmul %161, %162, %cst_77 {dimension_numbers = #tpu.dot_dimension_numbers<[1], [1], [0], [0], [0, 0, 1, 0], [], []>} : vector<8x8xbf16>, vector<8x8xbf16>, vector<8x8xf32> -> vector<8x8xf32>
    %cst_78 = arith.constant dense<0xFF800000> : vector<8xf32>
    %164 = vector.multi_reduction <maximumf>, %163, %cst_78 [1] : vector<8x8xf32> to vector<8xf32>
    %165 = vector.shape_cast %164 : vector<8xf32> to vector<8x1xf32>
    %166 = vector.broadcast %165 : vector<8x1xf32> to vector<8x8xf32>
    %167 = arith.subf %163, %166 : vector<8x8xf32>
    %168 = math.exp %167 : vector<8x8xf32>
    %cst_79 = arith.constant dense<0.000000e+00> : vector<8xf32>
    %169 = vector.multi_reduction <add>, %168, %cst_79 [1] : vector<8x8xf32> to vector<8xf32>
    %170 = vector.shape_cast %169 : vector<8xf32> to vector<8x1xf32>
    %171 = tpu.reciprocal %170 {approx = true} : vector<8x1xf32> -> vector<8x1xf32>
    %172 = vector.broadcast %171 : vector<8x1xf32> to vector<8x8xf32>
    %173 = arith.mulf %168, %172 : vector<8x8xf32>
    %174 = arith.truncf %173 : vector<8x8xf32> to vector<8x8xbf16>
    %175 = vector.extract_strided_slice %124 {offsets = [0, 16], sizes = [8, 8], strides = [1, 1]} : vector<8x32xbf16> to vector<8x8xbf16>
    %cst_80 = arith.constant dense<0.000000e+00> : vector<8x8xf32>
    %176 = tpu.matmul %174, %175, %cst_80 {dimension_numbers = #tpu.dot_dimension_numbers<[1], [0], [0], [1], [0, 0, 1, 1], [], []>} : vector<8x8xbf16>, vector<8x8xbf16>, vector<8x8xf32> -> vector<8x8xf32>
    %177 = arith.truncf %176 : vector<8x8xf32> to vector<8x8xbf16>
    %c0_81 = arith.constant 0 : index
    %c16_82 = arith.constant 16 : index
    %178 = vector.load %arg26[%c0_81, %c16_82] : memref<8x32xbf16, #tpu.memory_space<vmem>>, vector<8x8xbf16>
    tpu.vector_store %arg26[%c0_81, %c16_82], %177 {strides = array<i32>} : memref<8x32xbf16, #tpu.memory_space<vmem>>, vector<8x8xbf16>,
    %179 = vector.extract_strided_slice %112 {offsets = [0, 24], sizes = [8, 8], strides = [1, 1]} : vector<8x32xbf16> to vector<8x8xbf16>
    %180 = vector.extract_strided_slice %118 {offsets = [0, 24], sizes = [8, 8], strides = [1, 1]} : vector<8x32xbf16> to vector<8x8xbf16>
    %cst_83 = arith.constant dense<0.000000e+00> : vector<8x8xf32>
    %181 = tpu.matmul %179, %180, %cst_83 {dimension_numbers = #tpu.dot_dimension_numbers<[1], [1], [0], [0], [0, 0, 1, 0], [], []>} : vector<8x8xbf16>, vector<8x8xbf16>, vector<8x8xf32> -> vector<8x8xf32>
    %cst_84 = arith.constant dense<0xFF800000> : vector<8xf32>
    %182 = vector.multi_reduction <maximumf>, %181, %cst_84 [1] : vector<8x8xf32> to vector<8xf32>
    %183 = vector.shape_cast %182 : vector<8xf32> to vector<8x1xf32>
    %184 = vector.broadcast %183 : vector<8x1xf32> to vector<8x8xf32>
    %185 = arith.subf %181, %184 : vector<8x8xf32>
    %186 = math.exp %185 : vector<8x8xf32>
    %cst_85 = arith.constant dense<0.000000e+00> : vector<8xf32>
    %187 = vector.multi_reduction <add>, %186, %cst_85 [1] : vector<8x8xf32> to vector<8xf32>
    %188 = vector.shape_cast %187 : vector<8xf32> to vector<8x1xf32>
    %189 = tpu.reciprocal %188 {approx = true} : vector<8x1xf32> -> vector<8x1xf32>
    %190 = vector.broadcast %189 : vector<8x1xf32> to vector<8x8xf32>
    %191 = arith.mulf %186, %190 : vector<8x8xf32>
    %192 = arith.truncf %191 : vector<8x8xf32> to vector<8x8xbf16>
    %193 = vector.extract_strided_slice %124 {offsets = [0, 24], sizes = [8, 8], strides = [1, 1]} : vector<8x32xbf16> to vector<8x8xbf16>
    %cst_86 = arith.constant dense<0.000000e+00> : vector<8x8xf32>
    %194 = tpu.matmul %192, %193, %cst_86 {dimension_numbers = #tpu.dot_dimension_numbers<[1], [0], [0], [1], [0, 0, 1, 1], [], []>} : vector<8x8xbf16>, vector<8x8xbf16>, vector<8x8xf32> -> vector<8x8xf32>
    %195 = arith.truncf %194 : vector<8x8xf32> to vector<8x8xbf16>
    %c0_87 = arith.constant 0 : index
    %c24_88 = arith.constant 24 : index
    %196 = vector.load %arg26[%c0_87, %c24_88] : memref<8x32xbf16, #tpu.memory_space<vmem>>, vector<8x8xbf16>
    tpu.vector_store %arg26[%c0_87, %c24_88], %195 {strides = array<i32>} : memref<8x32xbf16, #tpu.memory_space<vmem>>, vector<8x8xbf16>,
    %c0_89 = arith.constant 0 : index
    %c0_90 = arith.constant 0 : index
    %197 = vector.load %arg26[%c0_89, %c0_90] : memref<8x32xbf16, #tpu.memory_space<vmem>>, vector<8x32xbf16>
    %c0_91 = arith.constant 0 : index
    %c0_92 = arith.constant 0 : index
    %198 = vector.load %arg19[%c0_91, %c0_92] : memref<32x32xbf16, #tpu.memory_space<vmem>>, vector<32x32xbf16>
    %cst_93 = arith.constant dense<0.000000e+00> : vector<8x32xf32>
    %199 = tpu.matmul %197, %198, %cst_93 {dimension_numbers = #tpu.dot_dimension_numbers<[1], [0], [0], [1], [0, 0, 1, 1], [], []>} : vector<8x32xbf16>, vector<32x32xbf16>, vector<8x32xf32> -> vector<8x32xf32>
    %c0_94 = arith.constant 0 : index
    %c0_95 = arith.constant 0 : index
    %200 = vector.load %arg20[%c0_94, %c0_95] : memref<1x32xf32, #tpu.memory_space<vmem>>, vector<1x32xf32>
    %201 = vector.broadcast %200 : vector<1x32xf32> to vector<8x32xf32>
    %202 = arith.addf %199, %201 : vector<8x32xf32>
    %203 = arith.addf %102, %202 : vector<8x32xf32>
    %204 = arith.truncf %203 : vector<8x32xf32> to vector<8x32xbf16>
    %c0_96 = arith.constant 0 : index
    %c0_97 = arith.constant 0 : index
    %205 = vector.load %arg21[%c0_96, %c0_97] : memref<32x64xbf16, #tpu.memory_space<vmem>>, vector<32x64xbf16>
    %cst_98 = arith.constant dense<0.000000e+00> : vector<8x64xf32>
    %206 = tpu.matmul %204, %205, %cst_98 {dimension_numbers = #tpu.dot_dimension_numbers<[1], [0], [0], [1], [0, 0, 1, 1], [], []>} : vector<8x32xbf16>, vector<32x64xbf16>, vector<8x64xf32> -> vector<8x64xf32>
    %c0_99 = arith.constant 0 : index
    %c0_100 = arith.constant 0 : index
    %207 = vector.load %arg22[%c0_99, %c0_100] : memref<1x64xf32, #tpu.memory_space<vmem>>, vector<1x64xf32>
    %208 = vector.broadcast %207 : vector<1x64xf32> to vector<8x64xf32>
    %209 = arith.addf %206, %208 : vector<8x64xf32>
    %cst_101 = arith.constant 0.000000e+00 : f32
    %210 = vector.broadcast %cst_101 : f32 to vector<8x64xf32>
    %211 = arith.maximumf %209, %210 : vector<8x64xf32>
    %212 = arith.truncf %211 : vector<8x64xf32> to vector<8x64xbf16>
    %c0_102 = arith.constant 0 : index
    %c0_103 = arith.constant 0 : index
    %213 = vector.load %arg23[%c0_102, %c0_103] : memref<64x32xbf16, #tpu.memory_space<vmem>>, vector<64x32xbf16>
    %cst_104 = arith.constant dense<0.000000e+00> : vector<8x32xf32>
    %214 = tpu.matmul %212, %213, %cst_104 {dimension_numbers = #tpu.dot_dimension_numbers<[1], [0], [0], [1], [0, 0, 1, 1], [], []>} : vector<8x64xbf16>, vector<64x32xbf16>, vector<8x32xf32> -> vector<8x32xf32>
    %c0_105 = arith.constant 0 : index
    %c0_106 = arith.constant 0 : index
    %215 = vector.load %arg24[%c0_105, %c0_106] : memref<1x32xf32, #tpu.memory_space<vmem>>, vector<1x32xf32>
    %216 = vector.broadcast %215 : vector<1x32xf32> to vector<8x32xf32>
    %217 = arith.addf %214, %216 : vector<8x32xf32>
    %218 = arith.addf %203, %217 : vector<8x32xf32>
    %c0_107 = arith.constant 0 : index
    %c0_108 = arith.constant 0 : index
    %c0_109 = arith.constant 0 : index
    %219 = vector.load %arg25[%c0_107, %c0_108, %c0_109] : memref<1x8x32xf32, #tpu.memory_space<vmem>>, vector<1x8x32xf32>
    %220 = vector.shape_cast %219 : vector<1x8x32xf32> to vector<8x32xf32>
    %221 = vector.shape_cast %218 : vector<8x32xf32> to vector<1x8x32xf32>
    tpu.vector_store %arg25[%c0_107, %c0_108, %c0_109], %221 {strides = array<i32>} : memref<1x8x32xf32, #tpu.memory_space<vmem>>, vector<1x8x32xf32>,
    return
  }
  func.func @transform_0(%arg0: i32, %arg1: i32) -> (i32, i32, i32) {
    %c0_i32 = arith.constant 0 : i32
    %c0_i32_0 = arith.constant 0 : i32
    return %arg0, %arg1, %c0_i32 : i32, i32, i32
  }
  func.func @transform_1(%arg0: i32, %arg1: i32) -> (i32, i32, i32) {
    %c0_i32 = arith.constant 0 : i32
    %c0_i32_0 = arith.constant 0 : i32
    %c0_i32_1 = arith.constant 0 : i32
    return %arg0, %c0_i32, %c0_i32_0 : i32, i32, i32
  }
  func.func @transform_2(%arg0: i32, %arg1: i32) -> (i32, i32, i32) {
    %c0_i32 = arith.constant 0 : i32
    %c0_i32_0 = arith.constant 0 : i32
    %c0_i32_1 = arith.constant 0 : i32
    return %arg0, %c0_i32, %c0_i32_0 : i32, i32, i32
  }
  func.func @transform_3(%arg0: i32, %arg1: i32) -> (i32, i32) {
    %c0_i32 = arith.constant 0 : i32
    %c0_i32_0 = arith.constant 0 : i32
    %c0_i32_1 = arith.constant 0 : i32
    return %c0_i32, %c0_i32_0 : i32, i32
  }
  func.func @transform_4(%arg0: i32, %arg1: i32) -> (i32, i32) {
    %c0_i32 = arith.constant 0 : i32
    %c0_i32_0 = arith.constant 0 : i32
    %c0_i32_1 = arith.constant 0 : i32
    return %c0_i32, %c0_i32_0 : i32, i32
  }
  func.func @transform_5(%arg0: i32, %arg1: i32) -> (i32, i32) {
    %c0_i32 = arith.constant 0 : i32
    %c0_i32_0 = arith.constant 0 : i32
    %c0_i32_1 = arith.constant 0 : i32
    return %c0_i32, %c0_i32_0 : i32, i32
  }
  func.func @transform_6(%arg0: i32, %arg1: i32) -> (i32, i32) {
    %c0_i32 = arith.constant 0 : i32
    %c0_i32_0 = arith.constant 0 : i32
    %c0_i32_1 = arith.constant 0 : i32
    return %c0_i32, %c0_i32_0 : i32, i32
  }
  func.func @transform_7(%arg0: i32, %arg1: i32) -> (i32, i32) {
    %c0_i32 = arith.constant 0 : i32
    %c0_i32_0 = arith.constant 0 : i32
    %c0_i32_1 = arith.constant 0 : i32
    return %c0_i32, %c0_i32_0 : i32, i32
  }
  func.func @transform_8(%arg0: i32, %arg1: i32) -> (i32, i32) {
    %c0_i32 = arith.constant 0 : i32
    %c0_i32_0 = arith.constant 0 : i32
    %c0_i32_1 = arith.constant 0 : i32
    return %c0_i32, %c0_i32_0 : i32, i32
  }
  func.func @transform_9(%arg0: i32, %arg1: i32) -> (i32, i32) {
    %c0_i32 = arith.constant 0 : i32
    %c0_i32_0 = arith.constant 0 : i32
    %c0_i32_1 = arith.constant 0 : i32
    return %c0_i32, %c0_i32_0 : i32, i32
  }
  func.func @transform_10(%arg0: i32, %arg1: i32) -> (i32, i32) {
    %c0_i32 = arith.constant 0 : i32
    %c0_i32_0 = arith.constant 0 : i32
    %c0_i32_1 = arith.constant 0 : i32
    return %c0_i32, %c0_i32_0 : i32, i32
  }
  func.func @transform_11(%arg0: i32, %arg1: i32) -> (i32, i32) {
    %c0_i32 = arith.constant 0 : i32
    %c0_i32_0 = arith.constant 0 : i32
    %c0_i32_1 = arith.constant 0 : i32
    return %c0_i32, %c0_i32_0 : i32, i32
  }
  func.func @transform_12(%arg0: i32, %arg1: i32) -> (i32, i32) {
    %c0_i32 = arith.constant 0 : i32
    %c0_i32_0 = arith.constant 0 : i32
    %c0_i32_1 = arith.constant 0 : i32
    return %c0_i32, %c0_i32_0 : i32, i32
  }
  func.func @transform_13(%arg0: i32, %arg1: i32) -> (i32, i32) {
    %c0_i32 = arith.constant 0 : i32
    %c0_i32_0 = arith.constant 0 : i32
    %c0_i32_1 = arith.constant 0 : i32
    return %c0_i32, %c0_i32_0 : i32, i32
  }
  func.func @transform_14(%arg0: i32, %arg1: i32) -> (i32, i32) {
    %c0_i32 = arith.constant 0 : i32
    %c0_i32_0 = arith.constant 0 : i32
    %c0_i32_1 = arith.constant 0 : i32
    return %c0_i32, %c0_i32_0 : i32, i32
  }
  func.func @transform_15(%arg0: i32, %arg1: i32) -> (i32, i32) {
    %c0_i32 = arith.constant 0 : i32
    %c0_i32_0 = arith.constant 0 : i32
    %c0_i32_1 = arith.constant 0 : i32
    return %c0_i32, %c0_i32_0 : i32, i32
  }
  func.func @transform_16(%arg0: i32, %arg1: i32) -> (i32, i32) {
    %c0_i32 = arith.constant 0 : i32
    %c0_i32_0 = arith.constant 0 : i32
    %c0_i32_1 = arith.constant 0 : i32
    return %c0_i32, %c0_i32_0 : i32, i32
  }
  func.func @transform_17(%arg0: i32, %arg1: i32) -> (i32, i32) {
    %c0_i32 = arith.constant 0 : i32
    %c0_i32_0 = arith.constant 0 : i32
    %c0_i32_1 = arith.constant 0 : i32
    return %c0_i32, %c0_i32_0 : i32, i32
  }
  func.func @transform_18(%arg0: i32, %arg1: i32) -> (i32, i32) {
    %c0_i32 = arith.constant 0 : i32
    %c0_i32_0 = arith.constant 0 : i32
    %c0_i32_1 = arith.constant 0 : i32
    return %c0_i32, %c0_i32_0 : i32, i32
  }
  func.func @transform_19(%arg0: i32, %arg1: i32) -> (i32, i32) {
    %c0_i32 = arith.constant 0 : i32
    %c0_i32_0 = arith.constant 0 : i32
    %c0_i32_1 = arith.constant 0 : i32
    return %c0_i32, %c0_i32_0 : i32, i32
  }
  func.func @transform_20(%arg0: i32, %arg1: i32) -> (i32, i32) {
    %c0_i32 = arith.constant 0 : i32
    %c0_i32_0 = arith.constant 0 : i32
    %c0_i32_1 = arith.constant 0 : i32
    return %c0_i32, %c0_i32_0 : i32, i32
  }
  func.func @transform_21(%arg0: i32, %arg1: i32) -> (i32, i32) {
    %c0_i32 = arith.constant 0 : i32
    %c0_i32_0 = arith.constant 0 : i32
    %c0_i32_1 = arith.constant 0 : i32
    return %c0_i32, %c0_i32_0 : i32, i32
  }
  func.func @transform_22(%arg0: i32, %arg1: i32) -> (i32, i32) {
    %c0_i32 = arith.constant 0 : i32
    %c0_i32_0 = arith.constant 0 : i32
    %c0_i32_1 = arith.constant 0 : i32
    return %c0_i32, %c0_i32_0 : i32, i32
  }
  func.func @transform_23(%arg0: i32, %arg1: i32) -> (i32, i32, i32) {
    %c0_i32 = arith.constant 0 : i32
    %c0_i32_0 = arith.constant 0 : i32
    return %arg0, %arg1, %c0_i32 : i32, i32, i32
  }
}

</mosaic_0001>

<bundles_post_ra>
// kernel: tpu_custom_call.1
= control target key start
LH: loop header
LB: loop body
LE: loop exit
PB: predicated region body
PF: predicated region fallthrough
CT: control target
= control target key end

     0   :  { %s4697_s0 = inlined_call_operand.vmem [shape: f32[2,8,32], index: 0, kind: input, shape index: {}]   ;;  %s4698_s1 = inlined_call_operand.vmem [shape: f32[2,8,32], index: 1, kind: input, shape index: {}]   ;;  %s4699_s2 = inlined_call_operand.vmem [shape: f32[2,8,32], index: 2, kind: input, shape index: {}]   ;;  %s4700_s3 = inlined_call_operand.hbm [shape: bf16[32,32], index: 3, kind: input, shape index: {}]   ;;  %s4701_s4 = inlined_call_operand.hbm [shape: f32[1,32], index: 4, kind: input, shape index: {}]   ;;  %s4702_s5 = inlined_call_operand.hbm [shape: bf16[32,32], index: 5, kind: input, shape index: {}]   ;;  %s4703_s6 = inlined_call_operand.hbm [shape: f32[1,32], index: 6, kind: input, shape index: {}]   ;;  %s4704_s7 = inlined_call_operand.hbm [shape: bf16[32,32], index: 7, kind: input, shape index: {}]   ;;  %s4705_s8 = inlined_call_operand.hbm [shape: f32[1,32], index: 8, kind: input, shape index: {}]   ;;  %s4706_s9 = inlined_call_operand.vmem [shape: bf16[32,32], index: 9, kind: input, shape index: {}]   ;;  %s4707_s10 = inlined_call_operand.hbm [shape: f32[1,32], index: 10, kind: input, shape index: {}]   ;;  %s4708_s11 = inlined_call_operand.hbm [shape: bf16[32,32], index: 11, kind: input, shape index: {}]   ;;  %s4709_s12 = inlined_call_operand.hbm [shape: f32[1,32], index: 12, kind: input, shape index: {}]   ;;  %s4710_s13 = inlined_call_operand.vmem [shape: bf16[32,32], index: 13, kind: input, shape index: {}]   ;;  %s4711_s14 = inlined_call_operand.hbm [shape: f32[1,32], index: 14, kind: input, shape index: {}]   ;;  %s4712_s15 = inlined_call_operand.hbm [shape: bf16[32,32], index: 15, kind: input, shape index: {}]   ;;  %s4713_s16 = inlined_call_operand.hbm [shape: f32[1,32], index: 16, kind: input, shape index: {}]   ;;  %s4714_s17 = inlined_call_operand.vmem [shape: bf16[32,32], index: 17, kind: input, shape index: {}]   ;;  %s4715_s18 = inlined_call_operand.vmem [shape: f32[1,32], index: 18, kind: input, shape index: {}]   ;;  %s4716_s19 = inlined_call_operand.hbm [shape: bf16[32,64], index: 19, kind: input, shape index: {}]   ;;  %s4717_s20 = inlined_call_operand.vmem [shape: f32[1,64], index: 20, kind: input, shape index: {}]   ;;  %s4718_s21 = inlined_call_operand.vmem [shape: bf16[64,32], index: 21, kind: input, shape index: {}]   ;;  %s4719_s22 = inlined_call_operand.vmem [shape: f32[1,32], index: 22, kind: input, shape index: {}]   ;;  %s4720_s23 = inlined_call_operand.hbm [shape: f32[2,8,32], index: 23, kind: output, shape index: {}]  }
   0x1   :  { %4747 = sst [smem:[#allocation42_spill]] %s4697_s0 }
   0x2   :  { %4748 = sst [smem:[#allocation43_spill]] %s4698_s1 }
   0x3   :  { %4749 = sst [smem:[#allocation44_spill]] %s4699_s2 }
   0x4   :  { %4750 = sst [smem:[#allocation45_spill]] %s4700_s3 }
   0x5   :  { %4751 = sst [smem:[#allocation46_spill]] %s4701_s4 }
   0x6   :  { %4752 = sst [smem:[#allocation47_spill]] %s4702_s5 }
   0x7   :  { %4753 = sst [smem:[#allocation48_spill]] %s4703_s6 }
   0x8   :  { %4754 = sst [smem:[#allocation49_spill]] %s4704_s7 }
   0x9   :  { %4755 = sst [smem:[#allocation50_spill]] %s4705_s8 }
   0xa   :  { %4756 = sst [smem:[#allocation51_spill]] %s4708_s11 }
   0xb   :  { %4757 = sst [smem:[#allocation52_spill]] %s4711_s14 }
   0xc   :  { %4758 = sst [smem:[#allocation53_spill]] %s4713_s16 }
   0xd   :  { %4759 = sst [smem:[#allocation54_spill]] %s4715_s18 }
   0xe   :  { %4760 = sst [smem:[#allocation55_spill]] %s4717_s20 }
   0xf   :  { %4761 = sst [smem:[#allocation56_spill]] %s4719_s22 }
  0x10   :  { %4762 = sst [smem:[#allocation57_spill]] %s4720_s23 }
  0x11   :  { %28 = vsyncpa [#allocation4], 0 }
  0x12   :  { %29 = vsyncpa [#allocation7], 0 }
  0x13   :  { %30 = vsyncpa [#allocation10], 0 }
  0x14   :  { %31 = vsyncpa [#allocation13], 0 }
  0x15   :  { %32 = vsyncpa [#allocation16], 0 }
  0x16   :  { %33 = vsyncpa [#allocation19], 0 }
  0x17   :  { %34 = vsyncpa [#allocation22], 0 }
  0x18   :  { %35 = vsyncpa [#allocation5], 0 }
  0x19   :  { %37 = vsyncpa [#allocation5 + $0x1], 0  ;;  %s4022_s4 = smov 0   ;;  %s4024_s30 = smov 0  }
  0x1a   :  { %s4026_s24 = smov 0   ;;  %s4028_s25 = smov 0  }
  0x1b   :  { %s4030_s5 = smov 0   ;;  %s4032_s1 = smov 0  }
  0x1c LB: > { %4763 = sst [smem:[#allocation33_spill]] %s3856_s4  ;;  %s2803_s26 = sadd.s32 4294967295, %s3876_s1   ;;  %s3876_s1 = sphi %s4032_s1, %s43_s1   ;;  %s3872_s5 = sphi %s4030_s5, %s4812_s5   ;;  %s3868_s25 = sphi %s4028_s25, %s4811_s25   ;;  %s3864_s24 = sphi %s4026_s24, %s4810_s24   ;;  %s3860_s30 = sphi %s4024_s30, %s4809_s30   ;;  %s3856_s4 = sphi %s4022_s4, %s4808_s4  }
  0x1d   : > { %4764 = sst [smem:[#allocation34_spill]] %s3860_s30  ;;  %s2804_s2 = sadd.s32 4294967294, %s3876_s1  }
  0x1e   : > { %4765 = sst [smem:[#allocation35_spill]] %s3864_s24  ;;  %s55_s6 = sadd.s32 1, %s3872_s5 }
  0x1f   : > { %4766 = sst [smem:[#allocation36_spill]] %s3872_s5  ;;  %s564_s27 = sadd.s32 1, %s3864_s24 }
  0x20   : > { %4767 = sst [smem:[#allocation37_spill]] %s3876_s1  ;;  %p57_p0 = scmp.ge.s32.totalorder %s55_s6, 2 }
  0x21   : > { %p574_p1 = scmp.ne.s32.totalorder %s3864_s24, %s3860_s30  ;;  %p575_p2 = scmp.eq.s32.totalorder %s2803_s26, 1 }
  0x22   : > { %p580_p3 = scmp.ne.s32.totalorder %s3860_s30, %s3856_s4  ;;  %s4814_s6 = smov (%p57_p0, %s55_s6), 0 }
  0x23   : > { %4768 = sst [smem:[#allocation38_spill]] %s4814_s6  ;;  %p4062_p4 = por %p575_p2, %p574_p1 }
  0x24   : > { %p581_p5 = scmp.eq.s32.totalorder %s2804_s2, 1  ;;  %s559_s28 = ssub.s32 %s3872_s5, %s4814_s6 }
  0x25   : > { %s4769_s7 = scalar_select %p4062_p4, 1, 0 }
  0x26   : > { %p2805_p6 = scmp.ge.s32.totalorder %s3876_s1, 1  ;;  %p562_p7 = scmp.eq.s32.totalorder %s559_s28, 0 }
  0x27   : > { %4770 = sst [smem:[#allocation39_spill]] %s4769_s7  ;;  %p4069_p8 = por %p581_p5, %p580_p3 }
  0x28   : > { %p588_p9 = scmp.lt.s32.totalorder %s3876_s1, 3  ;;  %p4081_p11 = scmp.eq.s32.totalorder %s2803_s26, 0 }
  0x29   : > { %s4771_s29 = scalar_select %p4069_p8, 1, 0 }
  0x2a   : > { %s4075_s3 = scalar_select %p562_p7, %s3864_s24, %s564_s27  }
  0x2b   : > { %4772 = sst [smem:[#allocation40_spill]] %s4771_s29  ;;  %p4077_p10 = pnand %p2805_p6, %p588_p9 }
  0x2c   : > { %4773 = sst [smem:[#allocation41_spill]] %s4075_s3  ;;  %s3878_s2 = smov [#allocation6]  }
  0x2d   : > { %s4774_s0 = scalar_select %p4077_p10, 1, 0 }
  0x2e   : > { %s4775_s4 = scalar_select %p4081_p11, 1, 0 }
  0x2f   : > { %p3210_p12 = pneg %p4077_p10  ;;  %s614_s28 = sshll.u32 %s3878_s2, 4  ;;  %s615_s28 = int_to_ptr.vmem [resolvable:$true] %s614_s28 }
  0x30   : > { %s3879_s6 = smov [#allocation9]   ;;  %s3880_s26 = smov [#allocation12]  }
  0x31   : > { %s638_s5 = sshll.u32 %s3879_s6, 4  ;;  %p4089_p13 = pnand %p4081_p11, %p3210_p12  ;;  %s4093_s5 = int_to_ptr.vmem [resolvable:$true] %s638_s5 }
  0x32   : > { %s4095_s3 = sshll.u32 %s3880_s26, 4  ;;  %s4777_s1 = sld [smem:[#allocation46_spill]]  ;;  %s663_s3 = int_to_ptr.vmem [resolvable:$true] %s4095_s3 }
  0x33   : > { %p4105_p1 = pneg %p4089_p13 }
  0x38   : > { %s4778_s23 = smov %s4777_s1  ;;  %s3406_s7 = scalar_lea.hbm %s4777_s1, 16 }
  0x39   : > { %p3407_p0 = scmp.ne.s32.totalorder %s4778_s23, %s3406_s7  ;;  %p3413_p5 = scmp.lt.u32.totalorder %s3406_s7, %s4778_s23 }
  0x3b   : > { %p3409_p2 = pnand %p4105_p1, %p3407_p0 }
  0x3d   : > { %p3410_p3 = pneg %p3409_p2 }
  0x3f   : > { %p3415_p6 = pnand %p3413_p5, %p3410_p3 }
  0x41   : > { %3418 = shalt.err (!%p3415_p6)
}
  0x42   : > { %s3419_s24 = scalar_lea.vmem %s615_s28, 16  ;;  %s3426_s22 = scalar_lea.vmem %s615_s28, 32 }
  0x43   : > { %p3420_p7 = scmp.ne.s32.totalorder %s615_s28, %s3419_s24  ;;  %p3427_p8 = scmp.lt.s32.totalorder %s615_s28, %s615_s28 }
  0x44   : > { %p3428_p4 = scmp.lt.s32.totalorder %s3426_s22, %s3419_s24 }
  0x45   : > { %p3422_p9 = pnand %p3420_p7, %p4105_p1 }
  0x46   : > { %p3429_p11 = por %p3428_p4, %p3427_p8 }
  0x47   : > { %p3423_p12 = pneg %p3422_p9 }
  0x49   : > { %p3430_p10 = pnand %p3429_p11, %p3423_p12 }
  0x4b   : > { %3433 = shalt.err (!%p3430_p10)
}
  0x4c   : > { %3216 = dma.hbm_to_vmem [thread:$0]  (!%p4089_p13), %s4778_s23, 16, %s615_s28, [#allocation7]  }
  0x4d   : > { %s4780_s2 = sld [smem:[#allocation48_spill]] }
  0x53   : > { %s3434_s26 = scalar_lea.hbm %s4780_s2, 16 }
  0x54   : > { %p3435_p0 = scmp.ne.s32.totalorder %s4780_s2, %s3434_s26  ;;  %p3441_p8 = scmp.lt.u32.totalorder %s3434_s26, %s4780_s2 }
  0x56   : > { %p3437_p2 = pnand %p3435_p0, %p4105_p1 }
  0x58   : > { %p3438_p4 = pneg %p3437_p2 }
  0x5a   : > { %p3443_p10 = pnand %p3441_p8, %p3438_p4 }
  0x5c   : > { %3446 = shalt.err (!%p3443_p10)
}
  0x5d   : > { %s3447_s28 = scalar_lea.vmem %s4093_s5, 16  ;;  %s3454_s18 = scalar_lea.vmem %s4093_s5, 32 }
  0x5e   : > { %p3448_p11 = scmp.ne.s32.totalorder %s4093_s5, %s3447_s28  ;;  %p3455_p6 = scmp.lt.s32.totalorder %s4093_s5, %s4093_s5 }
  0x5f   : > { %p3456_p7 = scmp.lt.s32.totalorder %s3454_s18, %s3447_s28 }
  0x60   : > { %p3450_p3 = pnand %p3448_p11, %p4105_p1 }
  0x61   : > { %p3457_p9 = por %p3456_p7, %p3455_p6 }
  0x62   : > { %p3451_p5 = pneg %p3450_p3 }
  0x64   : > { %p3458_p12 = pnand %p3457_p9, %p3451_p5 }
  0x66   : > { %3461 = shalt.err (!%p3458_p12)
}
  0x67   : > { %3222 = dma.hbm_to_vmem [thread:$0]  (!%p4089_p13), %s4780_s2, 16, %s4093_s5, [#allocation10]  }
  0x68   : > { %s4781_s8 = sld [smem:[#allocation50_spill]] }
  0x6e   : > { %s3462_s7 = scalar_lea.hbm %s4781_s8, 16 }
  0x6f   : > { %p3463_p0 = scmp.ne.s32.totalorder %s4781_s8, %s3462_s7  ;;  %p3469_p8 = scmp.lt.u32.totalorder %s3462_s7, %s4781_s8 }
  0x71   : > { %p3465_p2 = pnand %p3463_p0, %p4105_p1 }
  0x73   : > { %p3466_p4 = pneg %p3465_p2 }
  0x75   : > { %p3471_p10 = pnand %p3469_p8, %p3466_p4 }
  0x77   : > { %3474 = shalt.err (!%p3471_p10)
}
  0x78   : > { %s3475_s18 = scalar_lea.vmem %s663_s3, 16  ;;  %s3482_s5 = scalar_lea.vmem %s663_s3, 32 }
  0x79   : > { %p3476_p11 = scmp.ne.s32.totalorder %s663_s3, %s3475_s18  ;;  %p3483_p6 = scmp.lt.s32.totalorder %s663_s3, %s663_s3 }
  0x7a   : > { %p3484_p7 = scmp.lt.s32.totalorder %s3482_s5, %s3475_s18 }
  0x7b   : > { %p3478_p3 = pnand %p3476_p11, %p4105_p1 }
  0x7c   : > { %p3485_p9 = por %p3484_p7, %p3483_p6 }
  0x7d   : > { %p3479_p5 = pneg %p3478_p3 }
  0x7f   : > { %p3486_p12 = pnand %p3485_p9, %p3479_p5 }
  0x81   : > { %3489 = shalt.err (!%p3486_p12)
}
  0x82   : > { %3228 = dma.hbm_to_vmem [thread:$0]  (!%p4089_p13), %s4781_s8, 16, %s663_s3, [#allocation13]  }
  0x83   : > { %s3881_s29 = smov [#allocation15]   ;;  %s3882_s7 = smov [#allocation18]  }
  0x84   : > { %s686_s20 = sshll.u32 %s3881_s29, 4  ;;  %s714_s26 = sshll.u32 %s3882_s7, 4  ;;  %s687_s20 = int_to_ptr.vmem [resolvable:$true] %s686_s20  ;;  %s4164_s26 = int_to_ptr.vmem [resolvable:$true] %s714_s26 }
  0x85   : > { %s4782_s11 = sld [smem:[#allocation51_spill]] }
  0x8b   : > { %s3490_s28 = scalar_lea.hbm %s4782_s11, 256 }
  0x8c   : > { %p3491_p0 = scmp.ne.s32.totalorder %s4782_s11, %s3490_s28  ;;  %p3497_p8 = scmp.lt.u32.totalorder %s3490_s28, %s4782_s11 }
  0x8e   : > { %p3493_p2 = pnand %p3491_p0, %p4105_p1 }
  0x90   : > { %p3494_p4 = pneg %p3493_p2 }
  0x92   : > { %p3499_p10 = pnand %p3497_p8, %p3494_p4 }
  0x94   : > { %3502 = shalt.err (!%p3499_p10)
}
  0x95   : > { %s3503_s1 = scalar_lea.vmem %s687_s20, 256  ;;  %p3511_p6 = scmp.lt.s32.totalorder %s687_s20, %s687_s20 }
  0x96   : > { %p3504_p11 = scmp.ne.s32.totalorder %s687_s20, %s3503_s1  ;;  %p3512_p7 = scmp.lt.s32.totalorder %s3503_s1, %s3503_s1 }
  0x98   : > { %p3506_p3 = pnand %p3504_p11, %p4105_p1  ;;  %p3513_p9 = por %p3512_p7, %p3511_p6 }
  0x9a   : > { %p3507_p5 = pneg %p3506_p3 }
  0x9c   : > { %p3514_p12 = pnand %p3513_p9, %p3507_p5 }
  0x9e   : > { %3517 = shalt.err (!%p3514_p12)
}
  0x9f   : > { %s4742_s29 = smov 64   ;;  %s4744_s7 = smov 4  }
  0xa0   : > { %3234 = dma.hbm_to_vmem [thread:$0]  (!%p4089_p13), %s4782_s11, 256, %s687_s20, [#allocation16], %s4742_s29, %s4742_s29, %s4744_s7  }
  0xa1   : > { %s4783_s14 = sld [smem:[#allocation52_spill]] }
  0xa7   : > { %s3518_s5 = scalar_lea.hbm %s4783_s14, 16 }
  0xa8   : > { %p3519_p0 = scmp.ne.s32.totalorder %s4783_s14, %s3518_s5  ;;  %p3525_p8 = scmp.lt.u32.totalorder %s3518_s5, %s4783_s14 }
  0xaa   : > { %p3521_p2 = pnand %p3519_p0, %p4105_p1 }
  0xac   : > { %p3522_p4 = pneg %p3521_p2 }
  0xae   : > { %p3527_p10 = pnand %p3525_p8, %p3522_p4 }
  0xb0   : > { %3530 = shalt.err (!%p3527_p10)
}
  0xb1   : > { %s3531_s20 = scalar_lea.vmem %s4164_s26, 16  ;;  %s3538_s24 = scalar_lea.vmem %s4164_s26, 32 }
  0xb2   : > { %p3532_p11 = scmp.ne.s32.totalorder %s4164_s26, %s3531_s20  ;;  %p3539_p6 = scmp.lt.s32.totalorder %s4164_s26, %s4164_s26 }
  0xb3   : > { %p3540_p7 = scmp.lt.s32.totalorder %s3538_s24, %s3531_s20 }
  0xb4   : > { %p3534_p3 = pnand %p3532_p11, %p4105_p1 }
  0xb5   : > { %p3541_p9 = por %p3540_p7, %p3539_p6 }
  0xb6   : > { %p3535_p5 = pneg %p3534_p3 }
  0xb8   : > { %p3542_p12 = pnand %p3541_p9, %p3535_p5 }
  0xba   : > { %3545 = shalt.err (!%p3542_p12)
}
  0xbb   : > { %3240 = dma.hbm_to_vmem [thread:$0]  (!%p4089_p13), %s4783_s14, 16, %s4164_s26, [#allocation19]  }
  0xbc   : > { %s3885_s28 = smov [#allocation21]   ;;  %s4784_s16 = sld [smem:[#allocation53_spill]] }
  0xbd   : > { %s738_s18 = sshll.u32 %s3885_s28, 4  ;;  %s739_s18 = int_to_ptr.vmem [resolvable:$true] %s738_s18 }
  0xc2   : > { %s3546_s3 = scalar_lea.hbm %s4784_s16, 16 }
  0xc3   : > { %p3547_p0 = scmp.ne.s32.totalorder %s4784_s16, %s3546_s3  ;;  %p3553_p8 = scmp.lt.u32.totalorder %s3546_s3, %s4784_s16 }
  0xc5   : > { %p3549_p2 = pnand %p3547_p0, %p4105_p1 }
  0xc7   : > { %p3550_p4 = pneg %p3549_p2 }
  0xc9   : > { %p3555_p10 = pnand %p3553_p8, %p3550_p4 }
  0xcb   : > { %3558 = shalt.err (!%p3555_p10)
}
  0xcc   : > { %s3559_s26 = scalar_lea.vmem %s739_s18, 16  ;;  %s3566_s2 = scalar_lea.vmem %s739_s18, 32 }
  0xcd   : > { %p3560_p11 = scmp.ne.s32.totalorder %s739_s18, %s3559_s26  ;;  %p3567_p6 = scmp.lt.s32.totalorder %s739_s18, %s739_s18 }
  0xce   : > { %p3568_p7 = scmp.lt.s32.totalorder %s3566_s2, %s3559_s26 }
  0xcf   : > { %p3562_p3 = pnand %p3560_p11, %p4105_p1 }
  0xd0   : > { %p3569_p9 = por %p3568_p7, %p3567_p6 }
  0xd1   : > { %p3563_p5 = pneg %p3562_p3 }
  0xd3   : > { %p3570_p12 = pnand %p3569_p9, %p3563_p5 }
  0xd5   : > { %3573 = shalt.err (!%p3570_p12)
}
  0xd6   : > { %3246 = dma.hbm_to_vmem [thread:$0]  (!%p4089_p13), %s4784_s16, 16, %s739_s18, [#allocation22]  }
  0xd7   : > { %s3886_s29 = smov [#allocation3]   ;;  %s3887_s30 = smov [#allocation8]  }
  0xd8   : > { %s600_s5 = sshll.u32 %s3886_s29, 4  ;;  %s624_s3 = sshll.u32 %s3887_s30, 4  ;;  %s601_s5 = int_to_ptr.vmem [resolvable:$true] %s600_s5  ;;  %s625_s3 = int_to_ptr.vmem [resolvable:$true] %s624_s3 }
  0xd9   : > { %s4785_s24 = sld [smem:[#allocation45_spill]] }
  0xdf   : > { %s4786_s7 = smov %s4785_s24  ;;  %s3574_s8 = scalar_lea.hbm %s4785_s24, 256 }
  0xe0   : > { %p3575_p0 = scmp.ne.s32.totalorder %s4786_s7, %s3574_s8  ;;  %p3581_p8 = scmp.lt.u32.totalorder %s3574_s8, %s4786_s7 }
  0xe2   : > { %p3577_p2 = pnand %p3575_p0, %p4105_p1 }
  0xe4   : > { %p3578_p4 = pneg %p3577_p2 }
  0xe6   : > { %p3583_p10 = pnand %p3581_p8, %p3578_p4 }
  0xe8   : > { %3586 = shalt.err (!%p3583_p10)
}
  0xe9   : > { %s3587_s18 = scalar_lea.vmem %s601_s5, 256  ;;  %p3595_p6 = scmp.lt.s32.totalorder %s601_s5, %s601_s5 }
  0xea   : > { %p3588_p11 = scmp.ne.s32.totalorder %s601_s5, %s3587_s18  ;;  %p3596_p7 = scmp.lt.s32.totalorder %s3587_s18, %s3587_s18 }
  0xec   : > { %p3590_p3 = pnand %p3588_p11, %p4105_p1  ;;  %p3597_p9 = por %p3596_p7, %p3595_p6 }
  0xee   : > { %p3591_p5 = pneg %p3590_p3 }
  0xf0   : > { %p3598_p12 = pnand %p3597_p9, %p3591_p5 }
  0xf2   : > { %3601 = shalt.err (!%p3598_p12)
}
  0xf3   : > { %s4787_s28 = smov 4   ;;  %s4788_s29 = smov 64  }
  0xf4   : > { %3213 = dma.hbm_to_vmem [thread:$0]  (!%p4089_p13), %s4786_s7, 256, %s601_s5, [#allocation4], %s4788_s29, %s4788_s29, %s4787_s28  }
  0xf5   : > { %s4789_s20 = sld [smem:[#allocation47_spill]] }
  0xfb   : > { %s3602_s24 = scalar_lea.hbm %s4789_s20, 256 }
  0xfc   : > { %p3603_p0 = scmp.ne.s32.totalorder %s4789_s20, %s3602_s24  ;;  %p3609_p8 = scmp.lt.u32.totalorder %s3602_s24, %s4789_s20 }
  0xfe   : > { %p3605_p2 = pnand %p3603_p0, %p4105_p1 }
 0x100   : > { %p3606_p4 = pneg %p3605_p2 }
 0x102   : > { %p3611_p10 = pnand %p3609_p8, %p3606_p4 }
 0x104   : > { %3614 = shalt.err (!%p3611_p10)
}
 0x105   : > { %s3615_s11 = scalar_lea.vmem %s625_s3, 256  ;;  %p3623_p6 = scmp.lt.s32.totalorder %s625_s3, %s625_s3 }
 0x106   : > { %p3616_p11 = scmp.ne.s32.totalorder %s625_s3, %s3615_s11  ;;  %p3624_p7 = scmp.lt.s32.totalorder %s3615_s11, %s3615_s11 }
 0x108   : > { %p3618_p3 = pnand %p3616_p11, %p4105_p1  ;;  %p3625_p9 = por %p3624_p7, %p3623_p6 }
 0x10a   : > { %p3619_p5 = pneg %p3618_p3 }
 0x10c   : > { %p3626_p12 = pnand %p3625_p9, %p3619_p5 }
 0x10e   : > { %3629 = shalt.err (!%p3626_p12)
}
 0x10f   : > { %3219 = dma.hbm_to_vmem [thread:$0]  (!%p4089_p13), %s4789_s20, 256, %s625_s3, [#allocation7], %s4788_s29, %s4788_s29, %s4787_s28  }
 0x110   : > { %s3888_s30 = smov [#allocation11]   ;;  %s3889_s24 = smov [#allocation14]  }
 0x111   : > { %s648_s1 = sshll.u32 %s3888_s30, 4  ;;  %s676_s26 = sshll.u32 %s3889_s24, 4  ;;  %s649_s1 = int_to_ptr.vmem [resolvable:$true] %s648_s1  ;;  %s677_s26 = int_to_ptr.vmem [resolvable:$true] %s676_s26 }
 0x112   : > { %s4790_s18 = sld [smem:[#allocation49_spill]] }
 0x118   : > { %s3630_s11 = scalar_lea.hbm %s4790_s18, 256 }
 0x119   : > { %p3631_p0 = scmp.ne.s32.totalorder %s4790_s18, %s3630_s11  ;;  %p3637_p8 = scmp.lt.u32.totalorder %s3630_s11, %s4790_s18 }
 0x11b   : > { %p3633_p2 = pnand %p3631_p0, %p4105_p1 }
 0x11d   : > { %p3634_p4 = pneg %p3633_p2 }
 0x11f   : > { %p3639_p10 = pnand %p3637_p8, %p3634_p4 }
 0x121   : > { %3642 = shalt.err (!%p3639_p10)
}
 0x122   : > { %s3643_s3 = scalar_lea.vmem %s649_s1, 256  ;;  %p3651_p6 = scmp.lt.s32.totalorder %s649_s1, %s649_s1 }
 0x123   : > { %p3644_p11 = scmp.ne.s32.totalorder %s649_s1, %s3643_s3  ;;  %p3652_p7 = scmp.lt.s32.totalorder %s3643_s3, %s3643_s3 }
 0x125   : > { %p3646_p3 = pnand %p3644_p11, %p4105_p1  ;;  %p3653_p9 = por %p3652_p7, %p3651_p6 }
 0x127   : > { %p3647_p5 = pneg %p3646_p3 }
 0x129   : > { %p3654_p12 = pnand %p3653_p9, %p3647_p5 }
 0x12b   : > { %3657 = shalt.err (!%p3654_p12)
}
 0x12c   : > { %3225 = dma.hbm_to_vmem [thread:$0]  (!%p4089_p13), %s4790_s18, 256, %s649_s1, [#allocation10], %s4788_s29, %s4788_s29, %s4787_s28  }
 0x12d   : > { %s3658_s30 = scalar_lea.hbm %s4707_s10, 16 }
 0x12e   : > { %p3659_p0 = scmp.ne.s32.totalorder %s4707_s10, %s3658_s30  ;;  %p3665_p8 = scmp.lt.u32.totalorder %s3658_s30, %s4707_s10 }
 0x130   : > { %p3661_p2 = pnand %p3659_p0, %p4105_p1 }
 0x132   : > { %p3662_p4 = pneg %p3661_p2 }
 0x134   : > { %p3667_p10 = pnand %p3665_p8, %p3662_p4 }
 0x136   : > { %3670 = shalt.err (!%p3667_p10)
}
 0x137   : > { %s3671_s5 = scalar_lea.vmem %s677_s26, 16  ;;  %s3678_s1 = scalar_lea.vmem %s677_s26, 32 }
 0x138   : > { %p3672_p11 = scmp.ne.s32.totalorder %s677_s26, %s3671_s5  ;;  %p3679_p6 = scmp.lt.s32.totalorder %s677_s26, %s677_s26 }
 0x139   : > { %p3680_p7 = scmp.lt.s32.totalorder %s3678_s1, %s3671_s5 }
 0x13a   : > { %p3674_p3 = pnand %p3672_p11, %p4105_p1 }
 0x13b   : > { %p3681_p9 = por %p3680_p7, %p3679_p6 }
 0x13c   : > { %p3675_p5 = pneg %p3674_p3 }
 0x13e   : > { %p3682_p12 = pnand %p3681_p9, %p3675_p5 }
 0x140   : > { %3685 = shalt.err (!%p3682_p12)
}
 0x141   : > { %3231 = dma.hbm_to_vmem [thread:$0]  (!%p4089_p13), %s4707_s10, 16, %s677_s26, [#allocation13]  }
 0x142   : > { %s3890_s16 = smov [#allocation17]   ;;  %s3891_s8 = smov [#allocation20]  }
 0x143   : > { %s700_s7 = sshll.u32 %s3890_s16, 4  ;;  %s724_s30 = sshll.u32 %s3891_s8, 4  ;;  %s701_s7 = int_to_ptr.vmem [resolvable:$true] %s700_s7  ;;  %s725_s30 = int_to_ptr.vmem [resolvable:$true] %s724_s30 }
 0x144   : > { %s3686_s22 = scalar_lea.hbm %s4709_s12, 16 }
 0x145   : > { %p3687_p0 = scmp.ne.s32.totalorder %s4709_s12, %s3686_s22  ;;  %p3693_p8 = scmp.lt.u32.totalorder %s3686_s22, %s4709_s12 }
 0x147   : > { %p3689_p2 = pnand %p3687_p0, %p4105_p1 }
 0x149   : > { %p3690_p4 = pneg %p3689_p2 }
 0x14b   : > { %p3695_p10 = pnand %p3693_p8, %p3690_p4 }
 0x14d   : > { %3698 = shalt.err (!%p3695_p10)
}
 0x14e   : > { %s3699_s26 = scalar_lea.vmem %s701_s7, 16  ;;  %s3706_s14 = scalar_lea.vmem %s701_s7, 32 }
 0x14f   : > { %p3700_p11 = scmp.ne.s32.totalorder %s701_s7, %s3699_s26  ;;  %p3707_p6 = scmp.lt.s32.totalorder %s701_s7, %s701_s7 }
 0x150   : > { %p3708_p7 = scmp.lt.s32.totalorder %s3706_s14, %s3699_s26 }
 0x151   : > { %p3702_p3 = pnand %p3700_p11, %p4105_p1 }
 0x152   : > { %p3709_p9 = por %p3708_p7, %p3707_p6 }
 0x153   : > { %p3703_p5 = pneg %p3702_p3 }
 0x155   : > { %p3710_p12 = pnand %p3709_p9, %p3703_p5 }
 0x157   : > { %3713 = shalt.err (!%p3710_p12)
}
 0x158   : > { %3237 = dma.hbm_to_vmem [thread:$0]  (!%p4089_p13), %s4709_s12, 16, %s701_s7, [#allocation16]  }
 0x159   : > { %s3714_s22 = scalar_lea.hbm %s4712_s15, 256 }
 0x15a   : > { %p3715_p0 = scmp.ne.s32.totalorder %s4712_s15, %s3714_s22  ;;  %p3721_p8 = scmp.lt.u32.totalorder %s3714_s22, %s4712_s15 }
 0x15c   : > { %p3717_p2 = pnand %p3715_p0, %p4105_p1 }
 0x15e   : > { %p3718_p4 = pneg %p3717_p2 }
 0x160   : > { %p3723_p10 = pnand %p3721_p8, %p3718_p4 }
 0x162   : > { %3726 = shalt.err (!%p3723_p10)
}
 0x163   : > { %s3727_s26 = scalar_lea.vmem %s725_s30, 256  ;;  %p3735_p6 = scmp.lt.s32.totalorder %s725_s30, %s725_s30 }
 0x164   : > { %p3728_p11 = scmp.ne.s32.totalorder %s725_s30, %s3727_s26  ;;  %p3736_p7 = scmp.lt.s32.totalorder %s3727_s26, %s3727_s26 }
 0x166   : > { %p3730_p3 = pnand %p3728_p11, %p4105_p1  ;;  %p3737_p9 = por %p3736_p7, %p3735_p6 }
 0x168   : > { %p3731_p5 = pneg %p3730_p3 }
 0x16a   : > { %p3738_p12 = pnand %p3737_p9, %p3731_p5 }
 0x16c   : > { %3741 = shalt.err (!%p3738_p12)
}
 0x16d   : > { %3243 = dma.hbm_to_vmem [thread:$0]  (!%p4089_p13), %s4712_s15, 256, %s725_s30, [#allocation19], %s4788_s29, %s4788_s29, %s4787_s28  }
 0x16e   : > { %s3892_s16 = smov [#allocation23]   ;;  %s3742_s22 = scalar_lea.hbm %s4716_s19, 256 }
 0x16f   : > { %s754_s8 = sshll.u32 %s3892_s16, 4  ;;  %p3743_p0 = scmp.ne.s32.totalorder %s4716_s19, %s3742_s22  ;;  %s755_s8 = int_to_ptr.vmem [resolvable:$true] %s754_s8 }
 0x170   : > { %p3749_p8 = scmp.lt.u32.totalorder %s3742_s22, %s4716_s19 }
 0x171   : > { %p3745_p2 = pnand %p3743_p0, %p4105_p1 }
 0x173   : > { %p3746_p4 = pneg %p3745_p2 }
 0x175   : > { %p3751_p10 = pnand %p3749_p8, %p3746_p4 }
 0x177   : > { %3754 = shalt.err (!%p3751_p10)
}
 0x178   : > { %s3755_s30 = scalar_lea.vmem %s755_s8, 256  ;;  %p3763_p6 = scmp.lt.s32.totalorder %s755_s8, %s755_s8 }
 0x179   : > { %p3756_p11 = scmp.ne.s32.totalorder %s755_s8, %s3755_s30  ;;  %p3764_p7 = scmp.lt.s32.totalorder %s3755_s30, %s3755_s30 }
 0x17b   : > { %p3758_p3 = pnand %p3756_p11, %p4105_p1  ;;  %p3765_p9 = por %p3764_p7, %p3763_p6 }
 0x17d   : > { %p3759_p5 = pneg %p3758_p3 }
 0x17f   : > { %p3766_p12 = pnand %p3765_p9, %p3759_p5 }
 0x181   : > { %3769 = shalt.err (!%p3766_p12)
}
 0x182   : > { %3249 = dma.hbm_to_vmem [thread:$0]  (!%p4089_p13), %s4716_s19, 256, %s755_s8, [#allocation22], %s4788_s29, %s4788_s29, %s4787_s28  }
 0x183   : > { %p4791_p0 = scmp.ne.s32.totalorder %s4774_s0, 0 }
 0x184   : > { %p4792_p1 = scmp.ne.s32.totalorder (!%p4791_p0), %s4775_s4, 0 }
 0x185   : > { %803 = sbr.rel (%p4791_p0) target bundleno = 3738 (0xe9a), region = 112 }
 0x18c   : > { %3823 = dma.done.wait (%p4792_p1), [#allocation4], 256  }
 0x18d   : > { %3825 = vsyncadd (%p4792_p1), [#allocation4], 4294967040 }
 0x18e   : > { %3827 = dma.done.wait (%p4792_p1), [#allocation7], 272  }
 0x18f   : > { %3829 = vsyncadd (%p4792_p1), [#allocation7], 4294967024 }
 0x190   : > { %3831 = dma.done.wait (%p4792_p1), [#allocation10], 272  }
 0x191   : > { %3833 = vsyncadd (%p4792_p1), [#allocation10], 4294967024 }
 0x192   : > { %3835 = dma.done.wait (%p4792_p1), [#allocation13], 32  }
 0x193   : > { %3837 = vsyncadd (%p4792_p1), [#allocation13], 4294967264 }
 0x194   : > { %3839 = dma.done.wait (%p4792_p1), [#allocation16], 272  }
 0x195   : > { %3841 = vsyncadd (%p4792_p1), [#allocation16], 4294967024 }
 0x196   : > { %3843 = dma.done.wait (%p4792_p1), [#allocation19], 272  }
 0x197   : > { %3845 = vsyncadd (%p4792_p1), [#allocation19], 4294967024 }
 0x198   : > { %3847 = dma.done.wait (%p4792_p1), [#allocation22], 272  }
 0x199   : > { %3849 = vsyncadd (%p4792_p1), [#allocation22], 4294967024  ;;  %p925_p13 = scmp.lt.s32.totalorder %s3868_s25, 1  ;;  %v3893_v0 = vmov 0.0   ;;  %vm3894_vm0 = vmmov 0   ;;  %v3352_v1 = vld [vmem:[#allocation8] sm:$0xff]  }
 0x19a   : > { %2984 = vmatprep.subr.bf16.mxu1 %v3893_v0  ;;  %2976 = vmatprep.subr.bf16.mxu0 %v3893_v0  ;;  %s4793_s28 = sld [smem:[#allocation43_spill]]  ;;  %v3353_v2 = vld [vmem:[#allocation3] sm:$0xff]   ;;  %s4794_s8 = sld [smem:[#allocation42_spill]]  ;;  %vm968_vm1 = vcmask 261120   ;;  %v3355_v5 = vld [vmem:[#allocation3 + $0x8] sm:$0xff]   ;;  %vm1144_vm2 = vcmask 64512  }
 0x19b   : > { %2988 = vmatprep.mubr.msk.bf16.mxu1 %vm3894_vm0, %v3893_v0  ;;  %s926_s0 = scalar_select %p925_p13, %s3868_s25, 1  ;;  %2980 = vmatprep.mubr.msk.bf16.mxu0 %vm3894_vm0, %v3893_v0  ;;  %v3354_v3 = vld [vmem:[#allocation8 + $0x8] sm:$0xff]   ;;  %v2842_v9 = vld [vmem:[#allocation9] ss:$0 sm:$0xff]  ;;  %v2838_v10 = vld [vmem:[#allocation6] ss:$0 sm:$0xff] }
 0x19c   : > { %2985 = vmatpush3.bf16.msra.mxu1 %v3352_v1  ;;  %2977 = vmatpush3.bf16.msra.mxu0 %v3353_v2  ;;  %s3895_s2 = smov 112   ;;  %s3896_s22 = smov 120   ;;  %v3356_v24 = vld [vmem:[#allocation11] sm:$0xff]   ;;  %v3357_v25 = vld [vmem:[#allocation11 + $0x8] sm:$0xff]   ;;  %v2846_v40 = vld [vmem:[#allocation12] ss:$0 sm:$0xff] }
 0x19d   : > { %s4408_s27 = sshll.u32 %s926_s0, 3  ;;  %2986 = vmatprep.subr.bf16.mxu1 %v3893_v0  ;;  %2978 = vmatprep.subr.bf16.mxu0 %v3893_v0  ;;  %s3897_s11 = smov 104   ;;  %vm1206_vm3 = vcmask 1043456   ;;  %vm1251_vm4 = vcmask 60416   ;;  %vm1373_vm5 = vcmask 126016   ;;  %vm1492_vm6 = vcmask 191616  }
 0x19e   : > { %s3898_s5 = smov 8   ;;  %s3899_s7 = smov 16   ;;  %vm1611_vm7 = vcmask 257216   ;;  %vm2521_vm8 = vcmask 523264  }
 0x19f   : > { %s3900_s0 = smov 24   ;;  %s4795_s14 = sld [smem:[#allocation44_spill]] }
 0x1a0   : > { %s935_s29 = scalar_lea.vmem %s4793_s28, %s4408_s27  ;;  %s931_s24 = scalar_lea.vmem %s4794_s8, %s4408_s27  ;;  %2987 = vmatpush3.bf16.msra.mxu1 %v3354_v3  ;;  %2979 = vmatpush3.bf16.msra.mxu0 %v3355_v5 }
 0x1a1   : > { %v943_v4 = vld [vmem:[%s935_s29] sm:$0xff]  ;;  %3000 = vmatprep.subr.bf16.mxu1 %v3893_v0  ;;  %2992 = vmatprep.subr.bf16.mxu0 %v3893_v0  ;;  %s4797_s28 = sld [smem:[#allocation34_spill]]  ;;  %s4800_s1 = sld [smem:[#allocation39_spill]] }
 0x1a2   : > { %v4420_v6 = vld [vmem:[%s931_s24] sm:$0xff]  ;;  %v944_v7 = vpack.c.bf16 %v943_v4, %v943_v4  ;;  %s4798_s24 = sld [smem:[#allocation55_spill]]  ;;  %s2903_s3 = sshll.u32 %s3868_s25, 7 }
 0x1a3   : > { %v942_v8 = vpack.c.bf16 %v4420_v6, %v4420_v6  ;;  %s4801_s4 = sld [smem:[#allocation57_spill]] }
 0x1a4   : > { %2989 = vmatmul.mubr.msk.bf16.vlgmr.msra.gmra.mrb[0].mxu1 %vm968_vm1, %v944_v7 }
 0x1a5   : > { %2981 = vmatmul.mubr.msk.bf16.vlgmr.msra.gmra.mrb[0].mxu0 %vm968_vm1, %v942_v8  ;;  %3002 = vmatprep.mubr.msk.bf16.mxu1 %vm3894_vm0, %v3893_v0  ;;  %s939_s16 = scalar_lea.vmem %s4795_s14, %s4408_s27  ;;  %s3901_s14 = smov [#allocation24]  }
 0x1a6   : > { %2996 = vmatprep.mubr.msk.bf16.mxu0 %vm3894_vm0, %v3893_v0  ;;  %2993 = vmatpush3.bf16.msra.mxu0 %v3356_v24 }
 0x1a7   : > { %2994 = vmatprep.subr.bf16.mxu0 %v3893_v0  ;;  %s922_s27 = sand.u32 1, %s4797_s28   ;;  %p4803_p4 = scmp.ne.s32.totalorder %s4800_s1, 0 }
 0x1a8   : > { %s2568_s25 = scalar_lea.sflag [#allocation5], %s922_s27 }
 0x1a9   : > { %s4802_s6 = smov %s4801_s4  ;;  %s4649_s29 = scalar_lea.hbm %s4801_s4, %s2903_s3 }
 0x1aa   : > { %2995 = vmatpush3.bf16.msra.mxu0 %v3357_v25 }
 0x1ab   : > { %3006 = vmatprep.subr.bf16.mxu0 %v3893_v0 }
 0x1ad   : > { %2997 = vmatmul.mubr.msk.bf16.vlgmr.msra.gmra.mrb[4].mxu0 %vm968_vm1, %v944_v7 }
 0x1ae   : > { %3008 = vmatprep.mubr.msk.bf16.mxu0 %vm3894_vm0, %v3893_v0 }
 0x277   : > { %v1073_v11 = vpop.f32.mrb[0].mxu1 }
 0x278   : > { %v1074_v12 = vadd.f32 %v2842_v9, %v1073_v11  ;;  %v2990_v13 = vpop.f32.mrb[1].mxu1  ;;  %v1006_v14 = vpop.f32.mrb[0].mxu0 }
 0x279   : > { %v1076_v15 = vpop.f32.mrb[2].mxu1  ;;  %v1007_v16 = vadd.f32 %v2838_v10, %v1006_v14  ;;  %v2982_v17 = vpop.f32.mrb[1].mxu0 }
 0x27a   : > { %v1079_v18 = vpack.c.bf16 %v1074_v12, %v1074_v12  ;;  %v2991_v19 = vpop.f32.mrb[3].mxu1  ;;  %v1009_v20 = vpop.f32.mrb[2].mxu0 }
 0x27b   : > { %v2983_v21 = vpop.f32.mrb[3].mxu0  ;;  %v1012_v22 = vpack.c.bf16 %v1007_v16, %v1007_v16 }
 0x27c   : > { %1377 = vrot.lane.b32.xlu1 %v1079_v18, %s3895_s2  ;;  %1257 = vrot.lane.b32.xlu0 %v1079_v18, %s3896_s22  ;;  %v1149_v23 = vsel %vm1144_vm2, %v1079_v18, 0 }
 0x27d   : > { %3001 = vmatpush3.bf16.xpose.msra.mxu1 %v1149_v23 }
 0x27e   : > { %3012 = vmatprep.subr.bf16.mxu1 %v3893_v0 }
 0x280   : > { %1375 = vrot.lane.b32.xlu1 %v1012_v22, %s3895_s2  ;;  %1254 = vrot.lane.b32.xlu0 %v1012_v22, %s3896_s22  ;;  %v1137_v41 = vpop.f32.mrb[4].mxu0 }
 0x281   : > { %v1138_v42 = vadd.f32 %v2846_v40, %v1137_v41  ;;  %v2998_v43 = vpop.f32.mrb[5].mxu0 }
 0x282   : > { %v1140_v44 = vpop.f32.mrb[6].mxu0 }
 0x283   : > { %v1143_v45 = vpack.c.bf16 %v1138_v42, %v1138_v42  ;;  %v2999_v46 = vpop.f32.mrb[7].mxu0 }
 0x284   : > { %1494 = vrot.lane.b32.xlu1 %v1012_v22, %s3897_s11  ;;  %1496 = vrot.lane.b32.xlu0 %v1079_v18, %s3897_s11 }
 0x285   : > { %3003 = vmatmul.mubr.msk.bf16.vlgmr.msra.gmra.mrb[4].mxu1 %vm1144_vm2, %v1012_v22  ;;  %v1208_v47 = vsel %vm1206_vm3, %v1143_v45, 0 }
 0x286   : > { %3014 = vmatprep.mubr.msk.bf16.mxu1 %vm3894_vm0, %v3893_v0  ;;  %3007 = vmatpush3.bf16.msra.mxu0 %v1208_v47 }
 0x287   : > { %3018 = vmatprep.subr.bf16.mxu0 %v3893_v0 }
 0x2ee   : > { %v1258_v26 = vpop.permute.xlu0 %1257  ;;  %v1378_v28 = vpop.permute.xlu1 %1377 }
 0x2ef   : > { %v1263_v27 = vsel %vm1144_vm2, %v1258_v26, 0  ;;  %v1383_v30 = vsel %vm1144_vm2, %v1378_v28, 0 }
 0x2f0   : > { %3013 = vmatpush3.bf16.xpose.msra.mxu1 %v1263_v27 }
 0x2f1   : > { %3024 = vmatprep.subr.bf16.mxu1 %v3893_v0 }
 0x2f2   : > { %v1255_v29 = vpop.permute.xlu0 %1254  ;;  %v1376_v32 = vpop.permute.xlu1 %1375 }
 0x2f6   : > { %v1497_v31 = vpop.permute.xlu0 %1496  ;;  %v1495_v34 = vpop.permute.xlu1 %1494 }
 0x2f7   : > { %3015 = vmatmul.mubr.msk.bf16.vlgmr.msra.gmra.mrb[8].mxu1 %vm1144_vm2, %v1255_v29  ;;  %v1502_v33 = vsel %vm1144_vm2, %v1497_v31, 0 }
 0x2f8   : > { %3025 = vmatpush3.bf16.xpose.msra.mxu1 %v1383_v30  ;;  %3026 = vmatprep.mubr.msk.bf16.mxu1 %vm3894_vm0, %v3893_v0 }
 0x2f9   : > { %3036 = vmatprep.subr.bf16.mxu1 %v3893_v0 }
 0x2ff   : > { %3027 = vmatmul.mubr.msk.bf16.vlgmr.msra.gmra.mrb[12].mxu1 %vm1144_vm2, %v1376_v32 }
 0x300   : > { %3037 = vmatpush3.bf16.xpose.msra.mxu1 %v1502_v33  ;;  %3038 = vmatprep.mubr.msk.bf16.mxu1 %vm3894_vm0, %v3893_v0 }
 0x301   : > { %3048 = vmatprep.subr.bf16.mxu1 %v3893_v0 }
 0x307   : > { %3039 = vmatmul.mubr.msk.bf16.vlgmr.msra.gmra.mrb[16].mxu1 %vm1144_vm2, %v1495_v34 }
 0x308   : > { %3052 = vmatprep.mubr.msk.bf16.mxu1 %vm3894_vm0, %v3893_v0 }
 0x358   : > { %v1185_v35 = vpop.f32.mrb[4].mxu1 }
 0x359   : > { %v3004_v36 = vpop.f32.mrb[5].mxu1  ;;  %v1191_v37 = vsel %vm1144_vm2, %v1185_v35, -inf }
 0x35a   : > { %1192 = vmax.xlane.f32.xlu0 %v1191_v37  ;;  %v1188_v38 = vpop.f32.mrb[6].mxu1 }
 0x35b   : > { %v3005_v39 = vpop.f32.mrb[7].mxu1 }
 0x3ca   : > { %v1299_v48 = vpop.f32.mrb[8].mxu1 }
 0x3cb   : > { %v3016_v49 = vpop.f32.mrb[9].mxu1  ;;  %v1305_v50 = vsel %vm1144_vm2, %v1299_v48, -inf }
 0x3cc   : > { %1306 = vmax.xlane.f32.xlu1 %v1305_v50  ;;  %v1302_v51 = vpop.f32.mrb[10].mxu1 }
 0x3cd   : > { %v3017_v52 = vpop.f32.mrb[11].mxu1 }
 0x3d2   : > { %v1419_v53 = vpop.f32.mrb[12].mxu1 }
 0x3d3   : > { %v3028_v54 = vpop.f32.mrb[13].mxu1  ;;  %v1425_v55 = vsel %vm1144_vm2, %v1419_v53, -inf }
 0x3d4   : > { %1426 = vmax.xlane.f32.xlu0 %v1425_v55  ;;  %v1422_v56 = vpop.f32.mrb[14].mxu1  ;;  %v3359_v55 = vld [vmem:[%s4706_s9 + $0x8] sm:$0xff]  }
 0x3d5   : > { %v3029_v57 = vpop.f32.mrb[15].mxu1 }
 0x3da   : > { %v1538_v58 = vpop.f32.mrb[16].mxu1 }
 0x3db   : > { %v3040_v59 = vpop.f32.mrb[17].mxu1  ;;  %v1544_v60 = vsel %vm1144_vm2, %v1538_v58, -inf }
 0x3dc   : > { %1545 = vmax.xlane.f32.xlu0 %v1544_v60  ;;  %v1541_v61 = vpop.f32.mrb[18].mxu1 }
 0x3dd   : > { %v3041_v62 = vpop.f32.mrb[19].mxu1 }
 0x3e7   : > { %v1193_v63 = vpop.xlane.xlu0 %1192 }
 0x3e8   : > { %v1194_v1 = vsub.f32 %v1185_v35, %v1193_v63 }
 0x3ea   : > { %v1195_v2 = vmul.f32 1.442695, %v1194_v1 }
 0x3ec   : > { %3374 = vpow2.f32 %v1195_v2 }
 0x3f6   : > { %v3375_v3 = vpop.eup %3374 }
 0x3f7   : > { %v1197_v4 = vsel %vm1144_vm2, %v3375_v3, 0.0 }
 0x3f8   : > { %1198 = vadd.xlane.f32.xlu1 %v1197_v4 }
 0x409   : > { %1318 = vrot.lane.b32.xlu1 %v1143_v45, %s3896_s22 }
 0x459   : > { %v1307_v5 = vpop.xlane.xlu1 %1306 }
 0x45a   : > { %v1308_v7 = vsub.f32 %v1299_v48, %v1307_v5  ;;  %v3360_v5 = vld [vmem:[%s4710_s13] sm:$0xff]  }
 0x45c   : > { %v1309_v8 = vmul.f32 1.442695, %v1308_v7 }
 0x45e   : > { %3376 = vpow2.f32 %v1309_v8  ;;  %v3361_v8 = vld [vmem:[%s4710_s13 + $0x8] sm:$0xff]  }
 0x461   : > { %v1427_v9 = vpop.xlane.xlu0 %1426 }
 0x462   : > { %v1428_v10 = vsub.f32 %v1419_v53, %v1427_v9  ;;  %v3358_v53 = vld [vmem:[%s4706_s9] sm:$0xff]  }
 0x463   : > { %3049 = vmatpush3.bf16.msra.mxu1 %v3358_v53  ;;  %v1682_v9 = vld [vmem:[%s939_s16] sm:$0xff]  ;;  %s3774_s16 = sshll.u32 %s3901_s14, 4  ;;  %s3775_s16 = int_to_ptr.vmem [resolvable:$false] %s3774_s16 }
 0x464   : > { %v1429_v11 = vmul.f32 1.442695, %v1428_v10  ;;  %3050 = vmatprep.subr.bf16.mxu1 %v3893_v0  ;;  %v1683_v10 = vpack.c.bf16 %v1682_v9, %v1682_v9  ;;  %s3776_s8 = scalar_lea.vmem %s3775_s16, 256 }
 0x466   : > { %3378 = vpow2.f32 %v1429_v11  ;;  %v3362_v11 = vld [vmem:[#allocation15] sm:$0xff]  }
 0x467   : > { %3051 = vmatpush3.bf16.msra.mxu1 %v3359_v55 }
 0x468   : > { %v3377_v12 = vpop.eup %3376  ;;  %3064 = vmatprep.subr.bf16.mxu1 %v3893_v0 }
 0x469   : > { %v1546_v13 = vpop.xlane.xlu0 %1545  ;;  %v1311_v14 = vsel %vm1144_vm2, %v3377_v12, 0.0 }
 0x46a   : > { %v1547_v15 = vsub.f32 %v1538_v58, %v1546_v13  ;;  %1312 = vadd.xlane.f32.xlu0 %v1311_v14  ;;  %v2861_v13 = vld [vmem:[#allocation14] ss:$0 sm:$0xff] }
 0x46c   : > { %v1548_v16 = vmul.f32 1.442695, %v1547_v15 }
 0x46e   : > { %3380 = vpow2.f32 %v1548_v16 }
 0x470   : > { %v3379_v17 = vpop.eup %3378 }
 0x471   : > { %v1431_v18 = vsel %vm1144_vm2, %v3379_v17, 0.0 }
 0x472   : > { %1432 = vadd.xlane.f32.xlu1 %v1431_v18 }
 0x478   : > { %v3381_v19 = vpop.eup %3380 }
 0x479   : > { %v1550_v20 = vsel %vm1144_vm2, %v3381_v19, 0.0 }
 0x47a   : > { %1551 = vadd.xlane.f32.xlu0 %v1550_v20 }
 0x483   : > { %1556 = vrot.lane.b32.xlu1 %v1143_v45, %s3897_s11 }
 0x485   : > { %v1199_v21 = vpop.xlane.xlu1 %1198 }
 0x486   : > { %3382 = vrcp.f32 %v1199_v21  ;;  %v2869_v21 = vld [vmem:[#allocation18] ss:$0 sm:$0xff] }
 0x489   : > { %v1319_v23 = vpop.permute.xlu1 %1318 }
 0x48a   : > { %v1324_v26 = vsel %vm1206_vm3, %v1319_v23, 0 }
 0x490   : > { %v3383_v22 = vpop.eup %3382  ;;  %1437 = vrot.lane.b32.xlu0 %v1143_v45, %s3895_s2 }
 0x491   : > { %v1201_v24 = vmul.f32 %v3383_v22, %v3375_v3 }
 0x493   : > { %v1202_v25 = vpack.c.bf16 %v1201_v24, %v1201_v24 }
 0x495   : > { %3009 = vmatmul.mubr.msk.bf16.vlgmr.msra.gmra.mrb[8].mxu0 %vm1144_vm2, %v1202_v25 }
 0x496   : > { %3019 = vmatpush3.bf16.msra.mxu0 %v1324_v26  ;;  %3020 = vmatprep.mubr.msk.bf16.mxu0 %vm3894_vm0, %v3893_v0 }
 0x497   : > { %3030 = vmatprep.subr.bf16.mxu0 %v3893_v0 }
 0x4f7   : > { %v1313_v27 = vpop.xlane.xlu0 %1312 }
 0x4f8   : > { %3384 = vrcp.f32 %v1313_v27 }
 0x4ff   : > { %v1433_v28 = vpop.xlane.xlu1 %1432 }
 0x500   : > { %3386 = vrcp.f32 %v1433_v28  ;;  %v2865_v28 = vld [vmem:[#allocation17] ss:$0 sm:$0xff] }
 0x502   : > { %v3385_v29 = vpop.eup %3384 }
 0x503   : > { %v1315_v30 = vmul.f32 %v3385_v29, %v3377_v12  ;;  %v1557_v37 = vpop.permute.xlu1 %1556  ;;  %v3363_v12 = vld [vmem:[#allocation15 + $0x8] sm:$0xff]  }
 0x504   : > { %v1562_v39 = vsel %vm1206_vm3, %v1557_v37, 0  ;;  %v3364_v37 = vld [vmem:[#allocation20] sm:$0xff]  }
 0x505   : > { %v1316_v31 = vpack.c.bf16 %v1315_v30, %v1315_v30 }
 0x507   : > { %v1552_v32 = vpop.xlane.xlu0 %1551  ;;  %3021 = vmatmul.mubr.msk.bf16.vlgmr.msra.gmra.mrb[12].mxu0 %vm1144_vm2, %v1316_v31 }
 0x508   : > { %3388 = vrcp.f32 %v1552_v32  ;;  %3032 = vmatprep.mubr.msk.bf16.mxu0 %vm3894_vm0, %v3893_v0 }
 0x50a   : > { %v3387_v33 = vpop.eup %3386 }
 0x50b   : > { %v1435_v34 = vmul.f32 %v3387_v33, %v3379_v17  ;;  %v1438_v35 = vpop.permute.xlu0 %1437 }
 0x50c   : > { %v1443_v36 = vsel %vm1206_vm3, %v1438_v35, 0 }
 0x50d   : > { %3031 = vmatpush3.bf16.msra.mxu0 %v1443_v36  ;;  %v1436_v38 = vpack.c.bf16 %v1435_v34, %v1435_v34 }
 0x50e   : > { %3042 = vmatprep.subr.bf16.mxu0 %v3893_v0 }
 0x510   : > { %3033 = vmatmul.mubr.msk.bf16.vlgmr.msra.gmra.mrb[16].mxu0 %vm1144_vm2, %v1436_v38  ;;  %v3365_v38 = vld [vmem:[#allocation20 + $0x8] sm:$0xff]  }
 0x511   : > { %3043 = vmatpush3.bf16.msra.mxu0 %v1562_v39  ;;  %3044 = vmatprep.mubr.msk.bf16.mxu0 %vm3894_vm0, %v3893_v0 }
 0x512   : > { %v3389_v40 = vpop.eup %3388  ;;  %3056 = vmatprep.subr.bf16.mxu0 %v3893_v0 }
 0x513   : > { %v1554_v41 = vmul.f32 %v3389_v40, %v3381_v19 }
 0x515   : > { %v1555_v42 = vpack.c.bf16 %v1554_v41, %v1554_v41 }
 0x518   : > { %3045 = vmatmul.mubr.msk.bf16.vlgmr.msra.gmra.mrb[20].mxu0 %vm1144_vm2, %v1555_v42 }
 0x519   : > { %3060 = vmatprep.mubr.msk.bf16.mxu0 %vm3894_vm0, %v3893_v0  ;;  %3057 = vmatpush3.bf16.msra.mxu0 %v3362_v11 }
 0x51a   : > { %3058 = vmatprep.subr.bf16.mxu0 %v3893_v0 }
 0x51d   : > { %3059 = vmatpush3.bf16.msra.mxu0 %v3363_v12 }
 0x51e   : > { %3072 = vmatprep.subr.bf16.mxu0 %v3893_v0 }
 0x568   : > { %v1244_v43 = vpop.f32.mrb[8].mxu0 }
 0x569   : > { %v1250_v44 = vpack.c.bf16 %v1244_v43, %v1244_v43  ;;  %v3010_v45 = vpop.f32.mrb[9].mxu0 }
 0x56a   : > { %v1247_v46 = vpop.f32.mrb[10].mxu0 }
 0x56b   : > { %1252 = vst.msk [vmem:[#allocation2] sm:$0xf] %vm1251_vm4, %v1250_v44  ;;  %v3011_v47 = vpop.f32.mrb[11].mxu0 }
 0x5da   : > { %v1360_v48 = vpop.f32.mrb[12].mxu0 }
 0x5db   : > { %v2906_v49 = vpack.c.bf16 %v1360_v48, %v1360_v48  ;;  %v3022_v50 = vpop.f32.mrb[13].mxu0 }
 0x5dc   : > { %v1363_v51 = vpop.f32.mrb[14].mxu0 }
 0x5dd   : > { %1370 = vrot.lane.b32.xlu1 %v2906_v49, %s3898_s5  ;;  %v3023_v52 = vpop.f32.mrb[15].mxu0  ;;  %v2873_v51 = vld [vmem:[#allocation21] ss:$0 sm:$0xff] }
 0x5e3   : > { %v1479_v54 = vpop.f32.mrb[16].mxu0 }
 0x5e4   : > { %v2907_v56 = vpack.c.bf16 %v1479_v54, %v1479_v54  ;;  %v3034_v57 = vpop.f32.mrb[17].mxu0 }
 0x5e5   : > { %v1482_v58 = vpop.f32.mrb[18].mxu0 }
 0x5e6   : > { %1489 = vrot.lane.b32.xlu0 %v2907_v56, %s3899_s7  ;;  %v3035_v59 = vpop.f32.mrb[19].mxu0 }
 0x5eb   : > { %v1598_v60 = vpop.f32.mrb[20].mxu0 }
 0x5ec   : > { %v2908_v61 = vpack.c.bf16 %v1598_v60, %v1598_v60  ;;  %v3046_v62 = vpop.f32.mrb[21].mxu0 }
 0x5ed   : > { %v1601_v63 = vpop.f32.mrb[22].mxu0 }
 0x5ee   : > { %1608 = vrot.lane.b32.xlu1 %v2908_v61, %s3900_s0  ;;  %v3047_v1 = vpop.f32.mrb[23].mxu0 }
 0x64f   : > { %v1371_v2 = vpop.permute.xlu1 %1370 }
 0x650   : > { %1374 = vst.msk [vmem:[#allocation2] sm:$0xf] %vm1373_vm5, %v1371_v2 }
 0x658   : > { %v1490_v3 = vpop.permute.xlu0 %1489 }
 0x659   : > { %1493 = vst.msk [vmem:[#allocation2] sm:$0xf] %vm1492_vm6, %v1490_v3 }
 0x660   : > { %v1609_v4 = vpop.permute.xlu1 %1608 }
 0x661   : > { %1612 = vst.msk [vmem:[#allocation2] sm:$0xf] %vm1611_vm7, %v1609_v4 }
 0x668   : > { %v1613_v7 = vld [vmem:[#allocation2] sm:$0xf] }
 0x669   : > { %3053 = vmatmul.mubr.msk.bf16.vlgmr.msra.gmra.mrb[20].mxu1 %vm968_vm1, %v1613_v7 }
 0x66a   : > { %3065 = vmatpush3.bf16.msra.mxu1 %v3360_v5  ;;  %3068 = vmatprep.mubr.msk.bf16.mxu1 %vm3894_vm0, %v3893_v0 }
 0x66b   : > { %3066 = vmatprep.subr.bf16.mxu1 %v3893_v0 }
 0x66e   : > { %3067 = vmatpush3.bf16.msra.mxu1 %v3361_v8 }
 0x66f   : > { %3080 = vmatprep.subr.bf16.mxu1 %v3893_v0 }
 0x671   : > { %3069 = vmatmul.mubr.msk.bf16.vlgmr.msra.gmra.mrb[24].mxu1 %vm968_vm1, %v1683_v10 }
 0x672   : > { %3082 = vmatprep.mubr.msk.bf16.mxu1 %vm3894_vm0, %v3893_v0 }
 0x73c   : > { %v1674_v14 = vpop.f32.mrb[20].mxu1 }
 0x73d   : > { %v1675_v15 = vadd.f32 %v2861_v13, %v1674_v14  ;;  %v3054_v16 = vpop.f32.mrb[21].mxu1 }
 0x73e   : > { %v1677_v17 = vpop.f32.mrb[22].mxu1 }
 0x73f   : > { %v4530_v18 = vadd.f32 %v1675_v15, %v4420_v6  ;;  %v3055_v19 = vpop.f32.mrb[23].mxu1 }
 0x741   : > { %v1681_v20 = vpack.c.bf16 %v4530_v18, %v4530_v18 }
 0x743   : > { %3061 = vmatmul.mubr.msk.bf16.vlgmr.msra.gmra.mrb[24].mxu0 %vm968_vm1, %v1681_v20 }
 0x744   : > { %v1811_v22 = vpop.f32.mrb[24].mxu1  ;;  %3076 = vmatprep.mubr.msk.bf16.mxu0 %vm3894_vm0, %v3893_v0  ;;  %3073 = vmatpush3.bf16.msra.mxu0 %v3364_v37 }
 0x745   : > { %v1812_v23 = vadd.f32 %v2869_v21, %v1811_v22  ;;  %v3070_v24 = vpop.f32.mrb[25].mxu1  ;;  %3074 = vmatprep.subr.bf16.mxu0 %v3893_v0 }
 0x746   : > { %v1814_v25 = vpop.f32.mrb[26].mxu1 }
 0x747   : > { %v1817_v26 = vpack.c.bf16 %v1812_v23, %v1812_v23  ;;  %v3071_v27 = vpop.f32.mrb[27].mxu1 }
 0x748   : > { %3075 = vmatpush3.bf16.msra.mxu0 %v3365_v38 }
 0x749   : > { %1992 = vrot.lane.b32.xlu0 %v1817_v26, %s3896_s22  ;;  %v1886_v6 = vsel %vm1144_vm2, %v1817_v26, 0  ;;  %3086 = vmatprep.subr.bf16.mxu0 %v3893_v0 }
 0x74a   : > { %3081 = vmatpush3.bf16.xpose.msra.mxu1 %v1886_v6 }
 0x74b   : > { %3092 = vmatprep.subr.bf16.mxu1 %v3893_v0  ;;  %3077 = vmatmul.mubr.msk.bf16.vlgmr.msra.gmra.mrb[28].mxu0 %vm968_vm1, %v1683_v10 }
 0x74c   : > { %3088 = vmatprep.mubr.msk.bf16.mxu0 %vm3894_vm0, %v3893_v0 }
 0x74d   : > { %2111 = vrot.lane.b32.xlu0 %v1817_v26, %s3895_s2 }
 0x751   : > { %2229 = vrot.lane.b32.xlu0 %v1817_v26, %s3897_s11 }
 0x7bb   : > { %v1993_v33 = vpop.permute.xlu0 %1992 }
 0x7bc   : > { %v1998_v36 = vsel %vm1144_vm2, %v1993_v33, 0 }
 0x7bf   : > { %v2112_v39 = vpop.permute.xlu0 %2111 }
 0x7c0   : > { %v2117_v41 = vsel %vm1144_vm2, %v2112_v39, 0 }
 0x7c3   : > { %v2230_v42 = vpop.permute.xlu0 %2229 }
 0x7c4   : > { %v2235_v44 = vsel %vm1144_vm2, %v2230_v42, 0 }
 0x816   : > { %v1744_v29 = vpop.f32.mrb[24].mxu0 }
 0x817   : > { %v1745_v30 = vadd.f32 %v2865_v28, %v1744_v29  ;;  %v3062_v31 = vpop.f32.mrb[25].mxu0 }
 0x818   : > { %v1747_v32 = vpop.f32.mrb[26].mxu0 }
 0x819   : > { %v1750_v34 = vpack.c.bf16 %v1745_v30, %v1745_v30  ;;  %v3063_v35 = vpop.f32.mrb[27].mxu0 }
 0x81b   : > { %1989 = vrot.lane.b32.xlu1 %v1750_v34, %s3896_s22  ;;  %3083 = vmatmul.mubr.msk.bf16.vlgmr.msra.gmra.mrb[28].mxu1 %vm1144_vm2, %v1750_v34 }
 0x81c   : > { %3093 = vmatpush3.bf16.xpose.msra.mxu1 %v1998_v36  ;;  %3094 = vmatprep.mubr.msk.bf16.mxu1 %vm3894_vm0, %v3893_v0 }
 0x81d   : > { %3104 = vmatprep.subr.bf16.mxu1 %v3893_v0 }
 0x81e   : > { %v1875_v52 = vpop.f32.mrb[28].mxu0 }
 0x81f   : > { %2109 = vrot.lane.b32.xlu1 %v1750_v34, %s3895_s2  ;;  %v1876_v53 = vadd.f32 %v2873_v51, %v1875_v52  ;;  %v3078_v54 = vpop.f32.mrb[29].mxu0 }
 0x820   : > { %v1878_v55 = vpop.f32.mrb[30].mxu0 }
 0x821   : > { %v1881_v56 = vpack.c.bf16 %v1876_v53, %v1876_v53  ;;  %v3079_v57 = vpop.f32.mrb[31].mxu0 }
 0x823   : > { %2227 = vrot.lane.b32.xlu1 %v1750_v34, %s3897_s11  ;;  %v1944_v58 = vsel %vm1206_vm3, %v1881_v56, 0 }
 0x824   : > { %3087 = vmatpush3.bf16.msra.mxu0 %v1944_v58 }
 0x825   : > { %3098 = vmatprep.subr.bf16.mxu0 %v3893_v0 }
 0x88d   : > { %v1990_v40 = vpop.permute.xlu1 %1989 }
 0x88e   : > { %3095 = vmatmul.mubr.msk.bf16.vlgmr.msra.gmra.mrb[32].mxu1 %vm1144_vm2, %v1990_v40 }
 0x88f   : > { %3105 = vmatpush3.bf16.xpose.msra.mxu1 %v2117_v41  ;;  %3106 = vmatprep.mubr.msk.bf16.mxu1 %vm3894_vm0, %v3893_v0 }
 0x890   : > { %3116 = vmatprep.subr.bf16.mxu1 %v3893_v0 }
 0x891   : > { %v2110_v43 = vpop.permute.xlu1 %2109 }
 0x895   : > { %v2228_v45 = vpop.permute.xlu1 %2227 }
 0x896   : > { %3107 = vmatmul.mubr.msk.bf16.vlgmr.msra.gmra.mrb[36].mxu1 %vm1144_vm2, %v2110_v43 }
 0x897   : > { %3117 = vmatpush3.bf16.xpose.msra.mxu1 %v2235_v44  ;;  %3118 = vmatprep.mubr.msk.bf16.mxu1 %vm3894_vm0, %v3893_v0 }
 0x898   : > { %3128 = vmatprep.subr.bf16.mxu1 %v3893_v0 }
 0x89e   : > { %3119 = vmatmul.mubr.msk.bf16.vlgmr.msra.gmra.mrb[40].mxu1 %vm1144_vm2, %v2228_v45 }
 0x89f   : > { %3132 = vmatprep.mubr.msk.bf16.mxu1 %vm3894_vm0, %v3893_v0 }
 0x8ee   : > { %v1922_v46 = vpop.f32.mrb[28].mxu1 }
 0x8ef   : > { %v3084_v47 = vpop.f32.mrb[29].mxu1  ;;  %v1928_v48 = vsel %vm1144_vm2, %v1922_v46, -inf }
 0x8f0   : > { %1929 = vmax.xlane.f32.xlu0 %v1928_v48  ;;  %v1925_v49 = vpop.f32.mrb[30].mxu1 }
 0x8f1   : > { %v3085_v50 = vpop.f32.mrb[31].mxu1 }
 0x961   : > { %v2034_v59 = vpop.f32.mrb[32].mxu1 }
 0x962   : > { %v3096_v60 = vpop.f32.mrb[33].mxu1  ;;  %v2040_v61 = vsel %vm1144_vm2, %v2034_v59, -inf }
 0x963   : > { %2041 = vmax.xlane.f32.xlu1 %v2040_v61  ;;  %v2037_v62 = vpop.f32.mrb[34].mxu1 }
 0x964   : > { %v3097_v63 = vpop.f32.mrb[35].mxu1 }
 0x969   : > { %v2153_v1 = vpop.f32.mrb[36].mxu1 }
 0x96a   : > { %v3108_v2 = vpop.f32.mrb[37].mxu1  ;;  %v2159_v3 = vsel %vm1144_vm2, %v2153_v1, -inf }
 0x96b   : > { %2160 = vmax.xlane.f32.xlu0 %v2159_v3  ;;  %v2156_v4 = vpop.f32.mrb[38].mxu1  ;;  %v3367_v3 = vld [vmem:[%s4714_s17 + $0x8] sm:$0xff]  }
 0x96c   : > { %v3109_v5 = vpop.f32.mrb[39].mxu1 }
 0x971   : > { %v2271_v7 = vpop.f32.mrb[40].mxu1 }
 0x972   : > { %v3120_v8 = vpop.f32.mrb[41].mxu1  ;;  %v2277_v9 = vsel %vm1144_vm2, %v2271_v7, -inf }
 0x973   : > { %2278 = vmax.xlane.f32.xlu0 %v2277_v9  ;;  %v2274_v10 = vpop.f32.mrb[42].mxu1 }
 0x974   : > { %v3121_v11 = vpop.f32.mrb[43].mxu1 }
 0x97d   : > { %v1930_v12 = vpop.xlane.xlu0 %1929 }
 0x97e   : > { %v1931_v13 = vsub.f32 %v1922_v46, %v1930_v12 }
 0x980   : > { %v1932_v14 = vmul.f32 1.442695, %v1931_v13 }
 0x982   : > { %3390 = vpow2.f32 %v1932_v14 }
 0x98c   : > { %v3391_v15 = vpop.eup %3390 }
 0x98d   : > { %v1934_v16 = vsel %vm1144_vm2, %v3391_v15, 0.0 }
 0x98e   : > { %1935 = vadd.xlane.f32.xlu1 %v1934_v16 }
 0x99f   : > { %2053 = vrot.lane.b32.xlu1 %v1881_v56, %s3896_s22 }
 0x9f0   : > { %v2042_v17 = vpop.xlane.xlu1 %2041 }
 0x9f1   : > { %v2043_v19 = vsub.f32 %v2034_v59, %v2042_v17 }
 0x9f3   : > { %v2044_v20 = vmul.f32 1.442695, %v2043_v19  ;;  %v3368_v19 = vld [vmem:[#allocation23] sm:$0xff]  }
 0x9f5   : > { %3392 = vpow2.f32 %v2044_v20  ;;  %v3369_v20 = vld [vmem:[#allocation23 + $0x8] sm:$0xff]  }
 0x9f8   : > { %v2161_v21 = vpop.xlane.xlu0 %2160 }
 0x9f9   : > { %v2162_v22 = vsub.f32 %v2153_v1, %v2161_v21  ;;  %v3366_v1 = vld [vmem:[%s4714_s17] sm:$0xff]  }
 0x9fa   : > { %3129 = vmatpush3.bf16.msra.mxu1 %v3366_v1  ;;  %v3370_v21 = vld [vmem:[%s4718_s21] sm:$0xff]  }
 0x9fb   : > { %v2163_v23 = vmul.f32 1.442695, %v2162_v22  ;;  %3130 = vmatprep.subr.bf16.mxu1 %v3893_v0  ;;  %v3371_v22 = vld [vmem:[%s4718_s21 + $0x8] sm:$0xff]  }
 0x9fd   : > { %3394 = vpow2.f32 %v2163_v23 }
 0x9fe   : > { %3131 = vmatpush3.bf16.msra.mxu1 %v3367_v3 }
 0x9ff   : > { %v3393_v24 = vpop.eup %3392  ;;  %3144 = vmatprep.subr.bf16.mxu1 %v3893_v0 }
 0xa00   : > { %v2279_v25 = vpop.xlane.xlu0 %2278  ;;  %v2046_v26 = vsel %vm1144_vm2, %v3393_v24, 0.0 }
 0xa01   : > { %v2280_v27 = vsub.f32 %v2271_v7, %v2279_v25  ;;  %2047 = vadd.xlane.f32.xlu0 %v2046_v26 }
 0xa03   : > { %v2281_v6 = vmul.f32 1.442695, %v2280_v27 }
 0xa05   : > { %3396 = vpow2.f32 %v2281_v6 }
 0xa07   : > { %v3395_v28 = vpop.eup %3394 }
 0xa08   : > { %v2165_v29 = vsel %vm1144_vm2, %v3395_v28, 0.0 }
 0xa09   : > { %2166 = vadd.xlane.f32.xlu1 %v2165_v29 }
 0xa0f   : > { %v3397_v30 = vpop.eup %3396 }
 0xa10   : > { %v2283_v31 = vsel %vm1144_vm2, %v3397_v30, 0.0 }
 0xa11   : > { %2284 = vadd.xlane.f32.xlu0 %v2283_v31  ;;  %v3373_v31 = vld [vmem:[%s4718_s21 + $0x18] sm:$0xff]  }
 0xa1a   : > { %2289 = vrot.lane.b32.xlu1 %v1881_v56, %s3897_s11 }
 0xa1b   : > { %v1936_v32 = vpop.xlane.xlu1 %1935 }
 0xa1c   : > { %3398 = vrcp.f32 %v1936_v32 }
 0xa1f   : > { %v2054_v34 = vpop.permute.xlu1 %2053 }
 0xa20   : > { %v2059_v37 = vsel %vm1206_vm3, %v2054_v34, 0 }
 0xa26   : > { %v3399_v33 = vpop.eup %3398 }
 0xa27   : > { %v1938_v35 = vmul.f32 %v3399_v33, %v3391_v15  ;;  %2171 = vrot.lane.b32.xlu0 %v1881_v56, %s3895_s2  ;;  %s2834_s2 = sshll.u32 %s922_s27, 3 }
 0xa28   : > { %s924_s30 = scalar_lea.vmem [#allocation24], %s2834_s2 }
 0xa29   : > { %v1939_v36 = vpack.c.bf16 %v1938_v35, %v1938_v35  ;;  %s2582_s26 = sshll.u32 %s924_s30, 4  ;;  %s4651_s26 = int_to_ptr.vmem [resolvable:$true] %s2582_s26 }
 0xa2a   : > { %s3770_s28 = scalar_lea.vmem %s4651_s26, 128  ;;  %p3777_p11 = scmp.lt.s32.totalorder %s4651_s26, %s3775_s16 }
 0xa2b   : > { %3089 = vmatmul.mubr.msk.bf16.vlgmr.msra.gmra.mrb[32].mxu0 %vm1144_vm2, %v1939_v36  ;;  %p3771_p2 = scmp.ne.s32.totalorder %s4651_s26, %s3770_s28  ;;  %p3778_p3 = scmp.lt.s32.totalorder %s3776_s8, %s3770_s28 }
 0xa2c   : > { %3099 = vmatpush3.bf16.msra.mxu0 %v2059_v37  ;;  %3100 = vmatprep.mubr.msk.bf16.mxu0 %vm3894_vm0, %v3893_v0 }
 0xa2d   : > { %3110 = vmatprep.subr.bf16.mxu0 %v3893_v0  ;;  %p3772_p8 = pnand %p3771_p2, %p4803_p4  ;;  %p3779_p5 = por %p3778_p3, %p3777_p11 }
 0xa2f   : > { %p3773_p10 = pneg %p3772_p8 }
 0xa31   : > { %p3780_p6 = pnand %p3779_p5, %p3773_p10 }
 0xa8e   : > { %v2048_v38 = vpop.xlane.xlu0 %2047 }
 0xa8f   : > { %3400 = vrcp.f32 %v2048_v38 }
 0xa96   : > { %v2167_v39 = vpop.xlane.xlu1 %2166 }
 0xa97   : > { %3402 = vrcp.f32 %v2167_v39 }
 0xa99   : > { %v3401_v40 = vpop.eup %3400 }
 0xa9a   : > { %v2050_v41 = vmul.f32 %v3401_v40, %v3393_v24  ;;  %v2290_v48 = vpop.permute.xlu1 %2289 }
 0xa9b   : > { %v2295_v50 = vsel %vm1206_vm3, %v2290_v48, 0 }
 0xa9c   : > { %v2051_v42 = vpack.c.bf16 %v2050_v41, %v2050_v41 }
 0xa9e   : > { %v2285_v43 = vpop.xlane.xlu0 %2284  ;;  %3101 = vmatmul.mubr.msk.bf16.vlgmr.msra.gmra.mrb[36].mxu0 %vm1144_vm2, %v2051_v42 }
 0xa9f   : > { %3404 = vrcp.f32 %v2285_v43  ;;  %3112 = vmatprep.mubr.msk.bf16.mxu0 %vm3894_vm0, %v3893_v0 }
 0xaa1   : > { %v3403_v44 = vpop.eup %3402 }
 0xaa2   : > { %v2169_v45 = vmul.f32 %v3403_v44, %v3395_v28  ;;  %v2172_v46 = vpop.permute.xlu0 %2171 }
 0xaa3   : > { %v2177_v47 = vsel %vm1206_vm3, %v2172_v46, 0 }
 0xaa4   : > { %3111 = vmatpush3.bf16.msra.mxu0 %v2177_v47  ;;  %v2170_v49 = vpack.c.bf16 %v2169_v45, %v2169_v45 }
 0xaa5   : > { %3122 = vmatprep.subr.bf16.mxu0 %v3893_v0 }
 0xaa7   : > { %3113 = vmatmul.mubr.msk.bf16.vlgmr.msra.gmra.mrb[40].mxu0 %vm1144_vm2, %v2170_v49 }
 0xaa8   : > { %3123 = vmatpush3.bf16.msra.mxu0 %v2295_v50  ;;  %3124 = vmatprep.mubr.msk.bf16.mxu0 %vm3894_vm0, %v3893_v0 }
 0xaa9   : > { %v3405_v51 = vpop.eup %3404  ;;  %3136 = vmatprep.subr.bf16.mxu0 %v3893_v0 }
 0xaaa   : > { %v2287_v52 = vmul.f32 %v3405_v51, %v3397_v30  ;;  %v3372_v30 = vld [vmem:[%s4718_s21 + $0x10] sm:$0xff]  }
 0xaac   : > { %v2288_v53 = vpack.c.bf16 %v2287_v52, %v2287_v52 }
 0xaaf   : > { %3125 = vmatmul.mubr.msk.bf16.vlgmr.msra.gmra.mrb[44].mxu0 %vm1144_vm2, %v2288_v53 }
 0xab0   : > { %3140 = vmatprep.mubr.msk.bf16.mxu0 %vm3894_vm0, %v3893_v0  ;;  %3137 = vmatpush3.bf16.msra.mxu0 %v3368_v19 }
 0xab1   : > { %3138 = vmatprep.subr.bf16.mxu0 %v3893_v0 }
 0xab4   : > { %3139 = vmatpush3.bf16.msra.mxu0 %v3369_v20 }
 0xafe   : > { %v1980_v54 = vpop.f32.mrb[32].mxu0 }
 0xaff   : > { %v1986_v55 = vpack.c.bf16 %v1980_v54, %v1980_v54  ;;  %v3090_v56 = vpop.f32.mrb[33].mxu0 }
 0xb00   : > { %v1983_v57 = vpop.f32.mrb[34].mxu0 }
 0xb01   : > { %1987 = vst.msk [vmem:[#allocation2] sm:$0xf] %vm1251_vm4, %v1986_v55  ;;  %v3091_v58 = vpop.f32.mrb[35].mxu0 }
 0xb71   : > { %v2095_v59 = vpop.f32.mrb[36].mxu0 }
 0xb72   : > { %v2909_v60 = vpack.c.bf16 %v2095_v59, %v2095_v59  ;;  %v3102_v61 = vpop.f32.mrb[37].mxu0 }
 0xb73   : > { %v2098_v62 = vpop.f32.mrb[38].mxu0 }
 0xb74   : > { %2105 = vrot.lane.b32.xlu1 %v2909_v60, %s3898_s5  ;;  %v3103_v63 = vpop.f32.mrb[39].mxu0  ;;  %s4799_s5 = sld [smem:[#allocation56_spill]] }
 0xb7a   : > { %v2213_v2 = vpop.f32.mrb[40].mxu0 }
 0xb7b   : > { %v2910_v4 = vpack.c.bf16 %v2213_v2, %v2213_v2  ;;  %v3114_v5 = vpop.f32.mrb[41].mxu0 }
 0xb7c   : > { %v2216_v7 = vpop.f32.mrb[42].mxu0 }
 0xb7d   : > { %2223 = vrot.lane.b32.xlu0 %v2910_v4, %s3899_s7  ;;  %v3115_v8 = vpop.f32.mrb[43].mxu0 }
 0xb82   : > { %v2331_v9 = vpop.f32.mrb[44].mxu0 }
 0xb83   : > { %v2911_v10 = vpack.c.bf16 %v2331_v9, %v2331_v9  ;;  %v3126_v11 = vpop.f32.mrb[45].mxu0 }
 0xb84   : > { %v2334_v12 = vpop.f32.mrb[46].mxu0 }
 0xb85   : > { %2341 = vrot.lane.b32.xlu1 %v2911_v10, %s3900_s0  ;;  %v3127_v13 = vpop.f32.mrb[47].mxu0  ;;  %s4796_s0 = sld [smem:[#allocation54_spill]] }
 0xb8b   : > { %v2888_v23 = vld [vmem:[%s4796_s0] ss:$0 sm:$0xff] }
 0xbe6   : > { %v2106_v14 = vpop.permute.xlu1 %2105 }
 0xbe7   : > { %2108 = vst.msk [vmem:[#allocation2] sm:$0xf] %vm1373_vm5, %v2106_v14 }
 0xbef   : > { %v2224_v15 = vpop.permute.xlu0 %2223 }
 0xbf0   : > { %2226 = vst.msk [vmem:[#allocation2] sm:$0xf] %vm1492_vm6, %v2224_v15 }
 0xbf7   : > { %v2342_v16 = vpop.permute.xlu1 %2341 }
 0xbf8   : > { %2344 = vst.msk [vmem:[#allocation2] sm:$0xf] %vm1611_vm7, %v2342_v16 }
 0xbff   : > { %v2345_v17 = vld [vmem:[#allocation2] sm:$0xf] }
 0xc00   : > { %3133 = vmatmul.mubr.msk.bf16.vlgmr.msra.gmra.mrb[44].mxu1 %vm968_vm1, %v2345_v17 }
 0xc01   : > { %3152 = vmatprep.mubr.msk.bf16.mxu1 %vm3894_vm0, %v3893_v0  ;;  %3145 = vmatpush3.bf16.msra.mxu1 %v3370_v21 }
 0xc02   : > { %3146 = vmatprep.subr.bf16.mxu1 %v3893_v0 }
 0xc05   : > { %3147 = vmatpush3.bf16.msra.mxu1 %v3371_v22 }
 0xc06   : > { %3148 = vmatprep.subr.bf16.mxu1 %v3893_v0 }
 0xc09   : > { %3149 = vmatpush3.bf16.msra.mxu1 %v3372_v30 }
 0xc0a   : > { %3150 = vmatprep.subr.bf16.mxu1 %v3893_v0  ;;  %v2896_v0 = vld [vmem:[%s4799_s5] ss:$0 sm:$0xff] }
 0xc0d   : > { %3151 = vmatpush3.bf16.msra.mxu1 %v3373_v31 }
 0xcd3   : > { %v2406_v24 = vpop.f32.mrb[44].mxu1 }
 0xcd4   : > { %v2407_v25 = vadd.f32 %v2888_v23, %v2406_v24  ;;  %v3134_v26 = vpop.f32.mrb[45].mxu1 }
 0xcd5   : > { %v2409_v27 = vpop.f32.mrb[46].mxu1 }
 0xcd6   : > { %v2412_v6 = vadd.f32 %v2407_v25, %v4530_v18  ;;  %v3135_v28 = vpop.f32.mrb[47].mxu1  ;;  %v2892_v18 = vld [vmem:[%s4798_s24] ss:$0 sm:$0xff] }
 0xcd8   : > { %v2413_v29 = vpack.c.bf16 %v2412_v6, %v2412_v6 }
 0xcda   : > { %3141 = vmatmul.mubr.msk.bf16.vlgmr.msra.gmra.mrb[48].mxu0 %vm968_vm1, %v2413_v29 }
 0xdad   : > { %v2474_v32 = vpop.f32.mrb[48].mxu0 }
 0xdae   : > { %v2475_v33 = vadd.f32 %v2892_v18, %v2474_v32  ;;  %v3142_v34 = vpop.f32.mrb[49].mxu0 }
 0xdaf   : > { %v2477_v35 = vpop.f32.mrb[50].mxu0 }
 0xdb0   : > { %v2480_v36 = vmax.f32 %v2475_v33, 0.0  ;;  %v3143_v37 = vpop.f32.mrb[51].mxu0 }
 0xdb2   : > { %v2481_v38 = vpack.c.bf16 %v2480_v36, %v2480_v36 }
 0xdb4   : > { %3153 = vmatmul.mubr.msk.bf16.vlgmr.msra.gmra.mrb[48].mxu1 %vm2521_vm8, %v2481_v38 }
 0xe87   : > { %v2559_v39 = vpop.f32.mrb[48].mxu1 }
 0xe88   : > { %v2560_v40 = vadd.f32 %v2896_v0, %v2559_v39  ;;  %v3154_v41 = vpop.f32.mrb[49].mxu1 }
 0xe89   : > { %v2562_v42 = vpop.f32.mrb[50].mxu1 }
 0xe8a   : > { %v2565_v43 = vadd.f32 %v2560_v40, %v2412_v6  ;;  %v3155_v44 = vpop.f32.mrb[51].mxu1 }
 0xe8c   : > { %2566 = vst.msk [vmem:[%s924_s30] sm:$0xff] %vm968_vm1, %v2565_v43 }
 0xe8d   : > { %3783 = shalt.err (!%p3780_p6)
}
 0xe8e   : > { %s3784_s24 = scalar_lea.hbm %s4649_s29, 128  ;;  %s3788_s22 = scalar_lea.hbm %s4802_s6, 256 }
 0xe8f   : > { %p3785_p7 = scmp.ne.s32.totalorder %s4649_s29, %s3784_s24  ;;  %p3789_p0 = scmp.lt.u32.totalorder %s4649_s29, %s4802_s6 }
 0xe90   : > { %p3790_p1 = scmp.lt.u32.totalorder %s3788_s22, %s3784_s24  ;;  %p3792_p2 = scmp.lt.u32.totalorder %s3784_s24, %s4649_s29 }
 0xe91   : > { %p3786_p9 = pnand %p3785_p7, %p4803_p4 }
 0xe92   : > { %p3791_p13 = por %p3790_p1, %p3789_p0 }
 0xe93   : > { %p3787_p12 = pneg %p3786_p9 }
 0xe94   : > { %p3793_p8 = por %p3792_p2, %p3791_p13 }
 0xe96   : > { %p3794_p10 = pnand %p3793_p8, %p3787_p12 }
 0xe98   : > { %3797 = shalt.err (!%p3794_p10)
}
 0xe99   : > { %3208 = dma.vmem_to_hbm [thread:$0]  (%p4803_p4), %s4651_s26, 128, %s4649_s29, %s2568_s25  }
 0xe9a PF: > { %s4804_s3 = sld [smem:[#allocation37_spill]]  ;;  %s4805_s30 = sld [smem:[#allocation33_spill]] }
 0xe9b   : > { %s4806_s7 = sld [smem:[#allocation40_spill]] }
 0xea0   : > { %p3280_p11 = scmp.ge.s32.totalorder %s4804_s3, 2  ;;  %s2594_s0 = sand.u32 1, %s4805_s30  }
 0xea1   : > { %p4807_p3 = scmp.ne.s32.totalorder %s4806_s7, 0  ;;  %s2595_s4 = scalar_lea.sflag [#allocation5], %s2594_s0 }
 0xea3   : > { %p3251_p5 = pnand %p3280_p11, %p4807_p3 }
 0xea5   : > { %3851 = dma.done.wait (!%p3251_p5), %s2595_s4, 128  }
 0xea6   : > { %3853 = vsyncadd (!%p3251_p5), %s2595_s4, 4294967168  ;;  %s43_s1 = sadd.s32 1, %s4804_s3   ;;  %s4808_s4 = sld [smem:[#allocation34_spill]] }
 0xea7   : > { %p40_p6 = scmp.ge.s32.totalorder %s43_s1, 4   ;;  %s4809_s30 = sld [smem:[#allocation35_spill]] }
 0xea8   : > { %s4810_s24 = sld [smem:[#allocation41_spill]]  ;;  %s4811_s25 = sld [smem:[#allocation36_spill]] }
 0xea9   : > { %s4812_s5 = sld [smem:[#allocation38_spill]]  ;;  %42 = sbr.rel (!%p40_p6) target bundleno = 28 (0x1c), region = 206 }
 0xeb0   :  { %2600 = vsyncpa [#allocation4], 1 }
 0xeb1   :  { %2602 = vsyncpa [#allocation4 + $0x1], 1 }
 0xeb2   :  { %2603 = vsyncpa [#allocation7], 1 }
 0xeb3   :  { %2604 = vsyncpa [#allocation10], 1 }
 0xeb4   :  { %2605 = vsyncpa [#allocation13], 1 }
 0xeb5   :  { %2606 = vsyncpa [#allocation16], 1 }
 0xeb6   :  { %2607 = vsyncpa [#allocation19], 1 }
 0xeb7   :  { %2608 = vsyncpa [#allocation22], 1 }
 0xeb8   :  { %2609 = vsyncpa [#allocation5], 1 }
 0xeb9   :  { %2611 = vsyncpa [#allocation5 + $0x1], 1 }

// kernel: tpu_custom_call.1
= control target key start
LH: loop header
LB: loop body
LE: loop exit
PB: predicated region body
PF: predicated region fallthrough
CT: control target
= control target key end

     0   :  { %s4697_s0 = inlined_call_operand.vmem [shape: f32[2,8,32], index: 0, kind: input, shape index: {}]   ;;  %s4698_s1 = inlined_call_operand.vmem [shape: f32[2,8,32], index: 1, kind: input, shape index: {}]   ;;  %s4699_s2 = inlined_call_operand.vmem [shape: f32[2,8,32], index: 2, kind: input, shape index: {}]   ;;  %s4700_s3 = inlined_call_operand.hbm [shape: bf16[32,32], index: 3, kind: input, shape index: {}]   ;;  %s4701_s4 = inlined_call_operand.hbm [shape: f32[1,32], index: 4, kind: input, shape index: {}]   ;;  %s4702_s5 = inlined_call_operand.hbm [shape: bf16[32,32], index: 5, kind: input, shape index: {}]   ;;  %s4703_s6 = inlined_call_operand.hbm [shape: f32[1,32], index: 6, kind: input, shape index: {}]   ;;  %s4704_s7 = inlined_call_operand.hbm [shape: bf16[32,32], index: 7, kind: input, shape index: {}]   ;;  %s4705_s8 = inlined_call_operand.hbm [shape: f32[1,32], index: 8, kind: input, shape index: {}]   ;;  %s4706_s9 = inlined_call_operand.vmem [shape: bf16[32,32], index: 9, kind: input, shape index: {}]   ;;  %s4707_s10 = inlined_call_operand.hbm [shape: f32[1,32], index: 10, kind: input, shape index: {}]   ;;  %s4708_s11 = inlined_call_operand.hbm [shape: bf16[32,32], index: 11, kind: input, shape index: {}]   ;;  %s4709_s12 = inlined_call_operand.hbm [shape: f32[1,32], index: 12, kind: input, shape index: {}]   ;;  %s4710_s13 = inlined_call_operand.vmem [shape: bf16[32,32], index: 13, kind: input, shape index: {}]   ;;  %s4711_s14 = inlined_call_operand.hbm [shape: f32[1,32], index: 14, kind: input, shape index: {}]   ;;  %s4712_s15 = inlined_call_operand.hbm [shape: bf16[32,32], index: 15, kind: input, shape index: {}]   ;;  %s4713_s16 = inlined_call_operand.hbm [shape: f32[1,32], index: 16, kind: input, shape index: {}]   ;;  %s4714_s17 = inlined_call_operand.vmem [shape: bf16[32,32], index: 17, kind: input, shape index: {}]   ;;  %s4715_s18 = inlined_call_operand.vmem [shape: f32[1,32], index: 18, kind: input, shape index: {}]   ;;  %s4716_s19 = inlined_call_operand.hbm [shape: bf16[32,64], index: 19, kind: input, shape index: {}]   ;;  %s4717_s20 = inlined_call_operand.vmem [shape: f32[1,64], index: 20, kind: input, shape index: {}]   ;;  %s4718_s21 = inlined_call_operand.vmem [shape: bf16[64,32], index: 21, kind: input, shape index: {}]   ;;  %s4719_s22 = inlined_call_operand.vmem [shape: f32[1,32], index: 22, kind: input, shape index: {}]   ;;  %s4720_s23 = inlined_call_operand.hbm [shape: f32[2,8,32], index: 23, kind: output, shape index: {}]  }
   0x1   :  { %4747 = sst [smem:[#allocation42_spill]] %s4697_s0 }
   0x2   :  { %4748 = sst [smem:[#allocation43_spill]] %s4698_s1 }
   0x3   :  { %4749 = sst [smem:[#allocation44_spill]] %s4699_s2 }
   0x4   :  { %4750 = sst [smem:[#allocation45_spill]] %s4700_s3 }
   0x5   :  { %4751 = sst [smem:[#allocation46_spill]] %s4701_s4 }
   0x6   :  { %4752 = sst [smem:[#allocation47_spill]] %s4702_s5 }
   0x7   :  { %4753 = sst [smem:[#allocation48_spill]] %s4703_s6 }
   0x8   :  { %4754 = sst [smem:[#allocation49_spill]] %s4704_s7 }
   0x9   :  { %4755 = sst [smem:[#allocation50_spill]] %s4705_s8 }
   0xa   :  { %4756 = sst [smem:[#allocation51_spill]] %s4708_s11 }
   0xb   :  { %4757 = sst [smem:[#allocation52_spill]] %s4711_s14 }
   0xc   :  { %4758 = sst [smem:[#allocation53_spill]] %s4713_s16 }
   0xd   :  { %4759 = sst [smem:[#allocation54_spill]] %s4715_s18 }
   0xe   :  { %4760 = sst [smem:[#allocation55_spill]] %s4717_s20 }
   0xf   :  { %4761 = sst [smem:[#allocation56_spill]] %s4719_s22 }
  0x10   :  { %4762 = sst [smem:[#allocation57_spill]] %s4720_s23 }
  0x11   :  { %28 = vsyncpa [#allocation4], 0 }
  0x12   :  { %29 = vsyncpa [#allocation7], 0 }
  0x13   :  { %30 = vsyncpa [#allocation10], 0 }
  0x14   :  { %31 = vsyncpa [#allocation13], 0 }
  0x15   :  { %32 = vsyncpa [#allocation16], 0 }
  0x16   :  { %33 = vsyncpa [#allocation19], 0 }
  0x17   :  { %34 = vsyncpa [#allocation22], 0 }
  0x18   :  { %35 = vsyncpa [#allocation5], 0 }
  0x19   :  { %37 = vsyncpa [#allocation5 + $0x1], 0  ;;  %s4022_s4 = smov 0   ;;  %s4024_s30 = smov 0  }
  0x1a   :  { %s4026_s24 = smov 0   ;;  %s4028_s25 = smov 0  }
  0x1b   :  { %s4030_s5 = smov 0   ;;  %s4032_s1 = smov 0  }
  0x1c LB: > { %4763 = sst [smem:[#allocation33_spill]] %s3856_s4  ;;  %s2803_s26 = sadd.s32 4294967295, %s3876_s1   ;;  %s3876_s1 = sphi %s4032_s1, %s43_s1   ;;  %s3872_s5 = sphi %s4030_s5, %s4812_s5   ;;  %s3868_s25 = sphi %s4028_s25, %s4811_s25   ;;  %s3864_s24 = sphi %s4026_s24, %s4810_s24   ;;  %s3860_s30 = sphi %s4024_s30, %s4809_s30   ;;  %s3856_s4 = sphi %s4022_s4, %s4808_s4  }
  0x1d   : > { %4764 = sst [smem:[#allocation34_spill]] %s3860_s30  ;;  %s2804_s2 = sadd.s32 4294967294, %s3876_s1  }
  0x1e   : > { %4765 = sst [smem:[#allocation35_spill]] %s3864_s24  ;;  %s55_s6 = sadd.s32 1, %s3872_s5 }
  0x1f   : > { %4766 = sst [smem:[#allocation36_spill]] %s3872_s5  ;;  %s564_s27 = sadd.s32 1, %s3864_s24 }
  0x20   : > { %4767 = sst [smem:[#allocation37_spill]] %s3876_s1  ;;  %p57_p0 = scmp.ge.s32.totalorder %s55_s6, 2 }
  0x21   : > { %p574_p1 = scmp.ne.s32.totalorder %s3864_s24, %s3860_s30  ;;  %p575_p2 = scmp.eq.s32.totalorder %s2803_s26, 1 }
  0x22   : > { %p580_p3 = scmp.ne.s32.totalorder %s3860_s30, %s3856_s4  ;;  %s4814_s6 = smov (%p57_p0, %s55_s6), 0 }
  0x23   : > { %4768 = sst [smem:[#allocation38_spill]] %s4814_s6  ;;  %p4062_p4 = por %p575_p2, %p574_p1 }
  0x24   : > { %p581_p5 = scmp.eq.s32.totalorder %s2804_s2, 1  ;;  %s559_s28 = ssub.s32 %s3872_s5, %s4814_s6 }
  0x25   : > { %s4769_s7 = scalar_select %p4062_p4, 1, 0 }
  0x26   : > { %p2805_p6 = scmp.ge.s32.totalorder %s3876_s1, 1  ;;  %p562_p7 = scmp.eq.s32.totalorder %s559_s28, 0 }
  0x27   : > { %4770 = sst [smem:[#allocation39_spill]] %s4769_s7  ;;  %p4069_p8 = por %p581_p5, %p580_p3 }
  0x28   : > { %p588_p9 = scmp.lt.s32.totalorder %s3876_s1, 3  ;;  %p4081_p11 = scmp.eq.s32.totalorder %s2803_s26, 0 }
  0x29   : > { %s4771_s29 = scalar_select %p4069_p8, 1, 0 }
  0x2a   : > { %s4075_s3 = scalar_select %p562_p7, %s3864_s24, %s564_s27  }
  0x2b   : > { %4772 = sst [smem:[#allocation40_spill]] %s4771_s29  ;;  %p4077_p10 = pnand %p2805_p6, %p588_p9 }
  0x2c   : > { %4773 = sst [smem:[#allocation41_spill]] %s4075_s3  ;;  %s3878_s2 = smov [#allocation6]  }
  0x2d   : > { %s4774_s0 = scalar_select %p4077_p10, 1, 0 }
  0x2e   : > { %s4775_s4 = scalar_select %p4081_p11, 1, 0 }
  0x2f   : > { %p3210_p12 = pneg %p4077_p10  ;;  %s614_s28 = sshll.u32 %s3878_s2, 4  ;;  %s615_s28 = int_to_ptr.vmem [resolvable:$true] %s614_s28 }
  0x30   : > { %s3879_s6 = smov [#allocation9]   ;;  %s3880_s26 = smov [#allocation12]  }
  0x31   : > { %s638_s5 = sshll.u32 %s3879_s6, 4  ;;  %p4089_p13 = pnand %p4081_p11, %p3210_p12  ;;  %s4093_s5 = int_to_ptr.vmem [resolvable:$true] %s638_s5 }
  0x32   : > { %s4095_s3 = sshll.u32 %s3880_s26, 4  ;;  %s4777_s1 = sld [smem:[#allocation46_spill]]  ;;  %s663_s3 = int_to_ptr.vmem [resolvable:$true] %s4095_s3 }
  0x33   : > { %p4105_p1 = pneg %p4089_p13 }
  0x38   : > { %s4778_s23 = smov %s4777_s1  ;;  %s3406_s7 = scalar_lea.hbm %s4777_s1, 16 }
  0x39   : > { %p3407_p0 = scmp.ne.s32.totalorder %s4778_s23, %s3406_s7  ;;  %p3413_p5 = scmp.lt.u32.totalorder %s3406_s7, %s4778_s23 }
  0x3b   : > { %p3409_p2 = pnand %p4105_p1, %p3407_p0 }
  0x3d   : > { %p3410_p3 = pneg %p3409_p2 }
  0x3f   : > { %p3415_p6 = pnand %p3413_p5, %p3410_p3 }
  0x41   : > { %3418 = shalt.err (!%p3415_p6)
}
  0x42   : > { %s3419_s24 = scalar_lea.vmem %s615_s28, 16  ;;  %s3426_s22 = scalar_lea.vmem %s615_s28, 32 }
  0x43   : > { %p3420_p7 = scmp.ne.s32.totalorder %s615_s28, %s3419_s24  ;;  %p3427_p8 = scmp.lt.s32.totalorder %s615_s28, %s615_s28 }
  0x44   : > { %p3428_p4 = scmp.lt.s32.totalorder %s3426_s22, %s3419_s24 }
  0x45   : > { %p3422_p9 = pnand %p3420_p7, %p4105_p1 }
  0x46   : > { %p3429_p11 = por %p3428_p4, %p3427_p8 }
  0x47   : > { %p3423_p12 = pneg %p3422_p9 }
  0x49   : > { %p3430_p10 = pnand %p3429_p11, %p3423_p12 }
  0x4b   : > { %3433 = shalt.err (!%p3430_p10)
}
  0x4c   : > { %3216 = dma.hbm_to_vmem [thread:$0]  (!%p4089_p13), %s4778_s23, 16, %s615_s28, [#allocation7]  }
  0x4d   : > { %s4780_s2 = sld [smem:[#allocation48_spill]] }
  0x53   : > { %s3434_s26 = scalar_lea.hbm %s4780_s2, 16 }
  0x54   : > { %p3435_p0 = scmp.ne.s32.totalorder %s4780_s2, %s3434_s26  ;;  %p3441_p8 = scmp.lt.u32.totalorder %s3434_s26, %s4780_s2 }
  0x56   : > { %p3437_p2 = pnand %p3435_p0, %p4105_p1 }
  0x58   : > { %p3438_p4 = pneg %p3437_p2 }
  0x5a   : > { %p3443_p10 = pnand %p3441_p8, %p3438_p4 }
  0x5c   : > { %3446 = shalt.err (!%p3443_p10)
}
  0x5d   : > { %s3447_s28 = scalar_lea.vmem %s4093_s5, 16  ;;  %s3454_s18 = scalar_lea.vmem %s4093_s5, 32 }
  0x5e   : > { %p3448_p11 = scmp.ne.s32.totalorder %s4093_s5, %s3447_s28  ;;  %p3455_p6 = scmp.lt.s32.totalorder %s4093_s5, %s4093_s5 }
  0x5f   : > { %p3456_p7 = scmp.lt.s32.totalorder %s3454_s18, %s3447_s28 }
  0x60   : > { %p3450_p3 = pnand %p3448_p11, %p4105_p1 }
  0x61   : > { %p3457_p9 = por %p3456_p7, %p3455_p6 }
  0x62   : > { %p3451_p5 = pneg %p3450_p3 }
  0x64   : > { %p3458_p12 = pnand %p3457_p9, %p3451_p5 }
  0x66   : > { %3461 = shalt.err (!%p3458_p12)
}
  0x67   : > { %3222 = dma.hbm_to_vmem [thread:$0]  (!%p4089_p13), %s4780_s2, 16, %s4093_s5, [#allocation10]  }
  0x68   : > { %s4781_s8 = sld [smem:[#allocation50_spill]] }
  0x6e   : > { %s3462_s7 = scalar_lea.hbm %s4781_s8, 16 }
  0x6f   : > { %p3463_p0 = scmp.ne.s32.totalorder %s4781_s8, %s3462_s7  ;;  %p3469_p8 = scmp.lt.u32.totalorder %s3462_s7, %s4781_s8 }
  0x71   : > { %p3465_p2 = pnand %p3463_p0, %p4105_p1 }
  0x73   : > { %p3466_p4 = pneg %p3465_p2 }
  0x75   : > { %p3471_p10 = pnand %p3469_p8, %p3466_p4 }
  0x77   : > { %3474 = shalt.err (!%p3471_p10)
}
  0x78   : > { %s3475_s18 = scalar_lea.vmem %s663_s3, 16  ;;  %s3482_s5 = scalar_lea.vmem %s663_s3, 32 }
  0x79   : > { %p3476_p11 = scmp.ne.s32.totalorder %s663_s3, %s3475_s18  ;;  %p3483_p6 = scmp.lt.s32.totalorder %s663_s3, %s663_s3 }
  0x7a   : > { %p3484_p7 = scmp.lt.s32.totalorder %s3482_s5, %s3475_s18 }
  0x7b   : > { %p3478_p3 = pnand %p3476_p11, %p4105_p1 }
  0x7c   : > { %p3485_p9 = por %p3484_p7, %p3483_p6 }
  0x7d   : > { %p3479_p5 = pneg %p3478_p3 }
  0x7f   : > { %p3486_p12 = pnand %p3485_p9, %p3479_p5 }
  0x81   : > { %3489 = shalt.err (!%p3486_p12)
}
  0x82   : > { %3228 = dma.hbm_to_vmem [thread:$0]  (!%p4089_p13), %s4781_s8, 16, %s663_s3, [#allocation13]  }
  0x83   : > { %s3881_s29 = smov [#allocation15]   ;;  %s3882_s7 = smov [#allocation18]  }
  0x84   : > { %s686_s20 = sshll.u32 %s3881_s29, 4  ;;  %s714_s26 = sshll.u32 %s3882_s7, 4  ;;  %s687_s20 = int_to_ptr.vmem [resolvable:$true] %s686_s20  ;;  %s4164_s26 = int_to_ptr.vmem [resolvable:$true] %s714_s26 }
  0x85   : > { %s4782_s11 = sld [smem:[#allocation51_spill]] }
  0x8b   : > { %s3490_s28 = scalar_lea.hbm %s4782_s11, 256 }
  0x8c   : > { %p3491_p0 = scmp.ne.s32.totalorder %s4782_s11, %s3490_s28  ;;  %p3497_p8 = scmp.lt.u32.totalorder %s3490_s28, %s4782_s11 }
  0x8e   : > { %p3493_p2 = pnand %p3491_p0, %p4105_p1 }
  0x90   : > { %p3494_p4 = pneg %p3493_p2 }
  0x92   : > { %p3499_p10 = pnand %p3497_p8, %p3494_p4 }
  0x94   : > { %3502 = shalt.err (!%p3499_p10)
}
  0x95   : > { %s3503_s1 = scalar_lea.vmem %s687_s20, 256  ;;  %p3511_p6 = scmp.lt.s32.totalorder %s687_s20, %s687_s20 }
  0x96   : > { %p3504_p11 = scmp.ne.s32.totalorder %s687_s20, %s3503_s1  ;;  %p3512_p7 = scmp.lt.s32.totalorder %s3503_s1, %s3503_s1 }
  0x98   : > { %p3506_p3 = pnand %p3504_p11, %p4105_p1  ;;  %p3513_p9 = por %p3512_p7, %p3511_p6 }
  0x9a   : > { %p3507_p5 = pneg %p3506_p3 }
  0x9c   : > { %p3514_p12 = pnand %p3513_p9, %p3507_p5 }
  0x9e   : > { %3517 = shalt.err (!%p3514_p12)
}
  0x9f   : > { %s4742_s29 = smov 64   ;;  %s4744_s7 = smov 4  }
  0xa0   : > { %3234 = dma.hbm_to_vmem [thread:$0]  (!%p4089_p13), %s4782_s11, 256, %s687_s20, [#allocation16], %s4742_s29, %s4742_s29, %s4744_s7  }
  0xa1   : > { %s4783_s14 = sld [smem:[#allocation52_spill]] }
  0xa7   : > { %s3518_s5 = scalar_lea.hbm %s4783_s14, 16 }
  0xa8   : > { %p3519_p0 = scmp.ne.s32.totalorder %s4783_s14, %s3518_s5  ;;  %p3525_p8 = scmp.lt.u32.totalorder %s3518_s5, %s4783_s14 }
  0xaa   : > { %p3521_p2 = pnand %p3519_p0, %p4105_p1 }
  0xac   : > { %p3522_p4 = pneg %p3521_p2 }
  0xae   : > { %p3527_p10 = pnand %p3525_p8, %p3522_p4 }
  0xb0   : > { %3530 = shalt.err (!%p3527_p10)
}
  0xb1   : > { %s3531_s20 = scalar_lea.vmem %s4164_s26, 16  ;;  %s3538_s24 = scalar_lea.vmem %s4164_s26, 32 }
  0xb2   : > { %p3532_p11 = scmp.ne.s32.totalorder %s4164_s26, %s3531_s20  ;;  %p3539_p6 = scmp.lt.s32.totalorder %s4164_s26, %s4164_s26 }
  0xb3   : > { %p3540_p7 = scmp.lt.s32.totalorder %s3538_s24, %s3531_s20 }
  0xb4   : > { %p3534_p3 = pnand %p3532_p11, %p4105_p1 }
  0xb5   : > { %p3541_p9 = por %p3540_p7, %p3539_p6 }
  0xb6   : > { %p3535_p5 = pneg %p3534_p3 }
  0xb8   : > { %p3542_p12 = pnand %p3541_p9, %p3535_p5 }
  0xba   : > { %3545 = shalt.err (!%p3542_p12)
}
  0xbb   : > { %3240 = dma.hbm_to_vmem [thread:$0]  (!%p4089_p13), %s4783_s14, 16, %s4164_s26, [#allocation19]  }
  0xbc   : > { %s3885_s28 = smov [#allocation21]   ;;  %s4784_s16 = sld [smem:[#allocation53_spill]] }
  0xbd   : > { %s738_s18 = sshll.u32 %s3885_s28, 4  ;;  %s739_s18 = int_to_ptr.vmem [resolvable:$true] %s738_s18 }
  0xc2   : > { %s3546_s3 = scalar_lea.hbm %s4784_s16, 16 }
  0xc3   : > { %p3547_p0 = scmp.ne.s32.totalorder %s4784_s16, %s3546_s3  ;;  %p3553_p8 = scmp.lt.u32.totalorder %s3546_s3, %s4784_s16 }
  0xc5   : > { %p3549_p2 = pnand %p3547_p0, %p4105_p1 }
  0xc7   : > { %p3550_p4 = pneg %p3549_p2 }
  0xc9   : > { %p3555_p10 = pnand %p3553_p8, %p3550_p4 }
  0xcb   : > { %3558 = shalt.err (!%p3555_p10)
}
  0xcc   : > { %s3559_s26 = scalar_lea.vmem %s739_s18, 16  ;;  %s3566_s2 = scalar_lea.vmem %s739_s18, 32 }
  0xcd   : > { %p3560_p11 = scmp.ne.s32.totalorder %s739_s18, %s3559_s26  ;;  %p3567_p6 = scmp.lt.s32.totalorder %s739_s18, %s739_s18 }
  0xce   : > { %p3568_p7 = scmp.lt.s32.totalorder %s3566_s2, %s3559_s26 }
  0xcf   : > { %p3562_p3 = pnand %p3560_p11, %p4105_p1 }
  0xd0   : > { %p3569_p9 = por %p3568_p7, %p3567_p6 }
  0xd1   : > { %p3563_p5 = pneg %p3562_p3 }
  0xd3   : > { %p3570_p12 = pnand %p3569_p9, %p3563_p5 }
  0xd5   : > { %3573 = shalt.err (!%p3570_p12)
}
  0xd6   : > { %3246 = dma.hbm_to_vmem [thread:$0]  (!%p4089_p13), %s4784_s16, 16, %s739_s18, [#allocation22]  }
  0xd7   : > { %s3886_s29 = smov [#allocation3]   ;;  %s3887_s30 = smov [#allocation8]  }
  0xd8   : > { %s600_s5 = sshll.u32 %s3886_s29, 4  ;;  %s624_s3 = sshll.u32 %s3887_s30, 4  ;;  %s601_s5 = int_to_ptr.vmem [resolvable:$true] %s600_s5  ;;  %s625_s3 = int_to_ptr.vmem [resolvable:$true] %s624_s3 }
  0xd9   : > { %s4785_s24 = sld [smem:[#allocation45_spill]] }
  0xdf   : > { %s4786_s7 = smov %s4785_s24  ;;  %s3574_s8 = scalar_lea.hbm %s4785_s24, 256 }
  0xe0   : > { %p3575_p0 = scmp.ne.s32.totalorder %s4786_s7, %s3574_s8  ;;  %p3581_p8 = scmp.lt.u32.totalorder %s3574_s8, %s4786_s7 }
  0xe2   : > { %p3577_p2 = pnand %p3575_p0, %p4105_p1 }
  0xe4   : > { %p3578_p4 = pneg %p3577_p2 }
  0xe6   : > { %p3583_p10 = pnand %p3581_p8, %p3578_p4 }
  0xe8   : > { %3586 = shalt.err (!%p3583_p10)
}
  0xe9   : > { %s3587_s18 = scalar_lea.vmem %s601_s5, 256  ;;  %p3595_p6 = scmp.lt.s32.totalorder %s601_s5, %s601_s5 }
  0xea   : > { %p3588_p11 = scmp.ne.s32.totalorder %s601_s5, %s3587_s18  ;;  %p3596_p7 = scmp.lt.s32.totalorder %s3587_s18, %s3587_s18 }
  0xec   : > { %p3590_p3 = pnand %p3588_p11, %p4105_p1  ;;  %p3597_p9 = por %p3596_p7, %p3595_p6 }
  0xee   : > { %p3591_p5 = pneg %p3590_p3 }
  0xf0   : > { %p3598_p12 = pnand %p3597_p9, %p3591_p5 }
  0xf2   : > { %3601 = shalt.err (!%p3598_p12)
}
  0xf3   : > { %s4787_s28 = smov 4   ;;  %s4788_s29 = smov 64  }
  0xf4   : > { %3213 = dma.hbm_to_vmem [thread:$0]  (!%p4089_p13), %s4786_s7, 256, %s601_s5, [#allocation4], %s4788_s29, %s4788_s29, %s4787_s28  }
  0xf5   : > { %s4789_s20 = sld [smem:[#allocation47_spill]] }
  0xfb   : > { %s3602_s24 = scalar_lea.hbm %s4789_s20, 256 }
  0xfc   : > { %p3603_p0 = scmp.ne.s32.totalorder %s4789_s20, %s3602_s24  ;;  %p3609_p8 = scmp.lt.u32.totalorder %s3602_s24, %s4789_s20 }
  0xfe   : > { %p3605_p2 = pnand %p3603_p0, %p4105_p1 }
 0x100   : > { %p3606_p4 = pneg %p3605_p2 }
 0x102   : > { %p3611_p10 = pnand %p3609_p8, %p3606_p4 }
 0x104   : > { %3614 = shalt.err (!%p3611_p10)
}
 0x105   : > { %s3615_s11 = scalar_lea.vmem %s625_s3, 256  ;;  %p3623_p6 = scmp.lt.s32.totalorder %s625_s3, %s625_s3 }
 0x106   : > { %p3616_p11 = scmp.ne.s32.totalorder %s625_s3, %s3615_s11  ;;  %p3624_p7 = scmp.lt.s32.totalorder %s3615_s11, %s3615_s11 }
 0x108   : > { %p3618_p3 = pnand %p3616_p11, %p4105_p1  ;;  %p3625_p9 = por %p3624_p7, %p3623_p6 }
 0x10a   : > { %p3619_p5 = pneg %p3618_p3 }
 0x10c   : > { %p3626_p12 = pnand %p3625_p9, %p3619_p5 }
 0x10e   : > { %3629 = shalt.err (!%p3626_p12)
}
 0x10f   : > { %3219 = dma.hbm_to_vmem [thread:$0]  (!%p4089_p13), %s4789_s20, 256, %s625_s3, [#allocation7], %s4788_s29, %s4788_s29, %s4787_s28  }
 0x110   : > { %s3888_s30 = smov [#allocation11]   ;;  %s3889_s24 = smov [#allocation14]  }
 0x111   : > { %s648_s1 = sshll.u32 %s3888_s30, 4  ;;  %s676_s26 = sshll.u32 %s3889_s24, 4  ;;  %s649_s1 = int_to_ptr.vmem [resolvable:$true] %s648_s1  ;;  %s677_s26 = int_to_ptr.vmem [resolvable:$true] %s676_s26 }
 0x112   : > { %s4790_s18 = sld [smem:[#allocation49_spill]] }
 0x118   : > { %s3630_s11 = scalar_lea.hbm %s4790_s18, 256 }
 0x119   : > { %p3631_p0 = scmp.ne.s32.totalorder %s4790_s18, %s3630_s11  ;;  %p3637_p8 = scmp.lt.u32.totalorder %s3630_s11, %s4790_s18 }
 0x11b   : > { %p3633_p2 = pnand %p3631_p0, %p4105_p1 }
 0x11d   : > { %p3634_p4 = pneg %p3633_p2 }
 0x11f   : > { %p3639_p10 = pnand %p3637_p8, %p3634_p4 }
 0x121   : > { %3642 = shalt.err (!%p3639_p10)
}
 0x122   : > { %s3643_s3 = scalar_lea.vmem %s649_s1, 256  ;;  %p3651_p6 = scmp.lt.s32.totalorder %s649_s1, %s649_s1 }
 0x123   : > { %p3644_p11 = scmp.ne.s32.totalorder %s649_s1, %s3643_s3  ;;  %p3652_p7 = scmp.lt.s32.totalorder %s3643_s3, %s3643_s3 }
 0x125   : > { %p3646_p3 = pnand %p3644_p11, %p4105_p1  ;;  %p3653_p9 = por %p3652_p7, %p3651_p6 }
 0x127   : > { %p3647_p5 = pneg %p3646_p3 }
 0x129   : > { %p3654_p12 = pnand %p3653_p9, %p3647_p5 }
 0x12b   : > { %3657 = shalt.err (!%p3654_p12)
}
 0x12c   : > { %3225 = dma.hbm_to_vmem [thread:$0]  (!%p4089_p13), %s4790_s18, 256, %s649_s1, [#allocation10], %s4788_s29, %s4788_s29, %s4787_s28  }
 0x12d   : > { %s3658_s30 = scalar_lea.hbm %s4707_s10, 16 }
 0x12e   : > { %p3659_p0 = scmp.ne.s32.totalorder %s4707_s10, %s3658_s30  ;;  %p3665_p8 = scmp.lt.u32.totalorder %s3658_s30, %s4707_s10 }
 0x130   : > { %p3661_p2 = pnand %p3659_p0, %p4105_p1 }
 0x132   : > { %p3662_p4 = pneg %p3661_p2 }
 0x134   : > { %p3667_p10 = pnand %p3665_p8, %p3662_p4 }
 0x136   : > { %3670 = shalt.err (!%p3667_p10)
}
 0x137   : > { %s3671_s5 = scalar_lea.vmem %s677_s26, 16  ;;  %s3678_s1 = scalar_lea.vmem %s677_s26, 32 }
 0x138   : > { %p3672_p11 = scmp.ne.s32.totalorder %s677_s26, %s3671_s5  ;;  %p3679_p6 = scmp.lt.s32.totalorder %s677_s26, %s677_s26 }
 0x139   : > { %p3680_p7 = scmp.lt.s32.totalorder %s3678_s1, %s3671_s5 }
 0x13a   : > { %p3674_p3 = pnand %p3672_p11, %p4105_p1 }
 0x13b   : > { %p3681_p9 = por %p3680_p7, %p3679_p6 }
 0x13c   : > { %p3675_p5 = pneg %p3674_p3 }
 0x13e   : > { %p3682_p12 = pnand %p3681_p9, %p3675_p5 }
 0x140   : > { %3685 = shalt.err (!%p3682_p12)
}
 0x141   : > { %3231 = dma.hbm_to_vmem [thread:$0]  (!%p4089_p13), %s4707_s10, 16, %s677_s26, [#allocation13]  }
 0x142   : > { %s3890_s16 = smov [#allocation17]   ;;  %s3891_s8 = smov [#allocation20]  }
 0x143   : > { %s700_s7 = sshll.u32 %s3890_s16, 4  ;;  %s724_s30 = sshll.u32 %s3891_s8, 4  ;;  %s701_s7 = int_to_ptr.vmem [resolvable:$true] %s700_s7  ;;  %s725_s30 = int_to_ptr.vmem [resolvable:$true] %s724_s30 }
 0x144   : > { %s3686_s22 = scalar_lea.hbm %s4709_s12, 16 }
 0x145   : > { %p3687_p0 = scmp.ne.s32.totalorder %s4709_s12, %s3686_s22  ;;  %p3693_p8 = scmp.lt.u32.totalorder %s3686_s22, %s4709_s12 }
 0x147   : > { %p3689_p2 = pnand %p3687_p0, %p4105_p1 }
 0x149   : > { %p3690_p4 = pneg %p3689_p2 }
 0x14b   : > { %p3695_p10 = pnand %p3693_p8, %p3690_p4 }
 0x14d   : > { %3698 = shalt.err (!%p3695_p10)
}
 0x14e   : > { %s3699_s26 = scalar_lea.vmem %s701_s7, 16  ;;  %s3706_s14 = scalar_lea.vmem %s701_s7, 32 }
 0x14f   : > { %p3700_p11 = scmp.ne.s32.totalorder %s701_s7, %s3699_s26  ;;  %p3707_p6 = scmp.lt.s32.totalorder %s701_s7, %s701_s7 }
 0x150   : > { %p3708_p7 = scmp.lt.s32.totalorder %s3706_s14, %s3699_s26 }
 0x151   : > { %p3702_p3 = pnand %p3700_p11, %p4105_p1 }
 0x152   : > { %p3709_p9 = por %p3708_p7, %p3707_p6 }
 0x153   : > { %p3703_p5 = pneg %p3702_p3 }
 0x155   : > { %p3710_p12 = pnand %p3709_p9, %p3703_p5 }
 0x157   : > { %3713 = shalt.err (!%p3710_p12)
}
 0x158   : > { %3237 = dma.hbm_to_vmem [thread:$0]  (!%p4089_p13), %s4709_s12, 16, %s701_s7, [#allocation16]  }
 0x159   : > { %s3714_s22 = scalar_lea.hbm %s4712_s15, 256 }
 0x15a   : > { %p3715_p0 = scmp.ne.s32.totalorder %s4712_s15, %s3714_s22  ;;  %p3721_p8 = scmp.lt.u32.totalorder %s3714_s22, %s4712_s15 }
 0x15c   : > { %p3717_p2 = pnand %p3715_p0, %p4105_p1 }
 0x15e   : > { %p3718_p4 = pneg %p3717_p2 }
 0x160   : > { %p3723_p10 = pnand %p3721_p8, %p3718_p4 }
 0x162   : > { %3726 = shalt.err (!%p3723_p10)
}
 0x163   : > { %s3727_s26 = scalar_lea.vmem %s725_s30, 256  ;;  %p3735_p6 = scmp.lt.s32.totalorder %s725_s30, %s725_s30 }
 0x164   : > { %p3728_p11 = scmp.ne.s32.totalorder %s725_s30, %s3727_s26  ;;  %p3736_p7 = scmp.lt.s32.totalorder %s3727_s26, %s3727_s26 }
 0x166   : > { %p3730_p3 = pnand %p3728_p11, %p4105_p1  ;;  %p3737_p9 = por %p3736_p7, %p3735_p6 }
 0x168   : > { %p3731_p5 = pneg %p3730_p3 }
 0x16a   : > { %p3738_p12 = pnand %p3737_p9, %p3731_p5 }
 0x16c   : > { %3741 = shalt.err (!%p3738_p12)
}
 0x16d   : > { %3243 = dma.hbm_to_vmem [thread:$0]  (!%p4089_p13), %s4712_s15, 256, %s725_s30, [#allocation19], %s4788_s29, %s4788_s29, %s4787_s28  }
 0x16e   : > { %s3892_s16 = smov [#allocation23]   ;;  %s3742_s22 = scalar_lea.hbm %s4716_s19, 256 }
 0x16f   : > { %s754_s8 = sshll.u32 %s3892_s16, 4  ;;  %p3743_p0 = scmp.ne.s32.totalorder %s4716_s19, %s3742_s22  ;;  %s755_s8 = int_to_ptr.vmem [resolvable:$true] %s754_s8 }
 0x170   : > { %p3749_p8 = scmp.lt.u32.totalorder %s3742_s22, %s4716_s19 }
 0x171   : > { %p3745_p2 = pnand %p3743_p0, %p4105_p1 }
 0x173   : > { %p3746_p4 = pneg %p3745_p2 }
 0x175   : > { %p3751_p10 = pnand %p3749_p8, %p3746_p4 }
 0x177   : > { %3754 = shalt.err (!%p3751_p10)
}
 0x178   : > { %s3755_s30 = scalar_lea.vmem %s755_s8, 256  ;;  %p3763_p6 = scmp.lt.s32.totalorder %s755_s8, %s755_s8 }
 0x179   : > { %p3756_p11 = scmp.ne.s32.totalorder %s755_s8, %s3755_s30  ;;  %p3764_p7 = scmp.lt.s32.totalorder %s3755_s30, %s3755_s30 }
 0x17b   : > { %p3758_p3 = pnand %p3756_p11, %p4105_p1  ;;  %p3765_p9 = por %p3764_p7, %p3763_p6 }
 0x17d   : > { %p3759_p5 = pneg %p3758_p3 }
 0x17f   : > { %p3766_p12 = pnand %p3765_p9, %p3759_p5 }
 0x181   : > { %3769 = shalt.err (!%p3766_p12)
}
 0x182   : > { %3249 = dma.hbm_to_vmem [thread:$0]  (!%p4089_p13), %s4716_s19, 256, %s755_s8, [#allocation22], %s4788_s29, %s4788_s29, %s4787_s28  }
 0x183   : > { %p4791_p0 = scmp.ne.s32.totalorder %s4774_s0, 0 }
 0x184   : > { %p4792_p1 = scmp.ne.s32.totalorder (!%p4791_p0), %s4775_s4, 0 }
 0x185   : > { %803 = sbr.rel (%p4791_p0) target bundleno = 3738 (0xe9a), region = 112 }
 0x18c   : > { %3823 = dma.done.wait (%p4792_p1), [#allocation4], 256  }
 0x18d   : > { %3825 = vsyncadd (%p4792_p1), [#allocation4], 4294967040 }
 0x18e   : > { %3827 = dma.done.wait (%p4792_p1), [#allocation7], 272  }
 0x18f   : > { %3829 = vsyncadd (%p4792_p1), [#allocation7], 4294967024 }
 0x190   : > { %3831 = dma.done.wait (%p4792_p1), [#allocation10], 272  }
 0x191   : > { %3833 = vsyncadd (%p4792_p1), [#allocation10], 4294967024 }
 0x192   : > { %3835 = dma.done.wait (%p4792_p1), [#allocation13], 32  }
 0x193   : > { %3837 = vsyncadd (%p4792_p1), [#allocation13], 4294967264 }
 0x194   : > { %3839 = dma.done.wait (%p4792_p1), [#allocation16], 272  }
 0x195   : > { %3841 = vsyncadd (%p4792_p1), [#allocation16], 4294967024 }
 0x196   : > { %3843 = dma.done.wait (%p4792_p1), [#allocation19], 272  }
 0x197   : > { %3845 = vsyncadd (%p4792_p1), [#allocation19], 4294967024 }
 0x198   : > { %3847 = dma.done.wait (%p4792_p1), [#allocation22], 272  }
 0x199   : > { %3849 = vsyncadd (%p4792_p1), [#allocation22], 4294967024  ;;  %p925_p13 = scmp.lt.s32.totalorder %s3868_s25, 1  ;;  %v3893_v0 = vmov 0.0   ;;  %vm3894_vm0 = vmmov 0   ;;  %v3352_v1 = vld [vmem:[#allocation8] sm:$0xff]  }
 0x19a   : > { %2984 = vmatprep.subr.bf16.mxu1 %v3893_v0  ;;  %2976 = vmatprep.subr.bf16.mxu0 %v3893_v0  ;;  %s4793_s28 = sld [smem:[#allocation43_spill]]  ;;  %v3353_v2 = vld [vmem:[#allocation3] sm:$0xff]   ;;  %s4794_s8 = sld [smem:[#allocation42_spill]]  ;;  %vm968_vm1 = vcmask 261120   ;;  %v3355_v5 = vld [vmem:[#allocation3 + $0x8] sm:$0xff]   ;;  %vm1144_vm2 = vcmask 64512  }
 0x19b   : > { %2988 = vmatprep.mubr.msk.bf16.mxu1 %vm3894_vm0, %v3893_v0  ;;  %s926_s0 = scalar_select %p925_p13, %s3868_s25, 1  ;;  %2980 = vmatprep.mubr.msk.bf16.mxu0 %vm3894_vm0, %v3893_v0  ;;  %v3354_v3 = vld [vmem:[#allocation8 + $0x8] sm:$0xff]   ;;  %v2842_v9 = vld [vmem:[#allocation9] ss:$0 sm:$0xff]  ;;  %v2838_v10 = vld [vmem:[#allocation6] ss:$0 sm:$0xff] }
 0x19c   : > { %2985 = vmatpush3.bf16.msra.mxu1 %v3352_v1  ;;  %2977 = vmatpush3.bf16.msra.mxu0 %v3353_v2  ;;  %s3895_s2 = smov 112   ;;  %s3896_s22 = smov 120   ;;  %v3356_v24 = vld [vmem:[#allocation11] sm:$0xff]   ;;  %v3357_v25 = vld [vmem:[#allocation11 + $0x8] sm:$0xff]   ;;  %v2846_v40 = vld [vmem:[#allocation12] ss:$0 sm:$0xff] }
 0x19d   : > { %s4408_s27 = sshll.u32 %s926_s0, 3  ;;  %2986 = vmatprep.subr.bf16.mxu1 %v3893_v0  ;;  %2978 = vmatprep.subr.bf16.mxu0 %v3893_v0  ;;  %s3897_s11 = smov 104   ;;  %vm1206_vm3 = vcmask 1043456   ;;  %vm1251_vm4 = vcmask 60416   ;;  %vm1373_vm5 = vcmask 126016   ;;  %vm1492_vm6 = vcmask 191616  }
 0x19e   : > { %s3898_s5 = smov 8   ;;  %s3899_s7 = smov 16   ;;  %vm1611_vm7 = vcmask 257216   ;;  %vm2521_vm8 = vcmask 523264  }
 0x19f   : > { %s3900_s0 = smov 24   ;;  %s4795_s14 = sld [smem:[#allocation44_spill]] }
 0x1a0   : > { %s935_s29 = scalar_lea.vmem %s4793_s28, %s4408_s27  ;;  %s931_s24 = scalar_lea.vmem %s4794_s8, %s4408_s27  ;;  %2987 = vmatpush3.bf16.msra.mxu1 %v3354_v3  ;;  %2979 = vmatpush3.bf16.msra.mxu0 %v3355_v5 }
 0x1a1   : > { %v943_v4 = vld [vmem:[%s935_s29] sm:$0xff]  ;;  %3000 = vmatprep.subr.bf16.mxu1 %v3893_v0  ;;  %2992 = vmatprep.subr.bf16.mxu0 %v3893_v0  ;;  %s4797_s28 = sld [smem:[#allocation34_spill]]  ;;  %s4800_s1 = sld [smem:[#allocation39_spill]] }
 0x1a2   : > { %v4420_v6 = vld [vmem:[%s931_s24] sm:$0xff]  ;;  %v944_v7 = vpack.c.bf16 %v943_v4, %v943_v4  ;;  %s4798_s24 = sld [smem:[#allocation55_spill]]  ;;  %s2903_s3 = sshll.u32 %s3868_s25, 7 }
 0x1a3   : > { %v942_v8 = vpack.c.bf16 %v4420_v6, %v4420_v6  ;;  %s4801_s4 = sld [smem:[#allocation57_spill]] }
 0x1a4   : > { %2989 = vmatmul.mubr.msk.bf16.vlgmr.msra.gmra.mrb[0].mxu1 %vm968_vm1, %v944_v7 }
 0x1a5   : > { %2981 = vmatmul.mubr.msk.bf16.vlgmr.msra.gmra.mrb[0].mxu0 %vm968_vm1, %v942_v8  ;;  %3002 = vmatprep.mubr.msk.bf16.mxu1 %vm3894_vm0, %v3893_v0  ;;  %s939_s16 = scalar_lea.vmem %s4795_s14, %s4408_s27  ;;  %s3901_s14 = smov [#allocation24]  }
 0x1a6   : > { %2996 = vmatprep.mubr.msk.bf16.mxu0 %vm3894_vm0, %v3893_v0  ;;  %2993 = vmatpush3.bf16.msra.mxu0 %v3356_v24 }
 0x1a7   : > { %2994 = vmatprep.subr.bf16.mxu0 %v3893_v0  ;;  %s922_s27 = sand.u32 1, %s4797_s28   ;;  %p4803_p4 = scmp.ne.s32.totalorder %s4800_s1, 0 }
 0x1a8   : > { %s2568_s25 = scalar_lea.sflag [#allocation5], %s922_s27 }
 0x1a9   : > { %s4802_s6 = smov %s4801_s4  ;;  %s4649_s29 = scalar_lea.hbm %s4801_s4, %s2903_s3 }
 0x1aa   : > { %2995 = vmatpush3.bf16.msra.mxu0 %v3357_v25 }
 0x1ab   : > { %3006 = vmatprep.subr.bf16.mxu0 %v3893_v0 }
 0x1ad   : > { %2997 = vmatmul.mubr.msk.bf16.vlgmr.msra.gmra.mrb[4].mxu0 %vm968_vm1, %v944_v7 }
 0x1ae   : > { %3008 = vmatprep.mubr.msk.bf16.mxu0 %vm3894_vm0, %v3893_v0 }
 0x277   : > { %v1073_v11 = vpop.f32.mrb[0].mxu1 }
 0x278   : > { %v1074_v12 = vadd.f32 %v2842_v9, %v1073_v11  ;;  %v2990_v13 = vpop.f32.mrb[1].mxu1  ;;  %v1006_v14 = vpop.f32.mrb[0].mxu0 }
 0x279   : > { %v1076_v15 = vpop.f32.mrb[2].mxu1  ;;  %v1007_v16 = vadd.f32 %v2838_v10, %v1006_v14  ;;  %v2982_v17 = vpop.f32.mrb[1].mxu0 }
 0x27a   : > { %v1079_v18 = vpack.c.bf16 %v1074_v12, %v1074_v12  ;;  %v2991_v19 = vpop.f32.mrb[3].mxu1  ;;  %v1009_v20 = vpop.f32.mrb[2].mxu0 }
 0x27b   : > { %v2983_v21 = vpop.f32.mrb[3].mxu0  ;;  %v1012_v22 = vpack.c.bf16 %v1007_v16, %v1007_v16 }
 0x27c   : > { %1377 = vrot.lane.b32.xlu1 %v1079_v18, %s3895_s2  ;;  %1257 = vrot.lane.b32.xlu0 %v1079_v18, %s3896_s22  ;;  %v1149_v23 = vsel %vm1144_vm2, %v1079_v18, 0 }
 0x27d   : > { %3001 = vmatpush3.bf16.xpose.msra.mxu1 %v1149_v23 }
 0x27e   : > { %3012 = vmatprep.subr.bf16.mxu1 %v3893_v0 }
 0x280   : > { %1375 = vrot.lane.b32.xlu1 %v1012_v22, %s3895_s2  ;;  %1254 = vrot.lane.b32.xlu0 %v1012_v22, %s3896_s22  ;;  %v1137_v41 = vpop.f32.mrb[4].mxu0 }
 0x281   : > { %v1138_v42 = vadd.f32 %v2846_v40, %v1137_v41  ;;  %v2998_v43 = vpop.f32.mrb[5].mxu0 }
 0x282   : > { %v1140_v44 = vpop.f32.mrb[6].mxu0 }
 0x283   : > { %v1143_v45 = vpack.c.bf16 %v1138_v42, %v1138_v42  ;;  %v2999_v46 = vpop.f32.mrb[7].mxu0 }
 0x284   : > { %1494 = vrot.lane.b32.xlu1 %v1012_v22, %s3897_s11  ;;  %1496 = vrot.lane.b32.xlu0 %v1079_v18, %s3897_s11 }
 0x285   : > { %3003 = vmatmul.mubr.msk.bf16.vlgmr.msra.gmra.mrb[4].mxu1 %vm1144_vm2, %v1012_v22  ;;  %v1208_v47 = vsel %vm1206_vm3, %v1143_v45, 0 }
 0x286   : > { %3014 = vmatprep.mubr.msk.bf16.mxu1 %vm3894_vm0, %v3893_v0  ;;  %3007 = vmatpush3.bf16.msra.mxu0 %v1208_v47 }
 0x287   : > { %3018 = vmatprep.subr.bf16.mxu0 %v3893_v0 }
 0x2ee   : > { %v1258_v26 = vpop.permute.xlu0 %1257  ;;  %v1378_v28 = vpop.permute.xlu1 %1377 }
 0x2ef   : > { %v1263_v27 = vsel %vm1144_vm2, %v1258_v26, 0  ;;  %v1383_v30 = vsel %vm1144_vm2, %v1378_v28, 0 }
 0x2f0   : > { %3013 = vmatpush3.bf16.xpose.msra.mxu1 %v1263_v27 }
 0x2f1   : > { %3024 = vmatprep.subr.bf16.mxu1 %v3893_v0 }
 0x2f2   : > { %v1255_v29 = vpop.permute.xlu0 %1254  ;;  %v1376_v32 = vpop.permute.xlu1 %1375 }
 0x2f6   : > { %v1497_v31 = vpop.permute.xlu0 %1496  ;;  %v1495_v34 = vpop.permute.xlu1 %1494 }
 0x2f7   : > { %3015 = vmatmul.mubr.msk.bf16.vlgmr.msra.gmra.mrb[8].mxu1 %vm1144_vm2, %v1255_v29  ;;  %v1502_v33 = vsel %vm1144_vm2, %v1497_v31, 0 }
 0x2f8   : > { %3025 = vmatpush3.bf16.xpose.msra.mxu1 %v1383_v30  ;;  %3026 = vmatprep.mubr.msk.bf16.mxu1 %vm3894_vm0, %v3893_v0 }
 0x2f9   : > { %3036 = vmatprep.subr.bf16.mxu1 %v3893_v0 }
 0x2ff   : > { %3027 = vmatmul.mubr.msk.bf16.vlgmr.msra.gmra.mrb[12].mxu1 %vm1144_vm2, %v1376_v32 }
 0x300   : > { %3037 = vmatpush3.bf16.xpose.msra.mxu1 %v1502_v33  ;;  %3038 = vmatprep.mubr.msk.bf16.mxu1 %vm3894_vm0, %v3893_v0 }
 0x301   : > { %3048 = vmatprep.subr.bf16.mxu1 %v3893_v0 }
 0x307   : > { %3039 = vmatmul.mubr.msk.bf16.vlgmr.msra.gmra.mrb[16].mxu1 %vm1144_vm2, %v1495_v34 }
 0x308   : > { %3052 = vmatprep.mubr.msk.bf16.mxu1 %vm3894_vm0, %v3893_v0 }
 0x358   : > { %v1185_v35 = vpop.f32.mrb[4].mxu1 }
 0x359   : > { %v3004_v36 = vpop.f32.mrb[5].mxu1  ;;  %v1191_v37 = vsel %vm1144_vm2, %v1185_v35, -inf }
 0x35a   : > { %1192 = vmax.xlane.f32.xlu0 %v1191_v37  ;;  %v1188_v38 = vpop.f32.mrb[6].mxu1 }
 0x35b   : > { %v3005_v39 = vpop.f32.mrb[7].mxu1 }
 0x3ca   : > { %v1299_v48 = vpop.f32.mrb[8].mxu1 }
 0x3cb   : > { %v3016_v49 = vpop.f32.mrb[9].mxu1  ;;  %v1305_v50 = vsel %vm1144_vm2, %v1299_v48, -inf }
 0x3cc   : > { %1306 = vmax.xlane.f32.xlu1 %v1305_v50  ;;  %v1302_v51 = vpop.f32.mrb[10].mxu1 }
 0x3cd   : > { %v3017_v52 = vpop.f32.mrb[11].mxu1 }
 0x3d2   : > { %v1419_v53 = vpop.f32.mrb[12].mxu1 }
 0x3d3   : > { %v3028_v54 = vpop.f32.mrb[13].mxu1  ;;  %v1425_v55 = vsel %vm1144_vm2, %v1419_v53, -inf }
 0x3d4   : > { %1426 = vmax.xlane.f32.xlu0 %v1425_v55  ;;  %v1422_v56 = vpop.f32.mrb[14].mxu1  ;;  %v3359_v55 = vld [vmem:[%s4706_s9 + $0x8] sm:$0xff]  }
 0x3d5   : > { %v3029_v57 = vpop.f32.mrb[15].mxu1 }
 0x3da   : > { %v1538_v58 = vpop.f32.mrb[16].mxu1 }
 0x3db   : > { %v3040_v59 = vpop.f32.mrb[17].mxu1  ;;  %v1544_v60 = vsel %vm1144_vm2, %v1538_v58, -inf }
 0x3dc   : > { %1545 = vmax.xlane.f32.xlu0 %v1544_v60  ;;  %v1541_v61 = vpop.f32.mrb[18].mxu1 }
 0x3dd   : > { %v3041_v62 = vpop.f32.mrb[19].mxu1 }
 0x3e7   : > { %v1193_v63 = vpop.xlane.xlu0 %1192 }
 0x3e8   : > { %v1194_v1 = vsub.f32 %v1185_v35, %v1193_v63 }
 0x3ea   : > { %v1195_v2 = vmul.f32 1.442695, %v1194_v1 }
 0x3ec   : > { %3374 = vpow2.f32 %v1195_v2 }
 0x3f6   : > { %v3375_v3 = vpop.eup %3374 }
 0x3f7   : > { %v1197_v4 = vsel %vm1144_vm2, %v3375_v3, 0.0 }
 0x3f8   : > { %1198 = vadd.xlane.f32.xlu1 %v1197_v4 }
 0x409   : > { %1318 = vrot.lane.b32.xlu1 %v1143_v45, %s3896_s22 }
 0x459   : > { %v1307_v5 = vpop.xlane.xlu1 %1306 }
 0x45a   : > { %v1308_v7 = vsub.f32 %v1299_v48, %v1307_v5  ;;  %v3360_v5 = vld [vmem:[%s4710_s13] sm:$0xff]  }
 0x45c   : > { %v1309_v8 = vmul.f32 1.442695, %v1308_v7 }
 0x45e   : > { %3376 = vpow2.f32 %v1309_v8  ;;  %v3361_v8 = vld [vmem:[%s4710_s13 + $0x8] sm:$0xff]  }
 0x461   : > { %v1427_v9 = vpop.xlane.xlu0 %1426 }
 0x462   : > { %v1428_v10 = vsub.f32 %v1419_v53, %v1427_v9  ;;  %v3358_v53 = vld [vmem:[%s4706_s9] sm:$0xff]  }
 0x463   : > { %3049 = vmatpush3.bf16.msra.mxu1 %v3358_v53  ;;  %v1682_v9 = vld [vmem:[%s939_s16] sm:$0xff]  ;;  %s3774_s16 = sshll.u32 %s3901_s14, 4  ;;  %s3775_s16 = int_to_ptr.vmem [resolvable:$false] %s3774_s16 }
 0x464   : > { %v1429_v11 = vmul.f32 1.442695, %v1428_v10  ;;  %3050 = vmatprep.subr.bf16.mxu1 %v3893_v0  ;;  %v1683_v10 = vpack.c.bf16 %v1682_v9, %v1682_v9  ;;  %s3776_s8 = scalar_lea.vmem %s3775_s16, 256 }
 0x466   : > { %3378 = vpow2.f32 %v1429_v11  ;;  %v3362_v11 = vld [vmem:[#allocation15] sm:$0xff]  }
 0x467   : > { %3051 = vmatpush3.bf16.msra.mxu1 %v3359_v55 }
 0x468   : > { %v3377_v12 = vpop.eup %3376  ;;  %3064 = vmatprep.subr.bf16.mxu1 %v3893_v0 }
 0x469   : > { %v1546_v13 = vpop.xlane.xlu0 %1545  ;;  %v1311_v14 = vsel %vm1144_vm2, %v3377_v12, 0.0 }
 0x46a   : > { %v1547_v15 = vsub.f32 %v1538_v58, %v1546_v13  ;;  %1312 = vadd.xlane.f32.xlu0 %v1311_v14  ;;  %v2861_v13 = vld [vmem:[#allocation14] ss:$0 sm:$0xff] }
 0x46c   : > { %v1548_v16 = vmul.f32 1.442695, %v1547_v15 }
 0x46e   : > { %3380 = vpow2.f32 %v1548_v16 }
 0x470   : > { %v3379_v17 = vpop.eup %3378 }
 0x471   : > { %v1431_v18 = vsel %vm1144_vm2, %v3379_v17, 0.0 }
 0x472   : > { %1432 = vadd.xlane.f32.xlu1 %v1431_v18 }
 0x478   : > { %v3381_v19 = vpop.eup %3380 }
 0x479   : > { %v1550_v20 = vsel %vm1144_vm2, %v3381_v19, 0.0 }
 0x47a   : > { %1551 = vadd.xlane.f32.xlu0 %v1550_v20 }
 0x483   : > { %1556 = vrot.lane.b32.xlu1 %v1143_v45, %s3897_s11 }
 0x485   : > { %v1199_v21 = vpop.xlane.xlu1 %1198 }
 0x486   : > { %3382 = vrcp.f32 %v1199_v21  ;;  %v2869_v21 = vld [vmem:[#allocation18] ss:$0 sm:$0xff] }
 0x489   : > { %v1319_v23 = vpop.permute.xlu1 %1318 }
 0x48a   : > { %v1324_v26 = vsel %vm1206_vm3, %v1319_v23, 0 }
 0x490   : > { %v3383_v22 = vpop.eup %3382  ;;  %1437 = vrot.lane.b32.xlu0 %v1143_v45, %s3895_s2 }
 0x491   : > { %v1201_v24 = vmul.f32 %v3383_v22, %v3375_v3 }
 0x493   : > { %v1202_v25 = vpack.c.bf16 %v1201_v24, %v1201_v24 }
 0x495   : > { %3009 = vmatmul.mubr.msk.bf16.vlgmr.msra.gmra.mrb[8].mxu0 %vm1144_vm2, %v1202_v25 }
 0x496   : > { %3019 = vmatpush3.bf16.msra.mxu0 %v1324_v26  ;;  %3020 = vmatprep.mubr.msk.bf16.mxu0 %vm3894_vm0, %v3893_v0 }
 0x497   : > { %3030 = vmatprep.subr.bf16.mxu0 %v3893_v0 }
 0x4f7   : > { %v1313_v27 = vpop.xlane.xlu0 %1312 }
 0x4f8   : > { %3384 = vrcp.f32 %v1313_v27 }
 0x4ff   : > { %v1433_v28 = vpop.xlane.xlu1 %1432 }
 0x500   : > { %3386 = vrcp.f32 %v1433_v28  ;;  %v2865_v28 = vld [vmem:[#allocation17] ss:$0 sm:$0xff] }
 0x502   : > { %v3385_v29 = vpop.eup %3384 }
 0x503   : > { %v1315_v30 = vmul.f32 %v3385_v29, %v3377_v12  ;;  %v1557_v37 = vpop.permute.xlu1 %1556  ;;  %v3363_v12 = vld [vmem:[#allocation15 + $0x8] sm:$0xff]  }
 0x504   : > { %v1562_v39 = vsel %vm1206_vm3, %v1557_v37, 0  ;;  %v3364_v37 = vld [vmem:[#allocation20] sm:$0xff]  }
 0x505   : > { %v1316_v31 = vpack.c.bf16 %v1315_v30, %v1315_v30 }
 0x507   : > { %v1552_v32 = vpop.xlane.xlu0 %1551  ;;  %3021 = vmatmul.mubr.msk.bf16.vlgmr.msra.gmra.mrb[12].mxu0 %vm1144_vm2, %v1316_v31 }
 0x508   : > { %3388 = vrcp.f32 %v1552_v32  ;;  %3032 = vmatprep.mubr.msk.bf16.mxu0 %vm3894_vm0, %v3893_v0 }
 0x50a   : > { %v3387_v33 = vpop.eup %3386 }
 0x50b   : > { %v1435_v34 = vmul.f32 %v3387_v33, %v3379_v17  ;;  %v1438_v35 = vpop.permute.xlu0 %1437 }
 0x50c   : > { %v1443_v36 = vsel %vm1206_vm3, %v1438_v35, 0 }
 0x50d   : > { %3031 = vmatpush3.bf16.msra.mxu0 %v1443_v36  ;;  %v1436_v38 = vpack.c.bf16 %v1435_v34, %v1435_v34 }
 0x50e   : > { %3042 = vmatprep.subr.bf16.mxu0 %v3893_v0 }
 0x510   : > { %3033 = vmatmul.mubr.msk.bf16.vlgmr.msra.gmra.mrb[16].mxu0 %vm1144_vm2, %v1436_v38  ;;  %v3365_v38 = vld [vmem:[#allocation20 + $0x8] sm:$0xff]  }
 0x511   : > { %3043 = vmatpush3.bf16.msra.mxu0 %v1562_v39  ;;  %3044 = vmatprep.mubr.msk.bf16.mxu0 %vm3894_vm0, %v3893_v0 }
 0x512   : > { %v3389_v40 = vpop.eup %3388  ;;  %3056 = vmatprep.subr.bf16.mxu0 %v3893_v0 }
 0x513   : > { %v1554_v41 = vmul.f32 %v3389_v40, %v3381_v19 }
 0x515   : > { %v1555_v42 = vpack.c.bf16 %v1554_v41, %v1554_v41 }
 0x518   : > { %3045 = vmatmul.mubr.msk.bf16.vlgmr.msra.gmra.mrb[20].mxu0 %vm1144_vm2, %v1555_v42 }
 0x519   : > { %3060 = vmatprep.mubr.msk.bf16.mxu0 %vm3894_vm0, %v3893_v0  ;;  %3057 = vmatpush3.bf16.msra.mxu0 %v3362_v11 }
 0x51a   : > { %3058 = vmatprep.subr.bf16.mxu0 %v3893_v0 }
 0x51d   : > { %3059 = vmatpush3.bf16.msra.mxu0 %v3363_v12 }
 0x51e   : > { %3072 = vmatprep.subr.bf16.mxu0 %v3893_v0 }
 0x568   : > { %v1244_v43 = vpop.f32.mrb[8].mxu0 }
 0x569   : > { %v1250_v44 = vpack.c.bf16 %v1244_v43, %v1244_v43  ;;  %v3010_v45 = vpop.f32.mrb[9].mxu0 }
 0x56a   : > { %v1247_v46 = vpop.f32.mrb[10].mxu0 }
 0x56b   : > { %1252 = vst.msk [vmem:[#allocation2] sm:$0xf] %vm1251_vm4, %v1250_v44  ;;  %v3011_v47 = vpop.f32.mrb[11].mxu0 }
 0x5da   : > { %v1360_v48 = vpop.f32.mrb[12].mxu0 }
 0x5db   : > { %v2906_v49 = vpack.c.bf16 %v1360_v48, %v1360_v48  ;;  %v3022_v50 = vpop.f32.mrb[13].mxu0 }
 0x5dc   : > { %v1363_v51 = vpop.f32.mrb[14].mxu0 }
 0x5dd   : > { %1370 = vrot.lane.b32.xlu1 %v2906_v49, %s3898_s5  ;;  %v3023_v52 = vpop.f32.mrb[15].mxu0  ;;  %v2873_v51 = vld [vmem:[#allocation21] ss:$0 sm:$0xff] }
 0x5e3   : > { %v1479_v54 = vpop.f32.mrb[16].mxu0 }
 0x5e4   : > { %v2907_v56 = vpack.c.bf16 %v1479_v54, %v1479_v54  ;;  %v3034_v57 = vpop.f32.mrb[17].mxu0 }
 0x5e5   : > { %v1482_v58 = vpop.f32.mrb[18].mxu0 }
 0x5e6   : > { %1489 = vrot.lane.b32.xlu0 %v2907_v56, %s3899_s7  ;;  %v3035_v59 = vpop.f32.mrb[19].mxu0 }
 0x5eb   : > { %v1598_v60 = vpop.f32.mrb[20].mxu0 }
 0x5ec   : > { %v2908_v61 = vpack.c.bf16 %v1598_v60, %v1598_v60  ;;  %v3046_v62 = vpop.f32.mrb[21].mxu0 }
 0x5ed   : > { %v1601_v63 = vpop.f32.mrb[22].mxu0 }
 0x5ee   : > { %1608 = vrot.lane.b32.xlu1 %v2908_v61, %s3900_s0  ;;  %v3047_v1 = vpop.f32.mrb[23].mxu0 }
 0x64f   : > { %v1371_v2 = vpop.permute.xlu1 %1370 }
 0x650   : > { %1374 = vst.msk [vmem:[#allocation2] sm:$0xf] %vm1373_vm5, %v1371_v2 }
 0x658   : > { %v1490_v3 = vpop.permute.xlu0 %1489 }
 0x659   : > { %1493 = vst.msk [vmem:[#allocation2] sm:$0xf] %vm1492_vm6, %v1490_v3 }
 0x660   : > { %v1609_v4 = vpop.permute.xlu1 %1608 }
 0x661   : > { %1612 = vst.msk [vmem:[#allocation2] sm:$0xf] %vm1611_vm7, %v1609_v4 }
 0x668   : > { %v1613_v7 = vld [vmem:[#allocation2] sm:$0xf] }
 0x669   : > { %3053 = vmatmul.mubr.msk.bf16.vlgmr.msra.gmra.mrb[20].mxu1 %vm968_vm1, %v1613_v7 }
 0x66a   : > { %3065 = vmatpush3.bf16.msra.mxu1 %v3360_v5  ;;  %3068 = vmatprep.mubr.msk.bf16.mxu1 %vm3894_vm0, %v3893_v0 }
 0x66b   : > { %3066 = vmatprep.subr.bf16.mxu1 %v3893_v0 }
 0x66e   : > { %3067 = vmatpush3.bf16.msra.mxu1 %v3361_v8 }
 0x66f   : > { %3080 = vmatprep.subr.bf16.mxu1 %v3893_v0 }
 0x671   : > { %3069 = vmatmul.mubr.msk.bf16.vlgmr.msra.gmra.mrb[24].mxu1 %vm968_vm1, %v1683_v10 }
 0x672   : > { %3082 = vmatprep.mubr.msk.bf16.mxu1 %vm3894_vm0, %v3893_v0 }
 0x73c   : > { %v1674_v14 = vpop.f32.mrb[20].mxu1 }
 0x73d   : > { %v1675_v15 = vadd.f32 %v2861_v13, %v1674_v14  ;;  %v3054_v16 = vpop.f32.mrb[21].mxu1 }
 0x73e   : > { %v1677_v17 = vpop.f32.mrb[22].mxu1 }
 0x73f   : > { %v4530_v18 = vadd.f32 %v1675_v15, %v4420_v6  ;;  %v3055_v19 = vpop.f32.mrb[23].mxu1 }
 0x741   : > { %v1681_v20 = vpack.c.bf16 %v4530_v18, %v4530_v18 }
 0x743   : > { %3061 = vmatmul.mubr.msk.bf16.vlgmr.msra.gmra.mrb[24].mxu0 %vm968_vm1, %v1681_v20 }
 0x744   : > { %v1811_v22 = vpop.f32.mrb[24].mxu1  ;;  %3076 = vmatprep.mubr.msk.bf16.mxu0 %vm3894_vm0, %v3893_v0  ;;  %3073 = vmatpush3.bf16.msra.mxu0 %v3364_v37 }
 0x745   : > { %v1812_v23 = vadd.f32 %v2869_v21, %v1811_v22  ;;  %v3070_v24 = vpop.f32.mrb[25].mxu1  ;;  %3074 = vmatprep.subr.bf16.mxu0 %v3893_v0 }
 0x746   : > { %v1814_v25 = vpop.f32.mrb[26].mxu1 }
 0x747   : > { %v1817_v26 = vpack.c.bf16 %v1812_v23, %v1812_v23  ;;  %v3071_v27 = vpop.f32.mrb[27].mxu1 }
 0x748   : > { %3075 = vmatpush3.bf16.msra.mxu0 %v3365_v38 }
 0x749   : > { %1992 = vrot.lane.b32.xlu0 %v1817_v26, %s3896_s22  ;;  %v1886_v6 = vsel %vm1144_vm2, %v1817_v26, 0  ;;  %3086 = vmatprep.subr.bf16.mxu0 %v3893_v0 }
 0x74a   : > { %3081 = vmatpush3.bf16.xpose.msra.mxu1 %v1886_v6 }
 0x74b   : > { %3092 = vmatprep.subr.bf16.mxu1 %v3893_v0  ;;  %3077 = vmatmul.mubr.msk.bf16.vlgmr.msra.gmra.mrb[28].mxu0 %vm968_vm1, %v1683_v10 }
 0x74c   : > { %3088 = vmatprep.mubr.msk.bf16.mxu0 %vm3894_vm0, %v3893_v0 }
 0x74d   : > { %2111 = vrot.lane.b32.xlu0 %v1817_v26, %s3895_s2 }
 0x751   : > { %2229 = vrot.lane.b32.xlu0 %v1817_v26, %s3897_s11 }
 0x7bb   : > { %v1993_v33 = vpop.permute.xlu0 %1992 }
 0x7bc   : > { %v1998_v36 = vsel %vm1144_vm2, %v1993_v33, 0 }
 0x7bf   : > { %v2112_v39 = vpop.permute.xlu0 %2111 }
 0x7c0   : > { %v2117_v41 = vsel %vm1144_vm2, %v2112_v39, 0 }
 0x7c3   : > { %v2230_v42 = vpop.permute.xlu0 %2229 }
 0x7c4   : > { %v2235_v44 = vsel %vm1144_vm2, %v2230_v42, 0 }
 0x816   : > { %v1744_v29 = vpop.f32.mrb[24].mxu0 }
 0x817   : > { %v1745_v30 = vadd.f32 %v2865_v28, %v1744_v29  ;;  %v3062_v31 = vpop.f32.mrb[25].mxu0 }
 0x818   : > { %v1747_v32 = vpop.f32.mrb[26].mxu0 }
 0x819   : > { %v1750_v34 = vpack.c.bf16 %v1745_v30, %v1745_v30  ;;  %v3063_v35 = vpop.f32.mrb[27].mxu0 }
 0x81b   : > { %1989 = vrot.lane.b32.xlu1 %v1750_v34, %s3896_s22  ;;  %3083 = vmatmul.mubr.msk.bf16.vlgmr.msra.gmra.mrb[28].mxu1 %vm1144_vm2, %v1750_v34 }
 0x81c   : > { %3093 = vmatpush3.bf16.xpose.msra.mxu1 %v1998_v36  ;;  %3094 = vmatprep.mubr.msk.bf16.mxu1 %vm3894_vm0, %v3893_v0 }
 0x81d   : > { %3104 = vmatprep.subr.bf16.mxu1 %v3893_v0 }
 0x81e   : > { %v1875_v52 = vpop.f32.mrb[28].mxu0 }
 0x81f   : > { %2109 = vrot.lane.b32.xlu1 %v1750_v34, %s3895_s2  ;;  %v1876_v53 = vadd.f32 %v2873_v51, %v1875_v52  ;;  %v3078_v54 = vpop.f32.mrb[29].mxu0 }
 0x820   : > { %v1878_v55 = vpop.f32.mrb[30].mxu0 }
 0x821   : > { %v1881_v56 = vpack.c.bf16 %v1876_v53, %v1876_v53  ;;  %v3079_v57 = vpop.f32.mrb[31].mxu0 }
 0x823   : > { %2227 = vrot.lane.b32.xlu1 %v1750_v34, %s3897_s11  ;;  %v1944_v58 = vsel %vm1206_vm3, %v1881_v56, 0 }
 0x824   : > { %3087 = vmatpush3.bf16.msra.mxu0 %v1944_v58 }
 0x825   : > { %3098 = vmatprep.subr.bf16.mxu0 %v3893_v0 }
 0x88d   : > { %v1990_v40 = vpop.permute.xlu1 %1989 }
 0x88e   : > { %3095 = vmatmul.mubr.msk.bf16.vlgmr.msra.gmra.mrb[32].mxu1 %vm1144_vm2, %v1990_v40 }
 0x88f   : > { %3105 = vmatpush3.bf16.xpose.msra.mxu1 %v2117_v41  ;;  %3106 = vmatprep.mubr.msk.bf16.mxu1 %vm3894_vm0, %v3893_v0 }
 0x890   : > { %3116 = vmatprep.subr.bf16.mxu1 %v3893_v0 }
 0x891   : > { %v2110_v43 = vpop.permute.xlu1 %2109 }
 0x895   : > { %v2228_v45 = vpop.permute.xlu1 %2227 }
 0x896   : > { %3107 = vmatmul.mubr.msk.bf16.vlgmr.msra.gmra.mrb[36].mxu1 %vm1144_vm2, %v2110_v43 }
 0x897   : > { %3117 = vmatpush3.bf16.xpose.msra.mxu1 %v2235_v44  ;;  %3118 = vmatprep.mubr.msk.bf16.mxu1 %vm3894_vm0, %v3893_v0 }
 0x898   : > { %3128 = vmatprep.subr.bf16.mxu1 %v3893_v0 }
 0x89e   : > { %3119 = vmatmul.mubr.msk.bf16.vlgmr.msra.gmra.mrb[40].mxu1 %vm1144_vm2, %v2228_v45 }
 0x89f   : > { %3132 = vmatprep.mubr.msk.bf16.mxu1 %vm3894_vm0, %v3893_v0 }
 0x8ee   : > { %v1922_v46 = vpop.f32.mrb[28].mxu1 }
 0x8ef   : > { %v3084_v47 = vpop.f32.mrb[29].mxu1  ;;  %v1928_v48 = vsel %vm1144_vm2, %v1922_v46, -inf }
 0x8f0   : > { %1929 = vmax.xlane.f32.xlu0 %v1928_v48  ;;  %v1925_v49 = vpop.f32.mrb[30].mxu1 }
 0x8f1   : > { %v3085_v50 = vpop.f32.mrb[31].mxu1 }
 0x961   : > { %v2034_v59 = vpop.f32.mrb[32].mxu1 }
 0x962   : > { %v3096_v60 = vpop.f32.mrb[33].mxu1  ;;  %v2040_v61 = vsel %vm1144_vm2, %v2034_v59, -inf }
 0x963   : > { %2041 = vmax.xlane.f32.xlu1 %v2040_v61  ;;  %v2037_v62 = vpop.f32.mrb[34].mxu1 }
 0x964   : > { %v3097_v63 = vpop.f32.mrb[35].mxu1 }
 0x969   : > { %v2153_v1 = vpop.f32.mrb[36].mxu1 }
 0x96a   : > { %v3108_v2 = vpop.f32.mrb[37].mxu1  ;;  %v2159_v3 = vsel %vm1144_vm2, %v2153_v1, -inf }
 0x96b   : > { %2160 = vmax.xlane.f32.xlu0 %v2159_v3  ;;  %v2156_v4 = vpop.f32.mrb[38].mxu1  ;;  %v3367_v3 = vld [vmem:[%s4714_s17 + $0x8] sm:$0xff]  }
 0x96c   : > { %v3109_v5 = vpop.f32.mrb[39].mxu1 }
 0x971   : > { %v2271_v7 = vpop.f32.mrb[40].mxu1 }
 0x972   : > { %v3120_v8 = vpop.f32.mrb[41].mxu1  ;;  %v2277_v9 = vsel %vm1144_vm2, %v2271_v7, -inf }
 0x973   : > { %2278 = vmax.xlane.f32.xlu0 %v2277_v9  ;;  %v2274_v10 = vpop.f32.mrb[42].mxu1 }
 0x974   : > { %v3121_v11 = vpop.f32.mrb[43].mxu1 }
 0x97d   : > { %v1930_v12 = vpop.xlane.xlu0 %1929 }
 0x97e   : > { %v1931_v13 = vsub.f32 %v1922_v46, %v1930_v12 }
 0x980   : > { %v1932_v14 = vmul.f32 1.442695, %v1931_v13 }
 0x982   : > { %3390 = vpow2.f32 %v1932_v14 }
 0x98c   : > { %v3391_v15 = vpop.eup %3390 }
 0x98d   : > { %v1934_v16 = vsel %vm1144_vm2, %v3391_v15, 0.0 }
 0x98e   : > { %1935 = vadd.xlane.f32.xlu1 %v1934_v16 }
 0x99f   : > { %2053 = vrot.lane.b32.xlu1 %v1881_v56, %s3896_s22 }
 0x9f0   : > { %v2042_v17 = vpop.xlane.xlu1 %2041 }
 0x9f1   : > { %v2043_v19 = vsub.f32 %v2034_v59, %v2042_v17 }
 0x9f3   : > { %v2044_v20 = vmul.f32 1.442695, %v2043_v19  ;;  %v3368_v19 = vld [vmem:[#allocation23] sm:$0xff]  }
 0x9f5   : > { %3392 = vpow2.f32 %v2044_v20  ;;  %v3369_v20 = vld [vmem:[#allocation23 + $0x8] sm:$0xff]  }
 0x9f8   : > { %v2161_v21 = vpop.xlane.xlu0 %2160 }
 0x9f9   : > { %v2162_v22 = vsub.f32 %v2153_v1, %v2161_v21  ;;  %v3366_v1 = vld [vmem:[%s4714_s17] sm:$0xff]  }
 0x9fa   : > { %3129 = vmatpush3.bf16.msra.mxu1 %v3366_v1  ;;  %v3370_v21 = vld [vmem:[%s4718_s21] sm:$0xff]  }
 0x9fb   : > { %v2163_v23 = vmul.f32 1.442695, %v2162_v22  ;;  %3130 = vmatprep.subr.bf16.mxu1 %v3893_v0  ;;  %v3371_v22 = vld [vmem:[%s4718_s21 + $0x8] sm:$0xff]  }
 0x9fd   : > { %3394 = vpow2.f32 %v2163_v23 }
 0x9fe   : > { %3131 = vmatpush3.bf16.msra.mxu1 %v3367_v3 }
 0x9ff   : > { %v3393_v24 = vpop.eup %3392  ;;  %3144 = vmatprep.subr.bf16.mxu1 %v3893_v0 }
 0xa00   : > { %v2279_v25 = vpop.xlane.xlu0 %2278  ;;  %v2046_v26 = vsel %vm1144_vm2, %v3393_v24, 0.0 }
 0xa01   : > { %v2280_v27 = vsub.f32 %v2271_v7, %v2279_v25  ;;  %2047 = vadd.xlane.f32.xlu0 %v2046_v26 }
 0xa03   : > { %v2281_v6 = vmul.f32 1.442695, %v2280_v27 }
 0xa05   : > { %3396 = vpow2.f32 %v2281_v6 }
 0xa07   : > { %v3395_v28 = vpop.eup %3394 }
 0xa08   : > { %v2165_v29 = vsel %vm1144_vm2, %v3395_v28, 0.0 }
 0xa09   : > { %2166 = vadd.xlane.f32.xlu1 %v2165_v29 }
 0xa0f   : > { %v3397_v30 = vpop.eup %3396 }
 0xa10   : > { %v2283_v31 = vsel %vm1144_vm2, %v3397_v30, 0.0 }
 0xa11   : > { %2284 = vadd.xlane.f32.xlu0 %v2283_v31  ;;  %v3373_v31 = vld [vmem:[%s4718_s21 + $0x18] sm:$0xff]  }
 0xa1a   : > { %2289 = vrot.lane.b32.xlu1 %v1881_v56, %s3897_s11 }
 0xa1b   : > { %v1936_v32 = vpop.xlane.xlu1 %1935 }
 0xa1c   : > { %3398 = vrcp.f32 %v1936_v32 }
 0xa1f   : > { %v2054_v34 = vpop.permute.xlu1 %2053 }
 0xa20   : > { %v2059_v37 = vsel %vm1206_vm3, %v2054_v34, 0 }
 0xa26   : > { %v3399_v33 = vpop.eup %3398 }
 0xa27   : > { %v1938_v35 = vmul.f32 %v3399_v33, %v3391_v15  ;;  %2171 = vrot.lane.b32.xlu0 %v1881_v56, %s3895_s2  ;;  %s2834_s2 = sshll.u32 %s922_s27, 3 }
 0xa28   : > { %s924_s30 = scalar_lea.vmem [#allocation24], %s2834_s2 }
 0xa29   : > { %v1939_v36 = vpack.c.bf16 %v1938_v35, %v1938_v35  ;;  %s2582_s26 = sshll.u32 %s924_s30, 4  ;;  %s4651_s26 = int_to_ptr.vmem [resolvable:$true] %s2582_s26 }
 0xa2a   : > { %s3770_s28 = scalar_lea.vmem %s4651_s26, 128  ;;  %p3777_p11 = scmp.lt.s32.totalorder %s4651_s26, %s3775_s16 }
 0xa2b   : > { %3089 = vmatmul.mubr.msk.bf16.vlgmr.msra.gmra.mrb[32].mxu0 %vm1144_vm2, %v1939_v36  ;;  %p3771_p2 = scmp.ne.s32.totalorder %s4651_s26, %s3770_s28  ;;  %p3778_p3 = scmp.lt.s32.totalorder %s3776_s8, %s3770_s28 }
 0xa2c   : > { %3099 = vmatpush3.bf16.msra.mxu0 %v2059_v37  ;;  %3100 = vmatprep.mubr.msk.bf16.mxu0 %vm3894_vm0, %v3893_v0 }
 0xa2d   : > { %3110 = vmatprep.subr.bf16.mxu0 %v3893_v0  ;;  %p3772_p8 = pnand %p3771_p2, %p4803_p4  ;;  %p3779_p5 = por %p3778_p3, %p3777_p11 }
 0xa2f   : > { %p3773_p10 = pneg %p3772_p8 }
 0xa31   : > { %p3780_p6 = pnand %p3779_p5, %p3773_p10 }
 0xa8e   : > { %v2048_v38 = vpop.xlane.xlu0 %2047 }
 0xa8f   : > { %3400 = vrcp.f32 %v2048_v38 }
 0xa96   : > { %v2167_v39 = vpop.xlane.xlu1 %2166 }
 0xa97   : > { %3402 = vrcp.f32 %v2167_v39 }
 0xa99   : > { %v3401_v40 = vpop.eup %3400 }
 0xa9a   : > { %v2050_v41 = vmul.f32 %v3401_v40, %v3393_v24  ;;  %v2290_v48 = vpop.permute.xlu1 %2289 }
 0xa9b   : > { %v2295_v50 = vsel %vm1206_vm3, %v2290_v48, 0 }
 0xa9c   : > { %v2051_v42 = vpack.c.bf16 %v2050_v41, %v2050_v41 }
 0xa9e   : > { %v2285_v43 = vpop.xlane.xlu0 %2284  ;;  %3101 = vmatmul.mubr.msk.bf16.vlgmr.msra.gmra.mrb[36].mxu0 %vm1144_vm2, %v2051_v42 }
 0xa9f   : > { %3404 = vrcp.f32 %v2285_v43  ;;  %3112 = vmatprep.mubr.msk.bf16.mxu0 %vm3894_vm0, %v3893_v0 }
 0xaa1   : > { %v3403_v44 = vpop.eup %3402 }
 0xaa2   : > { %v2169_v45 = vmul.f32 %v3403_v44, %v3395_v28  ;;  %v2172_v46 = vpop.permute.xlu0 %2171 }
 0xaa3   : > { %v2177_v47 = vsel %vm1206_vm3, %v2172_v46, 0 }
 0xaa4   : > { %3111 = vmatpush3.bf16.msra.mxu0 %v2177_v47  ;;  %v2170_v49 = vpack.c.bf16 %v2169_v45, %v2169_v45 }
 0xaa5   : > { %3122 = vmatprep.subr.bf16.mxu0 %v3893_v0 }
 0xaa7   : > { %3113 = vmatmul.mubr.msk.bf16.vlgmr.msra.gmra.mrb[40].mxu0 %vm1144_vm2, %v2170_v49 }
 0xaa8   : > { %3123 = vmatpush3.bf16.msra.mxu0 %v2295_v50  ;;  %3124 = vmatprep.mubr.msk.bf16.mxu0 %vm3894_vm0, %v3893_v0 }
 0xaa9   : > { %v3405_v51 = vpop.eup %3404  ;;  %3136 = vmatprep.subr.bf16.mxu0 %v3893_v0 }
 0xaaa   : > { %v2287_v52 = vmul.f32 %v3405_v51, %v3397_v30  ;;  %v3372_v30 = vld [vmem:[%s4718_s21 + $0x10] sm:$0xff]  }
 0xaac   : > { %v2288_v53 = vpack.c.bf16 %v2287_v52, %v2287_v52 }
 0xaaf   : > { %3125 = vmatmul.mubr.msk.bf16.vlgmr.msra.gmra.mrb[44].mxu0 %vm1144_vm2, %v2288_v53 }
 0xab0   : > { %3140 = vmatprep.mubr.msk.bf16.mxu0 %vm3894_vm0, %v3893_v0  ;;  %3137 = vmatpush3.bf16.msra.mxu0 %v3368_v19 }
 0xab1   : > { %3138 = vmatprep.subr.bf16.mxu0 %v3893_v0 }
 0xab4   : > { %3139 = vmatpush3.bf16.msra.mxu0 %v3369_v20 }
 0xafe   : > { %v1980_v54 = vpop.f32.mrb[32].mxu0 }
 0xaff   : > { %v1986_v55 = vpack.c.bf16 %v1980_v54, %v1980_v54  ;;  %v3090_v56 = vpop.f32.mrb[33].mxu0 }
 0xb00   : > { %v1983_v57 = vpop.f32.mrb[34].mxu0 }
 0xb01   : > { %1987 = vst.msk [vmem:[#allocation2] sm:$0xf] %vm1251_vm4, %v1986_v55  ;;  %v3091_v58 = vpop.f32.mrb[35].mxu0 }
 0xb71   : > { %v2095_v59 = vpop.f32.mrb[36].mxu0 }
 0xb72   : > { %v2909_v60 = vpack.c.bf16 %v2095_v59, %v2095_v59  ;;  %v3102_v61 = vpop.f32.mrb[37].mxu0 }
 0xb73   : > { %v2098_v62 = vpop.f32.mrb[38].mxu0 }
 0xb74   : > { %2105 = vrot.lane.b32.xlu1 %v2909_v60, %s3898_s5  ;;  %v3103_v63 = vpop.f32.mrb[39].mxu0  ;;  %s4799_s5 = sld [smem:[#allocation56_spill]] }
 0xb7a   : > { %v2213_v2 = vpop.f32.mrb[40].mxu0 }
 0xb7b   : > { %v2910_v4 = vpack.c.bf16 %v2213_v2, %v2213_v2  ;;  %v3114_v5 = vpop.f32.mrb[41].mxu0 }
 0xb7c   : > { %v2216_v7 = vpop.f32.mrb[42].mxu0 }
 0xb7d   : > { %2223 = vrot.lane.b32.xlu0 %v2910_v4, %s3899_s7  ;;  %v3115_v8 = vpop.f32.mrb[43].mxu0 }
 0xb82   : > { %v2331_v9 = vpop.f32.mrb[44].mxu0 }
 0xb83   : > { %v2911_v10 = vpack.c.bf16 %v2331_v9, %v2331_v9  ;;  %v3126_v11 = vpop.f32.mrb[45].mxu0 }
 0xb84   : > { %v2334_v12 = vpop.f32.mrb[46].mxu0 }
 0xb85   : > { %2341 = vrot.lane.b32.xlu1 %v2911_v10, %s3900_s0  ;;  %v3127_v13 = vpop.f32.mrb[47].mxu0  ;;  %s4796_s0 = sld [smem:[#allocation54_spill]] }
 0xb8b   : > { %v2888_v23 = vld [vmem:[%s4796_s0] ss:$0 sm:$0xff] }
 0xbe6   : > { %v2106_v14 = vpop.permute.xlu1 %2105 }
 0xbe7   : > { %2108 = vst.msk [vmem:[#allocation2] sm:$0xf] %vm1373_vm5, %v2106_v14 }
 0xbef   : > { %v2224_v15 = vpop.permute.xlu0 %2223 }
 0xbf0   : > { %2226 = vst.msk [vmem:[#allocation2] sm:$0xf] %vm1492_vm6, %v2224_v15 }
 0xbf7   : > { %v2342_v16 = vpop.permute.xlu1 %2341 }
 0xbf8   : > { %2344 = vst.msk [vmem:[#allocation2] sm:$0xf] %vm1611_vm7, %v2342_v16 }
 0xbff   : > { %v2345_v17 = vld [vmem:[#allocation2] sm:$0xf] }
 0xc00   : > { %3133 = vmatmul.mubr.msk.bf16.vlgmr.msra.gmra.mrb[44].mxu1 %vm968_vm1, %v2345_v17 }
 0xc01   : > { %3152 = vmatprep.mubr.msk.bf16.mxu1 %vm3894_vm0, %v3893_v0  ;;  %3145 = vmatpush3.bf16.msra.mxu1 %v3370_v21 }
 0xc02   : > { %3146 = vmatprep.subr.bf16.mxu1 %v3893_v0 }
 0xc05   : > { %3147 = vmatpush3.bf16.msra.mxu1 %v3371_v22 }
 0xc06   : > { %3148 = vmatprep.subr.bf16.mxu1 %v3893_v0 }
 0xc09   : > { %3149 = vmatpush3.bf16.msra.mxu1 %v3372_v30 }
 0xc0a   : > { %3150 = vmatprep.subr.bf16.mxu1 %v3893_v0  ;;  %v2896_v0 = vld [vmem:[%s4799_s5] ss:$0 sm:$0xff] }
 0xc0d   : > { %3151 = vmatpush3.bf16.msra.mxu1 %v3373_v31 }
 0xcd3   : > { %v2406_v24 = vpop.f32.mrb[44].mxu1 }
 0xcd4   : > { %v2407_v25 = vadd.f32 %v2888_v23, %v2406_v24  ;;  %v3134_v26 = vpop.f32.mrb[45].mxu1 }
 0xcd5   : > { %v2409_v27 = vpop.f32.mrb[46].mxu1 }
 0xcd6   : > { %v2412_v6 = vadd.f32 %v2407_v25, %v4530_v18  ;;  %v3135_v28 = vpop.f32.mrb[47].mxu1  ;;  %v2892_v18 = vld [vmem:[%s4798_s24] ss:$0 sm:$0xff] }
 0xcd8   : > { %v2413_v29 = vpack.c.bf16 %v2412_v6, %v2412_v6 }
 0xcda   : > { %3141 = vmatmul.mubr.msk.bf16.vlgmr.msra.gmra.mrb[48].mxu0 %vm968_vm1, %v2413_v29 }
 0xdad   : > { %v2474_v32 = vpop.f32.mrb[48].mxu0 }
 0xdae   : > { %v2475_v33 = vadd.f32 %v2892_v18, %v2474_v32  ;;  %v3142_v34 = vpop.f32.mrb[49].mxu0 }
 0xdaf   : > { %v2477_v35 = vpop.f32.mrb[50].mxu0 }
 0xdb0   : > { %v2480_v36 = vmax.f32 %v2475_v33, 0.0  ;;  %v3143_v37 = vpop.f32.mrb[51].mxu0 }
 0xdb2   : > { %v2481_v38 = vpack.c.bf16 %v2480_v36, %v2480_v36 }
 0xdb4   : > { %3153 = vmatmul.mubr.msk.bf16.vlgmr.msra.gmra.mrb[48].mxu1 %vm2521_vm8, %v2481_v38 }
 0xe87   : > { %v2559_v39 = vpop.f32.mrb[48].mxu1 }
 0xe88   : > { %v2560_v40 = vadd.f32 %v2896_v0, %v2559_v39  ;;  %v3154_v41 = vpop.f32.mrb[49].mxu1 }
 0xe89   : > { %v2562_v42 = vpop.f32.mrb[50].mxu1 }
 0xe8a   : > { %v2565_v43 = vadd.f32 %v2560_v40, %v2412_v6  ;;  %v3155_v44 = vpop.f32.mrb[51].mxu1 }
 0xe8c   : > { %2566 = vst.msk [vmem:[%s924_s30] sm:$0xff] %vm968_vm1, %v2565_v43 }
 0xe8d   : > { %3783 = shalt.err (!%p3780_p6)
}
 0xe8e   : > { %s3784_s24 = scalar_lea.hbm %s4649_s29, 128  ;;  %s3788_s22 = scalar_lea.hbm %s4802_s6, 256 }
 0xe8f   : > { %p3785_p7 = scmp.ne.s32.totalorder %s4649_s29, %s3784_s24  ;;  %p3789_p0 = scmp.lt.u32.totalorder %s4649_s29, %s4802_s6 }
 0xe90   : > { %p3790_p1 = scmp.lt.u32.totalorder %s3788_s22, %s3784_s24  ;;  %p3792_p2 = scmp.lt.u32.totalorder %s3784_s24, %s4649_s29 }
 0xe91   : > { %p3786_p9 = pnand %p3785_p7, %p4803_p4 }
 0xe92   : > { %p3791_p13 = por %p3790_p1, %p3789_p0 }
 0xe93   : > { %p3787_p12 = pneg %p3786_p9 }
 0xe94   : > { %p3793_p8 = por %p3792_p2, %p3791_p13 }
 0xe96   : > { %p3794_p10 = pnand %p3793_p8, %p3787_p12 }
 0xe98   : > { %3797 = shalt.err (!%p3794_p10)
}
 0xe99   : > { %3208 = dma.vmem_to_hbm [thread:$0]  (%p4803_p4), %s4651_s26, 128, %s4649_s29, %s2568_s25  }
 0xe9a PF: > { %s4804_s3 = sld [smem:[#allocation37_spill]]  ;;  %s4805_s30 = sld [smem:[#allocation33_spill]] }
 0xe9b   : > { %s4806_s7 = sld [smem:[#allocation40_spill]] }
 0xea0   : > { %p3280_p11 = scmp.ge.s32.totalorder %s4804_s3, 2  ;;  %s2594_s0 = sand.u32 1, %s4805_s30  }
 0xea1   : > { %p4807_p3 = scmp.ne.s32.totalorder %s4806_s7, 0  ;;  %s2595_s4 = scalar_lea.sflag [#allocation5], %s2594_s0 }
 0xea3   : > { %p3251_p5 = pnand %p3280_p11, %p4807_p3 }
 0xea5   : > { %3851 = dma.done.wait (!%p3251_p5), %s2595_s4, 128  }
 0xea6   : > { %3853 = vsyncadd (!%p3251_p5), %s2595_s4, 4294967168  ;;  %s43_s1 = sadd.s32 1, %s4804_s3   ;;  %s4808_s4 = sld [smem:[#allocation34_spill]] }
 0xea7   : > { %p40_p6 = scmp.ge.s32.totalorder %s43_s1, 4   ;;  %s4809_s30 = sld [smem:[#allocation35_spill]] }
 0xea8   : > { %s4810_s24 = sld [smem:[#allocation41_spill]]  ;;  %s4811_s25 = sld [smem:[#allocation36_spill]] }
 0xea9   : > { %s4812_s5 = sld [smem:[#allocation38_spill]]  ;;  %42 = sbr.rel (!%p40_p6) target bundleno = 28 (0x1c), region = 206 }
 0xeb0   :  { %2600 = vsyncpa [#allocation4], 1 }
 0xeb1   :  { %2602 = vsyncpa [#allocation4 + $0x1], 1 }
 0xeb2   :  { %2603 = vsyncpa [#allocation7], 1 }
 0xeb3   :  { %2604 = vsyncpa [#allocation10], 1 }
 0xeb4   :  { %2605 = vsyncpa [#allocation13], 1 }
 0xeb5   :  { %2606 = vsyncpa [#allocation16], 1 }
 0xeb6   :  { %2607 = vsyncpa [#allocation19], 1 }
 0xeb7   :  { %2608 = vsyncpa [#allocation22], 1 }
 0xeb8   :  { %2609 = vsyncpa [#allocation5], 1 }
 0xeb9   :  { %2611 = vsyncpa [#allocation5 + $0x1], 1 }

</bundles_post_ra>
